<compile_context>
chip_gen: v6e
topology: v6e:2x2x1
jax: 0.10.0
libtpu: 0.0.40
codegen_flags: <defaults>
</compile_context>

<pallas_src>
import functools

import jax
import jax.numpy as jnp
from jax import lax
from jax.experimental import pallas as pl
from jax.experimental.pallas import tpu as pltpu

_BN_EPS = 1e-5


# --------------------------------------------------------------------------
# In-kernel helpers
# --------------------------------------------------------------------------

def _bn_relu(x, gamma, beta):
    """Training-mode batch norm over rows (per-column stats, biased variance),
    single-pass E[x^2] - mean^2, then affine + ReLU."""
    inv_r = 1.0 / x.shape[0]
    mean = jnp.sum(x, axis=0, keepdims=True) * inv_r
    mean_sq = jnp.sum(x * x, axis=0, keepdims=True) * inv_r
    var = mean_sq - mean * mean
    scale = gamma * lax.rsqrt(var + _BN_EPS)
    shift = beta - mean * scale
    return jnp.maximum(x * scale + shift, 0.0)


# --------------------------------------------------------------------------
# Kernel A: preprocess = Linear(128 -> 4*4*4*DIM) + BatchNorm + ReLU (fused).
# Output columns are ordered (spatial position p=i*4+j, channel c) so that the
# token reorganisation afterwards is a pure row-major reshape.
# --------------------------------------------------------------------------

def _preprocess_kernel(x_ref, w_ref, g_ref, b_ref, o_ref):
    h = jnp.dot(x_ref[...], w_ref[...], preferred_element_type=jnp.float32)
    o_ref[...] = _bn_relu(h, g_ref[...], b_ref[...])


# --------------------------------------------------------------------------
# Kernel B: block1 + block2 + deconv_out + tanh, fully fused in VMEM.
# ConvT weights have columns ordered (sub-pixel s=2a+b, channel), so the
# depth-to-space is 4 aligned static sub-block copies into VMEM scratch.
# --------------------------------------------------------------------------

def _decoder_kernel(t1_ref, w1_ref, g1_ref, b1_ref, w2_ref, g2_ref, b2_ref,
                    w3_ref, b3_ref, o_ref, t2_ref, t3_ref, *, n, dim):
    f32 = jnp.float32

    # block1: ConvT(4*DIM -> 2*DIM, k=2, s=2) as matmul
    y1 = jnp.dot(t1_ref[...], w1_ref[...], preferred_element_type=f32)  # (16N, 4*2DIM)
    # depth-to-space: rows (n,i,j) x cols (s1,co) -> rows (s1,n,i,j) x cols co
    r1, c1 = 16 * n, 2 * dim
    for s in range(4):                       # 8-aligned row blocks, static slices
        t2_ref[s * r1:(s + 1) * r1, :] = y1[:, s * c1:(s + 1) * c1]
    t2 = _bn_relu(t2_ref[...], g1_ref[...], b1_ref[...])                # (64N, 2DIM)

    # block2: ConvT(2*DIM -> DIM, k=2, s=2)
    y2 = jnp.dot(t2, w2_ref[...], preferred_element_type=f32)           # (64N, 4*DIM)
    r2, c2 = 64 * n, dim
    for s in range(4):
        t3_ref[s * r2:(s + 1) * r2, :] = y2[:, s * c2:(s + 1) * c2]
    t3 = _bn_relu(t3_ref[...], g2_ref[...], b2_ref[...])                # (256N, DIM)

    # deconv_out: ConvT(DIM -> 3, k=2, s=2) + bias + tanh (fused; applied on the
    # widest layout available here, before the final sub-pixel unscramble)
    y3 = jnp.dot(t3, w3_ref[...], preferred_element_type=f32) + b3_ref[...]
    o_ref[...] = jnp.tanh(y3)                                           # (256N, 12)


# --------------------------------------------------------------------------
# pallas_call wrappers
# --------------------------------------------------------------------------

def _vmem():
    return pl.BlockSpec(memory_space=pltpu.MemorySpace.VMEM)


@functools.partial(jax.jit, static_argnames=("dim",))
def generator_forward(x, kp, *, dim):
    n = x.shape[0]
    f32 = jnp.float32
    cparams = pltpu.CompilerParams(vmem_limit_bytes=32 * 1024 * 1024)

    # --- preprocess: fused Linear + BN + ReLU -> (N, 16*4*DIM), cols (p, c)
    h = pl.pallas_call(
        _preprocess_kernel,
        out_shape=jax.ShapeDtypeStruct((n, 64 * dim), f32),
        in_specs=[_vmem() for _ in range(4)],
        out_specs=_vmem(),
        compiler_params=cparams,
    )(x, kp["w_lin"], kp["g_pre"], kp["beta_pre"])

    # tokens: (N, 16*4DIM) -> (16N, 4DIM); row = n*16 + (i*4 + j).  Free reshape.
    t1 = h.reshape(16 * n, 4 * dim)

    # --- decoder: ConvT1+BN+ReLU + ConvT2+BN+ReLU + ConvT3+bias+tanh, one call
    y = pl.pallas_call(
        functools.partial(_decoder_kernel, n=n, dim=dim),
        out_shape=jax.ShapeDtypeStruct((256 * n, 12), f32),
        in_specs=[_vmem() for _ in range(9)],
        out_specs=_vmem(),
        scratch_shapes=[
            pltpu.VMEM((64 * n, 2 * dim), f32),    # post-ConvT1 depth-to-space
            pltpu.VMEM((256 * n, dim), f32),       # post-ConvT2 depth-to-space
        ],
        compiler_params=cparams,
    )(t1, kp["w1"], kp["g1"], kp["beta1"],
      kp["w2"], kp["g2"], kp["beta2"], kp["w3"], kp["b3"])

    # Single XLA transpose: unscramble sub-pixel ordering and convert to NCHW.
    # y rows = (a2, b2, a1, b1, n, i, j), cols = (a3, b3, c);
    # H = 8i + 4a1 + 2a2 + a3, W = 8j + 4b1 + 2b2 + b3.
    y = y.reshape(2, 2, 2, 2, n, 4, 4, 2, 2, 3)
    y = jnp.transpose(y, (4, 9, 5, 2, 0, 7, 6, 3, 1, 8))  # (n,c,i,a1,a2,a3,j,b1,b2,b3)
    return y.reshape(n, 3, 32, 32)


# --------------------------------------------------------------------------
# Parameters: PyTorch layout + one-time conversion to kernel layout
# --------------------------------------------------------------------------

def init_params(key, dim):
    """PyTorch-layout parameters (same init scheme as the previous version)."""
    ks = jax.random.split(key, 8)

    def u(k, shape, fan_in):
        bound = 1.0 / float(fan_in) ** 0.5
        return jax.random.uniform(k, shape, jnp.float32, -bound, bound)

    p = {}
    p["w_lin"] = u(ks[0], (64 * dim, 128), 128)                 # Linear (out, in)
    p["b_lin"] = u(ks[1], (64 * dim,), 128)
    p["g_pre"] = jnp.ones((64 * dim,), jnp.float32)
    p["beta_pre"] = jnp.zeros((64 * dim,), jnp.float32)

    p["w1"] = u(ks[2], (4 * dim, 2 * dim, 2, 2), 2 * dim * 4)   # ConvT (cin,cout,2,2)
    p["b1"] = u(ks[3], (2 * dim,), 2 * dim * 4)
    p["g1"] = jnp.ones((2 * dim,), jnp.float32)
    p["beta1"] = jnp.zeros((2 * dim,), jnp.float32)

    p["w2"] = u(ks[4], (2 * dim, dim, 2, 2), dim * 4)
    p["b2"] = u(ks[5], (dim,), dim * 4)
    p["g2"] = jnp.ones((dim,), jnp.float32)
    p["beta2"] = jnp.zeros((dim,), jnp.float32)

    p["w3"] = u(ks[6], (dim, 3, 2, 2), 3 * 4)
    p["b3"] = u(ks[7], (3,), 3 * 4)
    return p


def prepare_params(pt, dim):
    """Convert PyTorch-layout params to the fused-kernel layout (done once)."""
    p = {}
    # Linear: (out=64*DIM, in=128) with out feature o = c*16 + p.  Permute out
    # features to (p, c) order and transpose to (in, out).
    w = pt["w_lin"].reshape(4 * dim, 16, 128)                       # (c, p, k)
    p["w_lin"] = jnp.transpose(w, (1, 0, 2)).reshape(16 * 4 * dim, 128).T
    p["g_pre"] = pt["g_pre"].reshape(4 * dim, 16).T.reshape(1, 16 * 4 * dim)
    p["beta_pre"] = pt["beta_pre"].reshape(4 * dim, 16).T.reshape(1, 16 * 4 * dim)
    # b_lin / b1 / b2 are dropped: exactly cancelled by training-mode BN.

    def convt_w(w_pt):
        c_in, c_out = w_pt.shape[0], w_pt.shape[1]
        # (cin,cout,2,2) -> (cin,2,2,cout) -> (cin, 4*cout); col = (2a+b)*cout + co
        return jnp.transpose(w_pt, (0, 2, 3, 1)).reshape(c_in, 4 * c_out)

    p["w1"] = convt_w(pt["w1"])
    p["g1"] = pt["g1"].reshape(1, -1)
    p["beta1"] = pt["beta1"].reshape(1, -1)
    p["w2"] = convt_w(pt["w2"])
    p["g2"] = pt["g2"].reshape(1, -1)
    p["beta2"] = pt["beta2"].reshape(1, -1)
    p["w3"] = convt_w(pt["w3"])
    p["b3"] = jnp.tile(pt["b3"], 4).reshape(1, 12)   # col = (2a+b)*3 + c
    return p


# --------------------------------------------------------------------------
# Pure-JAX reference (PyTorch layout, biases included) for a numeric self-check
# --------------------------------------------------------------------------

def _bn_relu_ref(x, gamma, beta):
    mean = jnp.mean(x, axis=0, keepdims=True)
    var = jnp.mean((x - mean) ** 2, axis=0, keepdims=True)
    return jnp.maximum((x - mean) * lax.rsqrt(var + _BN_EPS) * gamma + beta, 0.0)


def _reference_forward(x, pt, dim):
    n = x.shape[0]
    h = x @ pt["w_lin"].T + pt["b_lin"][None, :]
    h = _bn_relu_ref(h, pt["g_pre"][None, :], pt["beta_pre"][None, :])
    h = h.reshape(n, 4 * dim, 4, 4).transpose(0, 2, 3, 1).reshape(n * 16, 4 * dim)

    def convt(tok, w, b, hw):
        c_in, c_out = w.shape[0], w.shape[1]
        y = tok @ w.reshape(c_in, 4 * c_out) + jnp.repeat(b, 4)[None, :]  # col = co*4 + 2a+b
        y = y.reshape(n, hw, hw, c_out, 2, 2).transpose(0, 1, 4, 2, 5, 3)
        return y.reshape(n, 2 * hw, 2 * hw, c_out).reshape(n * 4 * hw * hw, c_out)

    y = _bn_relu_ref(convt(h, pt["w1"], pt["b1"], 4), pt["g1"][None, :], pt["beta1"][None, :])
    y = _bn_relu_ref(convt(y, pt["w2"], pt["b2"], 8), pt["g2"][None, :], pt["beta2"][None, :])
    y = jnp.tanh(convt(y, pt["w3"], pt["b3"], 16))
    return y.reshape(n, 32, 32, 3).transpose(0, 3, 1, 2)


# --------------------------------------------------------------------------
# main
# --------------------------------------------------------------------------

if __name__ == "__main__":
    DIM = 16   # small DIM for a quick synthetic run
    N = 2

    key = jax.random.PRNGKey(0)
    kx, kp = jax.random.split(key)
    x = jax.random.normal(kx, (N, 128), dtype=jnp.float32)

    pt_params = init_params(kp, DIM)              # PyTorch-layout params
    kparams = prepare_params(pt_params, DIM)      # kernel-layout params (one-time)

    out = generator_forward(x, kparams, dim=DIM)
    out = jax.block_until_ready(out)

    assert out.shape == (N, 3, 32, 32), out.shape
    assert out.dtype == jnp.float32
    assert bool(jnp.all(jnp.isfinite(out)))
    assert bool(jnp.all(jnp.abs(out) <= 1.0))     # tanh range

    ref = _reference_forward(x, pt_params, DIM)
    err = float(jnp.max(jnp.abs(out - ref)))
    assert err < 1e-2, f"mismatch vs pure-JAX reference: {err}"

    print("KERNEL_OK")
</pallas_src>

<mosaic_0001>
module attributes {stable_mosaic.version = 11 : i64} {
  func.func @_preprocess_kernel(%arg0: memref<2x128xf32, #tpu.memory_space<vmem>>, %arg1: memref<128x1024xf32, #tpu.memory_space<vmem>>, %arg2: memref<1x1024xf32, #tpu.memory_space<vmem>>, %arg3: memref<1x1024xf32, #tpu.memory_space<vmem>>, %arg4: memref<2x1024xf32, #tpu.memory_space<vmem>>) attributes {dimension_semantics = [], scalar_prefetch = 0 : i64, scratch_operands = 0 : i64, tpu.core_type = #tpu.core_type<tc>} {
    %c0 = arith.constant 0 : index
    %c0_0 = arith.constant 0 : index
    %0 = vector.load %arg0[%c0, %c0_0] : memref<2x128xf32, #tpu.memory_space<vmem>>, vector<2x128xf32>
    %c0_1 = arith.constant 0 : index
    %c0_2 = arith.constant 0 : index
    %1 = vector.load %arg1[%c0_1, %c0_2] : memref<128x1024xf32, #tpu.memory_space<vmem>>, vector<128x1024xf32>
    %cst = arith.constant dense<0.000000e+00> : vector<2x1024xf32>
    %2 = tpu.matmul %0, %1, %cst {dimension_numbers = #tpu.dot_dimension_numbers<[1], [0], [0], [1], [0, 0, 1, 1], [], []>} : vector<2x128xf32>, vector<128x1024xf32>, vector<2x1024xf32> -> vector<2x1024xf32>
    %c0_3 = arith.constant 0 : index
    %c0_4 = arith.constant 0 : index
    %3 = vector.load %arg2[%c0_3, %c0_4] : memref<1x1024xf32, #tpu.memory_space<vmem>>, vector<1x1024xf32>
    %c0_5 = arith.constant 0 : index
    %c0_6 = arith.constant 0 : index
    %4 = vector.load %arg3[%c0_5, %c0_6] : memref<1x1024xf32, #tpu.memory_space<vmem>>, vector<1x1024xf32>
    %cst_7 = arith.constant dense<0.000000e+00> : vector<1024xf32>
    %5 = vector.multi_reduction <add>, %2, %cst_7 [0] : vector<2x1024xf32> to vector<1024xf32>
    %6 = vector.shape_cast %5 : vector<1024xf32> to vector<1x1024xf32>
    %cst_8 = arith.constant 5.000000e-01 : f32
    %7 = vector.broadcast %cst_8 : f32 to vector<1x1024xf32>
    %8 = arith.mulf %6, %7 : vector<1x1024xf32>
    %9 = arith.mulf %2, %2 : vector<2x1024xf32>
    %cst_9 = arith.constant dense<0.000000e+00> : vector<1024xf32>
    %10 = vector.multi_reduction <add>, %9, %cst_9 [0] : vector<2x1024xf32> to vector<1024xf32>
    %11 = vector.shape_cast %10 : vector<1024xf32> to vector<1x1024xf32>
    %cst_10 = arith.constant 5.000000e-01 : f32
    %12 = vector.broadcast %cst_10 : f32 to vector<1x1024xf32>
    %13 = arith.mulf %11, %12 : vector<1x1024xf32>
    %14 = arith.mulf %8, %8 : vector<1x1024xf32>
    %15 = arith.subf %13, %14 : vector<1x1024xf32>
    %cst_11 = arith.constant 9.99999974E-6 : f32
    %16 = vector.broadcast %cst_11 : f32 to vector<1x1024xf32>
    %17 = arith.addf %15, %16 : vector<1x1024xf32>
    %18 = math.rsqrt %17 : vector<1x1024xf32>
    %19 = arith.mulf %3, %18 : vector<1x1024xf32>
    %20 = arith.mulf %8, %19 : vector<1x1024xf32>
    %21 = arith.subf %4, %20 : vector<1x1024xf32>
    %22 = vector.broadcast %19 : vector<1x1024xf32> to vector<2x1024xf32>
    %23 = arith.mulf %2, %22 : vector<2x1024xf32>
    %24 = vector.broadcast %21 : vector<1x1024xf32> to vector<2x1024xf32>
    %25 = arith.addf %23, %24 : vector<2x1024xf32>
    %cst_12 = arith.constant 0.000000e+00 : f32
    %26 = vector.broadcast %cst_12 : f32 to vector<2x1024xf32>
    %27 = arith.maximumf %25, %26 : vector<2x1024xf32>
    %c0_13 = arith.constant 0 : index
    %c0_14 = arith.constant 0 : index
    %28 = vector.load %arg4[%c0_13, %c0_14] : memref<2x1024xf32, #tpu.memory_space<vmem>>, vector<2x1024xf32>
    tpu.vector_store %arg4[%c0_13, %c0_14], %27 {strides = array<i32>} : memref<2x1024xf32, #tpu.memory_space<vmem>>, vector<2x1024xf32>,
    return
  }
}

module attributes {stable_mosaic.version = 11 : i64} {
  func.func @_decoder_kernel(%arg0: memref<32x64xf32, #tpu.memory_space<vmem>>, %arg1: memref<64x128xf32, #tpu.memory_space<vmem>>, %arg2: memref<1x32xf32, #tpu.memory_space<vmem>>, %arg3: memref<1x32xf32, #tpu.memory_space<vmem>>, %arg4: memref<32x64xf32, #tpu.memory_space<vmem>>, %arg5: memref<1x16xf32, #tpu.memory_space<vmem>>, %arg6: memref<1x16xf32, #tpu.memory_space<vmem>>, %arg7: memref<16x12xf32, #tpu.memory_space<vmem>>, %arg8: memref<1x12xf32, #tpu.memory_space<vmem>>, %arg9: memref<512x12xf32, #tpu.memory_space<vmem>>, %arg10: memref<128x32xf32, #tpu.memory_space<vmem>>, %arg11: memref<512x16xf32, #tpu.memory_space<vmem>>) attributes {dimension_semantics = [], scalar_prefetch = 0 : i64, scratch_operands = 2 : i64, tpu.core_type = #tpu.core_type<tc>} {
    %c0 = arith.constant 0 : index
    %c0_0 = arith.constant 0 : index
    %0 = vector.load %arg0[%c0, %c0_0] : memref<32x64xf32, #tpu.memory_space<vmem>>, vector<32x64xf32>
    %c0_1 = arith.constant 0 : index
    %c0_2 = arith.constant 0 : index
    %1 = vector.load %arg1[%c0_1, %c0_2] : memref<64x128xf32, #tpu.memory_space<vmem>>, vector<64x128xf32>
    %cst = arith.constant dense<0.000000e+00> : vector<32x128xf32>
    %2 = tpu.matmul %0, %1, %cst {dimension_numbers = #tpu.dot_dimension_numbers<[1], [0], [0], [1], [0, 0, 1, 1], [], []>} : vector<32x64xf32>, vector<64x128xf32>, vector<32x128xf32> -> vector<32x128xf32>
    %3 = vector.extract_strided_slice %2 {offsets = [0, 0], sizes = [32, 32], strides = [1, 1]} : vector<32x128xf32> to vector<32x32xf32>
    %c0_3 = arith.constant 0 : index
    %c0_4 = arith.constant 0 : index
    %4 = vector.load %arg10[%c0_3, %c0_4] : memref<128x32xf32, #tpu.memory_space<vmem>>, vector<32x32xf32>
    tpu.vector_store %arg10[%c0_3, %c0_4], %3 {strides = array<i32>} : memref<128x32xf32, #tpu.memory_space<vmem>>, vector<32x32xf32>,
    %5 = vector.extract_strided_slice %2 {offsets = [0, 32], sizes = [32, 32], strides = [1, 1]} : vector<32x128xf32> to vector<32x32xf32>
    %c32 = arith.constant 32 : index
    %c0_5 = arith.constant 0 : index
    %6 = vector.load %arg10[%c32, %c0_5] : memref<128x32xf32, #tpu.memory_space<vmem>>, vector<32x32xf32>
    tpu.vector_store %arg10[%c32, %c0_5], %5 {strides = array<i32>} : memref<128x32xf32, #tpu.memory_space<vmem>>, vector<32x32xf32>,
    %7 = vector.extract_strided_slice %2 {offsets = [0, 64], sizes = [32, 32], strides = [1, 1]} : vector<32x128xf32> to vector<32x32xf32>
    %c64 = arith.constant 64 : index
    %c0_6 = arith.constant 0 : index
    %8 = vector.load %arg10[%c64, %c0_6] : memref<128x32xf32, #tpu.memory_space<vmem>>, vector<32x32xf32>
    tpu.vector_store %arg10[%c64, %c0_6], %7 {strides = array<i32>} : memref<128x32xf32, #tpu.memory_space<vmem>>, vector<32x32xf32>,
    %9 = vector.extract_strided_slice %2 {offsets = [0, 96], sizes = [32, 32], strides = [1, 1]} : vector<32x128xf32> to vector<32x32xf32>
    %c96 = arith.constant 96 : index
    %c0_7 = arith.constant 0 : index
    %10 = vector.load %arg10[%c96, %c0_7] : memref<128x32xf32, #tpu.memory_space<vmem>>, vector<32x32xf32>
    tpu.vector_store %arg10[%c96, %c0_7], %9 {strides = array<i32>} : memref<128x32xf32, #tpu.memory_space<vmem>>, vector<32x32xf32>,
    %c0_8 = arith.constant 0 : index
    %c0_9 = arith.constant 0 : index
    %11 = vector.load %arg10[%c0_8, %c0_9] : memref<128x32xf32, #tpu.memory_space<vmem>>, vector<128x32xf32>
    %c0_10 = arith.constant 0 : index
    %c0_11 = arith.constant 0 : index
    %12 = vector.load %arg2[%c0_10, %c0_11] : memref<1x32xf32, #tpu.memory_space<vmem>>, vector<1x32xf32>
    %c0_12 = arith.constant 0 : index
    %c0_13 = arith.constant 0 : index
    %13 = vector.load %arg3[%c0_12, %c0_13] : memref<1x32xf32, #tpu.memory_space<vmem>>, vector<1x32xf32>
    %cst_14 = arith.constant dense<0.000000e+00> : vector<32xf32>
    %14 = vector.multi_reduction <add>, %11, %cst_14 [0] : vector<128x32xf32> to vector<32xf32>
    %15 = vector.shape_cast %14 : vector<32xf32> to vector<1x32xf32>
    %cst_15 = arith.constant 7.812500e-03 : f32
    %16 = vector.broadcast %cst_15 : f32 to vector<1x32xf32>
    %17 = arith.mulf %15, %16 : vector<1x32xf32>
    %18 = arith.mulf %11, %11 : vector<128x32xf32>
    %cst_16 = arith.constant dense<0.000000e+00> : vector<32xf32>
    %19 = vector.multi_reduction <add>, %18, %cst_16 [0] : vector<128x32xf32> to vector<32xf32>
    %20 = vector.shape_cast %19 : vector<32xf32> to vector<1x32xf32>
    %cst_17 = arith.constant 7.812500e-03 : f32
    %21 = vector.broadcast %cst_17 : f32 to vector<1x32xf32>
    %22 = arith.mulf %20, %21 : vector<1x32xf32>
    %23 = arith.mulf %17, %17 : vector<1x32xf32>
    %24 = arith.subf %22, %23 : vector<1x32xf32>
    %cst_18 = arith.constant 9.99999974E-6 : f32
    %25 = vector.broadcast %cst_18 : f32 to vector<1x32xf32>
    %26 = arith.addf %24, %25 : vector<1x32xf32>
    %27 = math.rsqrt %26 : vector<1x32xf32>
    %28 = arith.mulf %12, %27 : vector<1x32xf32>
    %29 = arith.mulf %17, %28 : vector<1x32xf32>
    %30 = arith.subf %13, %29 : vector<1x32xf32>
    %31 = vector.broadcast %28 : vector<1x32xf32> to vector<128x32xf32>
    %32 = arith.mulf %11, %31 : vector<128x32xf32>
    %33 = vector.broadcast %30 : vector<1x32xf32> to vector<128x32xf32>
    %34 = arith.addf %32, %33 : vector<128x32xf32>
    %cst_19 = arith.constant 0.000000e+00 : f32
    %35 = vector.broadcast %cst_19 : f32 to vector<128x32xf32>
    %36 = arith.maximumf %34, %35 : vector<128x32xf32>
    %c0_20 = arith.constant 0 : index
    %c0_21 = arith.constant 0 : index
    %37 = vector.load %arg4[%c0_20, %c0_21] : memref<32x64xf32, #tpu.memory_space<vmem>>, vector<32x64xf32>
    %cst_22 = arith.constant dense<0.000000e+00> : vector<128x64xf32>
    %38 = tpu.matmul %36, %37, %cst_22 {dimension_numbers = #tpu.dot_dimension_numbers<[1], [0], [0], [1], [0, 0, 1, 1], [], []>} : vector<128x32xf32>, vector<32x64xf32>, vector<128x64xf32> -> vector<128x64xf32>
    %39 = vector.extract_strided_slice %38 {offsets = [0, 0], sizes = [128, 16], strides = [1, 1]} : vector<128x64xf32> to vector<128x16xf32>
    %c0_23 = arith.constant 0 : index
    %c0_24 = arith.constant 0 : index
    %40 = vector.load %arg11[%c0_23, %c0_24] : memref<512x16xf32, #tpu.memory_space<vmem>>, vector<128x16xf32>
    tpu.vector_store %arg11[%c0_23, %c0_24], %39 {strides = array<i32>} : memref<512x16xf32, #tpu.memory_space<vmem>>, vector<128x16xf32>,
    %41 = vector.extract_strided_slice %38 {offsets = [0, 16], sizes = [128, 16], strides = [1, 1]} : vector<128x64xf32> to vector<128x16xf32>
    %c128 = arith.constant 128 : index
    %c0_25 = arith.constant 0 : index
    %42 = vector.load %arg11[%c128, %c0_25] : memref<512x16xf32, #tpu.memory_space<vmem>>, vector<128x16xf32>
    tpu.vector_store %arg11[%c128, %c0_25], %41 {strides = array<i32>} : memref<512x16xf32, #tpu.memory_space<vmem>>, vector<128x16xf32>,
    %43 = vector.extract_strided_slice %38 {offsets = [0, 32], sizes = [128, 16], strides = [1, 1]} : vector<128x64xf32> to vector<128x16xf32>
    %c256 = arith.constant 256 : index
    %c0_26 = arith.constant 0 : index
    %44 = vector.load %arg11[%c256, %c0_26] : memref<512x16xf32, #tpu.memory_space<vmem>>, vector<128x16xf32>
    tpu.vector_store %arg11[%c256, %c0_26], %43 {strides = array<i32>} : memref<512x16xf32, #tpu.memory_space<vmem>>, vector<128x16xf32>,
    %45 = vector.extract_strided_slice %38 {offsets = [0, 48], sizes = [128, 16], strides = [1, 1]} : vector<128x64xf32> to vector<128x16xf32>
    %c384 = arith.constant 384 : index
    %c0_27 = arith.constant 0 : index
    %46 = vector.load %arg11[%c384, %c0_27] : memref<512x16xf32, #tpu.memory_space<vmem>>, vector<128x16xf32>
    tpu.vector_store %arg11[%c384, %c0_27], %45 {strides = array<i32>} : memref<512x16xf32, #tpu.memory_space<vmem>>, vector<128x16xf32>,
    %c0_28 = arith.constant 0 : index
    %c0_29 = arith.constant 0 : index
    %47 = vector.load %arg11[%c0_28, %c0_29] : memref<512x16xf32, #tpu.memory_space<vmem>>, vector<512x16xf32>
    %c0_30 = arith.constant 0 : index
    %c0_31 = arith.constant 0 : index
    %48 = vector.load %arg5[%c0_30, %c0_31] : memref<1x16xf32, #tpu.memory_space<vmem>>, vector<1x16xf32>
    %c0_32 = arith.constant 0 : index
    %c0_33 = arith.constant 0 : index
    %49 = vector.load %arg6[%c0_32, %c0_33] : memref<1x16xf32, #tpu.memory_space<vmem>>, vector<1x16xf32>
    %cst_34 = arith.constant dense<0.000000e+00> : vector<16xf32>
    %50 = vector.multi_reduction <add>, %47, %cst_34 [0] : vector<512x16xf32> to vector<16xf32>
    %51 = vector.shape_cast %50 : vector<16xf32> to vector<1x16xf32>
    %cst_35 = arith.constant 0.001953125 : f32
    %52 = vector.broadcast %cst_35 : f32 to vector<1x16xf32>
    %53 = arith.mulf %51, %52 : vector<1x16xf32>
    %54 = arith.mulf %47, %47 : vector<512x16xf32>
    %cst_36 = arith.constant dense<0.000000e+00> : vector<16xf32>
    %55 = vector.multi_reduction <add>, %54, %cst_36 [0] : vector<512x16xf32> to vector<16xf32>
    %56 = vector.shape_cast %55 : vector<16xf32> to vector<1x16xf32>
    %cst_37 = arith.constant 0.001953125 : f32
    %57 = vector.broadcast %cst_37 : f32 to vector<1x16xf32>
    %58 = arith.mulf %56, %57 : vector<1x16xf32>
    %59 = arith.mulf %53, %53 : vector<1x16xf32>
    %60 = arith.subf %58, %59 : vector<1x16xf32>
    %cst_38 = arith.constant 9.99999974E-6 : f32
    %61 = vector.broadcast %cst_38 : f32 to vector<1x16xf32>
    %62 = arith.addf %60, %61 : vector<1x16xf32>
    %63 = math.rsqrt %62 : vector<1x16xf32>
    %64 = arith.mulf %48, %63 : vector<1x16xf32>
    %65 = arith.mulf %53, %64 : vector<1x16xf32>
    %66 = arith.subf %49, %65 : vector<1x16xf32>
    %67 = vector.broadcast %64 : vector<1x16xf32> to vector<512x16xf32>
    %68 = arith.mulf %47, %67 : vector<512x16xf32>
    %69 = vector.broadcast %66 : vector<1x16xf32> to vector<512x16xf32>
    %70 = arith.addf %68, %69 : vector<512x16xf32>
    %cst_39 = arith.constant 0.000000e+00 : f32
    %71 = vector.broadcast %cst_39 : f32 to vector<512x16xf32>
    %72 = arith.maximumf %70, %71 : vector<512x16xf32>
    %c0_40 = arith.constant 0 : index
    %c0_41 = arith.constant 0 : index
    %73 = vector.load %arg7[%c0_40, %c0_41] : memref<16x12xf32, #tpu.memory_space<vmem>>, vector<16x12xf32>
    %cst_42 = arith.constant dense<0.000000e+00> : vector<512x12xf32>
    %74 = tpu.matmul %72, %73, %cst_42 {dimension_numbers = #tpu.dot_dimension_numbers<[1], [0], [0], [1], [0, 0, 1, 1], [], []>} : vector<512x16xf32>, vector<16x12xf32>, vector<512x12xf32> -> vector<512x12xf32>
    %c0_43 = arith.constant 0 : index
    %c0_44 = arith.constant 0 : index
    %75 = vector.load %arg8[%c0_43, %c0_44] : memref<1x12xf32, #tpu.memory_space<vmem>>, vector<1x12xf32>
    %76 = vector.broadcast %75 : vector<1x12xf32> to vector<512x12xf32>
    %77 = arith.addf %74, %76 : vector<512x12xf32>
    %78 = math.tanh %77 : vector<512x12xf32>
    %c0_45 = arith.constant 0 : index
    %c0_46 = arith.constant 0 : index
    %79 = vector.load %arg9[%c0_45, %c0_46] : memref<512x12xf32, #tpu.memory_space<vmem>>, vector<512x12xf32>
    tpu.vector_store %arg9[%c0_45, %c0_46], %78 {strides = array<i32>} : memref<512x12xf32, #tpu.memory_space<vmem>>, vector<512x12xf32>,
    return
  }
}

</mosaic_0001>

<bundles_post_ra>
// kernel: generator_forward.2
= control target key start
LH: loop header
LB: loop body
LE: loop exit
PB: predicated region body
PF: predicated region fallthrough
CT: control target
= control target key end

     0   :  { %9 = vsyncpa [#allocation3], 0  ;;  %s1227_s0 = inlined_call_operand.hbm [shape: f32[2,128], index: 0, kind: input, shape index: {}]   ;;  %s1228_s1 = inlined_call_operand.hbm [shape: f32[128,1024], index: 1, kind: input, shape index: {}]   ;;  %s1229_s2 = inlined_call_operand.hbm [shape: f32[1,1024], index: 2, kind: input, shape index: {}]   ;;  %s1230_s3 = inlined_call_operand.hbm [shape: f32[1,1024], index: 3, kind: input, shape index: {}]   ;;  %s1231_s4 = inlined_call_operand.vmem [shape: f32[2,1024], index: 4, kind: output, shape index: {}]  }
   0x1   :  { %10 = vsyncpa [#allocation5], 0 }
   0x2   :  { %11 = vsyncpa [#allocation8], 0  ;;  %s1046_s15 = smov [#allocation4]  }
   0x3   :  { %s27_s16 = sshll.u32 %s1046_s15, 4  ;;  %s28_s16 = int_to_ptr.vmem [resolvable:$true] %s27_s16 }
   0x4   :  { %s968_s17 = scalar_lea.vmem %s28_s16, 16384  ;;  %p973_p1 = scmp.lt.s32.totalorder %s28_s16, %s28_s16 }
   0x5   :  { %p969_p0 = scmp.ne.s32.totalorder %s28_s16, %s968_s17  ;;  %p974_p2 = scmp.lt.s32.totalorder %s968_s17, %s968_s17 }
   0x7   :  { %p975_p3 = por %p974_p2, %p973_p1 }
   0x9   :  { %p976_p4 = pnand %p975_p3, %p969_p0 }
   0xb   :  { %979 = shalt.err (!%p976_p4)
}
   0xc   :  { %s1047_s18 = smov 1024   ;;  %s1048_s19 = smov 64  }
   0xd   :  { %33 = dma.hbm_to_vmem [thread:$0]  %s1228_s1, 16384, %s28_s16, [#allocation5], %s1047_s18, %s1047_s18, %s1048_s19  }
   0xe   :  { %s1049_s22 = smov [#allocation2]   ;;  %s1050_s24 = smov [#allocation6]  }
   0xf   :  { %s18_s23 = sshll.u32 %s1049_s22, 4  ;;  %s40_s25 = sshll.u32 %s1050_s24, 4  ;;  %s19_s23 = int_to_ptr.vmem [resolvable:$true] %s18_s23  ;;  %s41_s25 = int_to_ptr.vmem [resolvable:$true] %s40_s25 }
  0x10   :  { %s988_s26 = scalar_lea.vmem %s19_s23, 32  ;;  %p993_p6 = scmp.lt.s32.totalorder %s19_s23, %s19_s23 }
  0x11   :  { %p989_p5 = scmp.ne.s32.totalorder %s19_s23, %s988_s26  ;;  %p994_p7 = scmp.lt.s32.totalorder %s988_s26, %s988_s26 }
  0x13   :  { %p995_p8 = por %p994_p7, %p993_p6 }
  0x15   :  { %p996_p9 = pnand %p995_p8, %p989_p5 }
  0x17   :  { %999 = shalt.err (!%p996_p9)
}
  0x18   :  { %21 = dma.hbm_to_vmem [thread:$0]  %s1227_s0, 32, %s19_s23, [#allocation3]  }
  0x19   :  { %s1008_s29 = scalar_lea.vmem %s41_s25, 128  ;;  %p1013_p11 = scmp.lt.s32.totalorder %s41_s25, %s41_s25 }
  0x1a   :  { %p1009_p10 = scmp.ne.s32.totalorder %s41_s25, %s1008_s29  ;;  %p1014_p12 = scmp.lt.s32.totalorder %s1008_s29, %s1008_s29 }
  0x1c   :  { %p1015_p13 = por %p1014_p12, %p1013_p11 }
  0x1e   :  { %p1016_p0 = pnand %p1015_p13, %p1009_p10 }
  0x20   :  { %1019 = shalt.err (!%p1016_p0)
}
  0x21   :  { %43 = dma.hbm_to_vmem [thread:$0]  %s1229_s2, 128, %s41_s25, [#allocation5]  }
  0x22   :  { %s1051_s5 = smov [#allocation7]  }
  0x23   :  { %s50_s6 = sshll.u32 %s1051_s5, 4  ;;  %s51_s6 = int_to_ptr.vmem [resolvable:$true] %s50_s6 }
  0x24   :  { %s1028_s7 = scalar_lea.vmem %s51_s6, 128  ;;  %p1033_p2 = scmp.lt.s32.totalorder %s51_s6, %s51_s6 }
  0x25   :  { %p1029_p1 = scmp.ne.s32.totalorder %s51_s6, %s1028_s7  ;;  %p1034_p3 = scmp.lt.s32.totalorder %s1028_s7, %s1028_s7 }
  0x27   :  { %p1035_p4 = por %p1034_p3, %p1033_p2 }
  0x29   :  { %p1036_p5 = pnand %p1035_p4, %p1029_p1 }
  0x2b   :  { %1039 = shalt.err (!%p1036_p5)
}
  0x2c   :  { %53 = dma.hbm_to_vmem [thread:$0]  %s1230_s3, 128, %s51_s6, [#allocation8]  }
  0x2d   :  { %1040 = dma.done.wait [#allocation3], 32  }
  0x2e   :  { %1041 = vsyncadd [#allocation3], 4294967264 }
  0x2f   :  { %1042 = dma.done.wait [#allocation5], 16512  }
  0x30   :  { %1043 = vsyncadd [#allocation5], 4294950784 }
  0x31   :  { %1044 = dma.done.wait [#allocation8], 128  }
  0x32   :  { %1045 = vsyncadd [#allocation8], 4294967168  ;;  %v1052_v0 = vmov 0.0   ;;  %v188_v1 = vld [vmem:[#allocation4 + $0x3c8] sm:$0xff]  ;;  %v190_v2 = vld [vmem:[#allocation4 + $0x3d8] sm:$0xff]  ;;  %vm481_vm0 = vcmask 1041408  }
  0x33   :  { %259 = vmatprep.mubr.f32.mxu0 %v1052_v0  ;;  %330 = vmatprep.mubr.f32.mxu1 %v1052_v0  ;;  %v187_v3 = vld [vmem:[#allocation4 + $0x3c0] sm:$0xff]  ;;  %v189_v4 = vld [vmem:[#allocation4 + $0x3d0] sm:$0xff]  ;;  %v180_v5 = vld [vmem:[#allocation4 + $0x388] sm:$0xff] }
  0x34   :  { %195 = vmatprep.subr.mxu0 %v188_v1  ;;  %266 = vmatprep.subr.mxu1 %v190_v2  ;;  %v182_v6 = vld [vmem:[#allocation4 + $0x398] sm:$0xff]  ;;  %v179_v7 = vld [vmem:[#allocation4 + $0x380] sm:$0xff]  ;;  %v181_v8 = vld [vmem:[#allocation4 + $0x390] sm:$0xff] }
  0x35   :  { %196 = vmatpush1.msra.mxu0 %v187_v3  ;;  %267 = vmatpush1.msra.mxu1 %v189_v4  ;;  %v172_v9 = vld [vmem:[#allocation4 + $0x348] sm:$0xff]  ;;  %v174_v10 = vld [vmem:[#allocation4 + $0x358] sm:$0xff]  ;;  %v171_v11 = vld [vmem:[#allocation4 + $0x340] sm:$0xff] }
  0x36   :  { %197 = vmatprep.subr.mxu0 %v180_v5  ;;  %268 = vmatprep.subr.mxu1 %v182_v6  ;;  %v173_v12 = vld [vmem:[#allocation4 + $0x350] sm:$0xff]  ;;  %v164_v13 = vld [vmem:[#allocation4 + $0x308] sm:$0xff]  ;;  %v166_v14 = vld [vmem:[#allocation4 + $0x318] sm:$0xff] }
  0x37   :  { %198 = vmatpush1.msra.mxu0 %v179_v7  ;;  %269 = vmatpush1.msra.mxu1 %v181_v8  ;;  %v163_v15 = vld [vmem:[#allocation4 + $0x300] sm:$0xff]  ;;  %v165_v16 = vld [vmem:[#allocation4 + $0x310] sm:$0xff]  ;;  %v156_v17 = vld [vmem:[#allocation4 + $0x2c8] sm:$0xff] }
  0x38   :  { %199 = vmatprep.subr.mxu0 %v172_v9  ;;  %270 = vmatprep.subr.mxu1 %v174_v10  ;;  %v158_v18 = vld [vmem:[#allocation4 + $0x2d8] sm:$0xff]  ;;  %v155_v19 = vld [vmem:[#allocation4 + $0x2c0] sm:$0xff]  ;;  %v157_v20 = vld [vmem:[#allocation4 + $0x2d0] sm:$0xff] }
  0x39   :  { %200 = vmatpush1.msra.mxu0 %v171_v11  ;;  %271 = vmatpush1.msra.mxu1 %v173_v12  ;;  %v148_v21 = vld [vmem:[#allocation4 + $0x288] sm:$0xff]  ;;  %v150_v22 = vld [vmem:[#allocation4 + $0x298] sm:$0xff]  ;;  %v147_v23 = vld [vmem:[#allocation4 + $0x280] sm:$0xff] }
  0x3a   :  { %201 = vmatprep.subr.mxu0 %v164_v13  ;;  %272 = vmatprep.subr.mxu1 %v166_v14  ;;  %v149_v24 = vld [vmem:[#allocation4 + $0x290] sm:$0xff]  ;;  %v140_v25 = vld [vmem:[#allocation4 + $0x248] sm:$0xff]  ;;  %v142_v26 = vld [vmem:[#allocation4 + $0x258] sm:$0xff] }
  0x3b   :  { %202 = vmatpush1.msra.mxu0 %v163_v15  ;;  %273 = vmatpush1.msra.mxu1 %v165_v16  ;;  %v139_v27 = vld [vmem:[#allocation4 + $0x240] sm:$0xff]  ;;  %v141_v28 = vld [vmem:[#allocation4 + $0x250] sm:$0xff]  ;;  %v132_v29 = vld [vmem:[#allocation4 + $0x208] sm:$0xff] }
  0x3c   :  { %203 = vmatprep.subr.mxu0 %v156_v17  ;;  %274 = vmatprep.subr.mxu1 %v158_v18  ;;  %v134_v30 = vld [vmem:[#allocation4 + $0x218] sm:$0xff]  ;;  %v131_v31 = vld [vmem:[#allocation4 + $0x200] sm:$0xff]  ;;  %v133_v32 = vld [vmem:[#allocation4 + $0x210] sm:$0xff] }
  0x3d   :  { %204 = vmatpush1.msra.mxu0 %v155_v19  ;;  %275 = vmatpush1.msra.mxu1 %v157_v20  ;;  %v124_v33 = vld [vmem:[#allocation4 + $0x1c8] sm:$0xff]  ;;  %v126_v34 = vld [vmem:[#allocation4 + $0x1d8] sm:$0xff]  ;;  %v123_v35 = vld [vmem:[#allocation4 + $0x1c0] sm:$0xff] }
  0x3e   :  { %205 = vmatprep.subr.mxu0 %v148_v21  ;;  %276 = vmatprep.subr.mxu1 %v150_v22  ;;  %v125_v36 = vld [vmem:[#allocation4 + $0x1d0] sm:$0xff]  ;;  %v116_v37 = vld [vmem:[#allocation4 + $0x188] sm:$0xff]  ;;  %v118_v38 = vld [vmem:[#allocation4 + $0x198] sm:$0xff] }
  0x3f   :  { %206 = vmatpush1.msra.mxu0 %v147_v23  ;;  %277 = vmatpush1.msra.mxu1 %v149_v24  ;;  %v115_v39 = vld [vmem:[#allocation4 + $0x180] sm:$0xff]  ;;  %v117_v40 = vld [vmem:[#allocation4 + $0x190] sm:$0xff]  ;;  %v108_v41 = vld [vmem:[#allocation4 + $0x148] sm:$0xff] }
  0x40   :  { %207 = vmatprep.subr.mxu0 %v140_v25  ;;  %278 = vmatprep.subr.mxu1 %v142_v26  ;;  %v110_v42 = vld [vmem:[#allocation4 + $0x158] sm:$0xff]  ;;  %v107_v43 = vld [vmem:[#allocation4 + $0x140] sm:$0xff]  ;;  %v109_v44 = vld [vmem:[#allocation4 + $0x150] sm:$0xff] }
  0x41   :  { %208 = vmatpush1.msra.mxu0 %v139_v27  ;;  %279 = vmatpush1.msra.mxu1 %v141_v28  ;;  %v100_v45 = vld [vmem:[#allocation4 + $0x108] sm:$0xff]  ;;  %v102_v46 = vld [vmem:[#allocation4 + $0x118] sm:$0xff]  ;;  %v99_v47 = vld [vmem:[#allocation4 + $0x100] sm:$0xff] }
  0x42   :  { %209 = vmatprep.subr.mxu0 %v132_v29  ;;  %280 = vmatprep.subr.mxu1 %v134_v30  ;;  %v101_v48 = vld [vmem:[#allocation4 + $0x110] sm:$0xff]  ;;  %v92_v49 = vld [vmem:[#allocation4 + $0xc8] sm:$0xff]  ;;  %v94_v50 = vld [vmem:[#allocation4 + $0xd8] sm:$0xff] }
  0x43   :  { %210 = vmatpush1.msra.mxu0 %v131_v31  ;;  %281 = vmatpush1.msra.mxu1 %v133_v32  ;;  %v91_v51 = vld [vmem:[#allocation4 + $0xc0] sm:$0xff]  ;;  %v93_v52 = vld [vmem:[#allocation4 + $0xd0] sm:$0xff]  ;;  %v84_v53 = vld [vmem:[#allocation4 + $0x88] sm:$0xff] }
  0x44   :  { %211 = vmatprep.subr.mxu0 %v124_v33  ;;  %282 = vmatprep.subr.mxu1 %v126_v34  ;;  %v86_v54 = vld [vmem:[#allocation4 + $0x98] sm:$0xff]  ;;  %v83_v55 = vld [vmem:[#allocation4 + $0x80] sm:$0xff]  ;;  %v85_v56 = vld [vmem:[#allocation4 + $0x90] sm:$0xff] }
  0x45   :  { %212 = vmatpush1.msra.mxu0 %v123_v35  ;;  %283 = vmatpush1.msra.mxu1 %v125_v36  ;;  %v76_v57 = vld [vmem:[#allocation4 + $0x48] sm:$0xff]  ;;  %v78_v58 = vld [vmem:[#allocation4 + $0x58] sm:$0xff]  ;;  %v75_v59 = vld [vmem:[#allocation4 + $0x40] sm:$0xff] }
  0x46   :  { %213 = vmatprep.subr.mxu0 %v116_v37  ;;  %284 = vmatprep.subr.mxu1 %v118_v38  ;;  %v77_v60 = vld [vmem:[#allocation4 + $0x50] sm:$0xff]  ;;  %v68_v61 = vld [vmem:[#allocation4 + $0x8] sm:$0xff]  ;;  %v70_v62 = vld [vmem:[#allocation4 + $0x18] sm:$0xff] }
  0x47   :  { %214 = vmatpush1.msra.mxu0 %v115_v39  ;;  %285 = vmatpush1.msra.mxu1 %v117_v40  ;;  %v67_v63 = vld [vmem:[#allocation4] sm:$0xff]  ;;  %v69_v1 = vld [vmem:[#allocation4 + $0x10] sm:$0xff]  ;;  %v1094_v2 = vld [vmem:[#allocation2] sm:$0x3] }
  0x48   :  { %215 = vmatprep.subr.mxu0 %v108_v41  ;;  %286 = vmatprep.subr.mxu1 %v110_v42  ;;  %v192_v3 = vld [vmem:[#allocation4 + $0x3e8] sm:$0xff]  ;;  %v194_v4 = vld [vmem:[#allocation4 + $0x3f8] sm:$0xff]  ;;  %v191_v5 = vld [vmem:[#allocation4 + $0x3e0] sm:$0xff] }
  0x49   :  { %216 = vmatpush1.msra.mxu0 %v107_v43  ;;  %287 = vmatpush1.msra.mxu1 %v109_v44  ;;  %v193_v6 = vld [vmem:[#allocation4 + $0x3f0] sm:$0xff]  ;;  %v184_v7 = vld [vmem:[#allocation4 + $0x3a8] sm:$0xff]  ;;  %v186_v8 = vld [vmem:[#allocation4 + $0x3b8] sm:$0xff] }
  0x4a   :  { %217 = vmatprep.subr.mxu0 %v100_v45  ;;  %288 = vmatprep.subr.mxu1 %v102_v46  ;;  %v183_v9 = vld [vmem:[#allocation4 + $0x3a0] sm:$0xff]  ;;  %v185_v10 = vld [vmem:[#allocation4 + $0x3b0] sm:$0xff]  ;;  %v176_v11 = vld [vmem:[#allocation4 + $0x368] sm:$0xff] }
  0x4b   :  { %218 = vmatpush1.msra.mxu0 %v99_v47  ;;  %289 = vmatpush1.msra.mxu1 %v101_v48  ;;  %v178_v12 = vld [vmem:[#allocation4 + $0x378] sm:$0xff]  ;;  %v175_v13 = vld [vmem:[#allocation4 + $0x360] sm:$0xff]  ;;  %v177_v14 = vld [vmem:[#allocation4 + $0x370] sm:$0xff] }
  0x4c   :  { %219 = vmatprep.subr.mxu0 %v92_v49  ;;  %290 = vmatprep.subr.mxu1 %v94_v50  ;;  %v168_v15 = vld [vmem:[#allocation4 + $0x328] sm:$0xff]  ;;  %v170_v16 = vld [vmem:[#allocation4 + $0x338] sm:$0xff]  ;;  %v167_v17 = vld [vmem:[#allocation4 + $0x320] sm:$0xff] }
  0x4d   :  { %220 = vmatpush1.msra.mxu0 %v91_v51  ;;  %291 = vmatpush1.msra.mxu1 %v93_v52  ;;  %v169_v18 = vld [vmem:[#allocation4 + $0x330] sm:$0xff]  ;;  %v160_v19 = vld [vmem:[#allocation4 + $0x2e8] sm:$0xff]  ;;  %v162_v20 = vld [vmem:[#allocation4 + $0x2f8] sm:$0xff] }
  0x4e   :  { %221 = vmatprep.subr.mxu0 %v84_v53  ;;  %292 = vmatprep.subr.mxu1 %v86_v54  ;;  %v159_v21 = vld [vmem:[#allocation4 + $0x2e0] sm:$0xff]  ;;  %v161_v22 = vld [vmem:[#allocation4 + $0x2f0] sm:$0xff]  ;;  %v152_v23 = vld [vmem:[#allocation4 + $0x2a8] sm:$0xff] }
  0x4f   :  { %222 = vmatpush1.msra.mxu0 %v83_v55  ;;  %293 = vmatpush1.msra.mxu1 %v85_v56  ;;  %v154_v24 = vld [vmem:[#allocation4 + $0x2b8] sm:$0xff]  ;;  %v151_v25 = vld [vmem:[#allocation4 + $0x2a0] sm:$0xff]  ;;  %v153_v26 = vld [vmem:[#allocation4 + $0x2b0] sm:$0xff] }
  0x50   :  { %223 = vmatprep.subr.mxu0 %v76_v57  ;;  %294 = vmatprep.subr.mxu1 %v78_v58  ;;  %v144_v27 = vld [vmem:[#allocation4 + $0x268] sm:$0xff]  ;;  %v146_v28 = vld [vmem:[#allocation4 + $0x278] sm:$0xff]  ;;  %v143_v29 = vld [vmem:[#allocation4 + $0x260] sm:$0xff] }
  0x51   :  { %224 = vmatpush1.msra.mxu0 %v75_v59  ;;  %295 = vmatpush1.msra.mxu1 %v77_v60  ;;  %v145_v30 = vld [vmem:[#allocation4 + $0x270] sm:$0xff]  ;;  %v136_v31 = vld [vmem:[#allocation4 + $0x228] sm:$0xff]  ;;  %v138_v32 = vld [vmem:[#allocation4 + $0x238] sm:$0xff] }
  0x52   :  { %225 = vmatprep.subr.mxu0 %v68_v61  ;;  %296 = vmatprep.subr.mxu1 %v70_v62  ;;  %v135_v33 = vld [vmem:[#allocation4 + $0x220] sm:$0xff]  ;;  %v137_v34 = vld [vmem:[#allocation4 + $0x230] sm:$0xff]  ;;  %v128_v35 = vld [vmem:[#allocation4 + $0x1e8] sm:$0xff] }
  0x53   :  { %226 = vmatpush1.msra.mxu0 %v67_v63  ;;  %297 = vmatpush1.msra.mxu1 %v69_v1  ;;  %v130_v36 = vld [vmem:[#allocation4 + $0x1f8] sm:$0xff]  ;;  %v127_v37 = vld [vmem:[#allocation4 + $0x1e0] sm:$0xff]  ;;  %v129_v38 = vld [vmem:[#allocation4 + $0x1f0] sm:$0xff] }
  0x54   :  { %260 = vmatmul.mubr.f32.vlgmr.msra.gmra.mxu0 %v1094_v2  ;;  %331 = vmatmul.mubr.f32.vlgmr.msra.gmra.mxu1 %v1094_v2  ;;  %v120_v39 = vld [vmem:[#allocation4 + $0x1a8] sm:$0xff]  ;;  %v122_v40 = vld [vmem:[#allocation4 + $0x1b8] sm:$0xff]  ;;  %v119_v41 = vld [vmem:[#allocation4 + $0x1a0] sm:$0xff] }
  0x55   :  { %337 = vmatprep.subr.mxu0 %v192_v3  ;;  %408 = vmatprep.subr.mxu1 %v194_v4  ;;  %v121_v42 = vld [vmem:[#allocation4 + $0x1b0] sm:$0xff]  ;;  %v112_v43 = vld [vmem:[#allocation4 + $0x168] sm:$0xff]  ;;  %v114_v44 = vld [vmem:[#allocation4 + $0x178] sm:$0xff] }
  0x56   :  { %338 = vmatpush1.msra.mxu0 %v191_v5  ;;  %409 = vmatpush1.msra.mxu1 %v193_v6  ;;  %v111_v45 = vld [vmem:[#allocation4 + $0x160] sm:$0xff]  ;;  %v113_v46 = vld [vmem:[#allocation4 + $0x170] sm:$0xff]  ;;  %v104_v47 = vld [vmem:[#allocation4 + $0x128] sm:$0xff] }
  0x57   :  { %339 = vmatprep.subr.mxu0 %v184_v7  ;;  %410 = vmatprep.subr.mxu1 %v186_v8  ;;  %v106_v48 = vld [vmem:[#allocation4 + $0x138] sm:$0xff]  ;;  %v103_v49 = vld [vmem:[#allocation4 + $0x120] sm:$0xff]  ;;  %v105_v50 = vld [vmem:[#allocation4 + $0x130] sm:$0xff] }
  0x58   :  { %340 = vmatpush1.msra.mxu0 %v183_v9  ;;  %411 = vmatpush1.msra.mxu1 %v185_v10  ;;  %v96_v51 = vld [vmem:[#allocation4 + $0xe8] sm:$0xff]  ;;  %v98_v52 = vld [vmem:[#allocation4 + $0xf8] sm:$0xff]  ;;  %v95_v53 = vld [vmem:[#allocation4 + $0xe0] sm:$0xff] }
  0x59   :  { %341 = vmatprep.subr.mxu0 %v176_v11  ;;  %412 = vmatprep.subr.mxu1 %v178_v12  ;;  %v97_v54 = vld [vmem:[#allocation4 + $0xf0] sm:$0xff]  ;;  %v88_v55 = vld [vmem:[#allocation4 + $0xa8] sm:$0xff]  ;;  %v90_v56 = vld [vmem:[#allocation4 + $0xb8] sm:$0xff] }
  0x5a   :  { %342 = vmatpush1.msra.mxu0 %v175_v13  ;;  %413 = vmatpush1.msra.mxu1 %v177_v14  ;;  %v87_v57 = vld [vmem:[#allocation4 + $0xa0] sm:$0xff]  ;;  %v89_v58 = vld [vmem:[#allocation4 + $0xb0] sm:$0xff]  ;;  %v80_v59 = vld [vmem:[#allocation4 + $0x68] sm:$0xff] }
  0x5b   :  { %343 = vmatprep.subr.mxu0 %v168_v15  ;;  %414 = vmatprep.subr.mxu1 %v170_v16  ;;  %v82_v60 = vld [vmem:[#allocation4 + $0x78] sm:$0xff]  ;;  %v79_v61 = vld [vmem:[#allocation4 + $0x60] sm:$0xff]  ;;  %v81_v62 = vld [vmem:[#allocation4 + $0x70] sm:$0xff] }
  0x5c   :  { %344 = vmatpush1.msra.mxu0 %v167_v17  ;;  %415 = vmatpush1.msra.mxu1 %v169_v18  ;;  %v72_v63 = vld [vmem:[#allocation4 + $0x28] sm:$0xff]  ;;  %v74_v1 = vld [vmem:[#allocation4 + $0x38] sm:$0xff]  ;;  %v71_v3 = vld [vmem:[#allocation4 + $0x20] sm:$0xff] }
  0x5d   :  { %345 = vmatprep.subr.mxu0 %v160_v19  ;;  %416 = vmatprep.subr.mxu1 %v162_v20  ;;  %v73_v4 = vld [vmem:[#allocation4 + $0x30] sm:$0xff] }
  0x5e   :  { %346 = vmatpush1.msra.mxu0 %v159_v21  ;;  %417 = vmatpush1.msra.mxu1 %v161_v22 }
  0x5f   :  { %347 = vmatprep.subr.mxu0 %v152_v23  ;;  %418 = vmatprep.subr.mxu1 %v154_v24 }
  0x60   :  { %348 = vmatpush1.msra.mxu0 %v151_v25  ;;  %419 = vmatpush1.msra.mxu1 %v153_v26 }
  0x61   :  { %349 = vmatprep.subr.mxu0 %v144_v27  ;;  %420 = vmatprep.subr.mxu1 %v146_v28 }
  0x62   :  { %350 = vmatpush1.msra.mxu0 %v143_v29  ;;  %421 = vmatpush1.msra.mxu1 %v145_v30 }
  0x63   :  { %351 = vmatprep.subr.mxu0 %v136_v31  ;;  %422 = vmatprep.subr.mxu1 %v138_v32 }
  0x64   :  { %352 = vmatpush1.msra.mxu0 %v135_v33  ;;  %423 = vmatpush1.msra.mxu1 %v137_v34 }
  0x65   :  { %353 = vmatprep.subr.mxu0 %v128_v35  ;;  %424 = vmatprep.subr.mxu1 %v130_v36 }
  0x66   :  { %354 = vmatpush1.msra.mxu0 %v127_v37  ;;  %425 = vmatpush1.msra.mxu1 %v129_v38 }
  0x67   :  { %355 = vmatprep.subr.mxu0 %v120_v39  ;;  %426 = vmatprep.subr.mxu1 %v122_v40 }
  0x68   :  { %356 = vmatpush1.msra.mxu0 %v119_v41  ;;  %427 = vmatpush1.msra.mxu1 %v121_v42 }
  0x69   :  { %357 = vmatprep.subr.mxu0 %v112_v43  ;;  %428 = vmatprep.subr.mxu1 %v114_v44 }
  0x6a   :  { %358 = vmatpush1.msra.mxu0 %v111_v45  ;;  %429 = vmatpush1.msra.mxu1 %v113_v46 }
  0x6b   :  { %359 = vmatprep.subr.mxu0 %v104_v47  ;;  %430 = vmatprep.subr.mxu1 %v106_v48 }
  0x6c   :  { %360 = vmatpush1.msra.mxu0 %v103_v49  ;;  %431 = vmatpush1.msra.mxu1 %v105_v50 }
  0x6d   :  { %361 = vmatprep.subr.mxu0 %v96_v51  ;;  %432 = vmatprep.subr.mxu1 %v98_v52 }
  0x6e   :  { %362 = vmatpush1.msra.mxu0 %v95_v53  ;;  %433 = vmatpush1.msra.mxu1 %v97_v54 }
  0x6f   :  { %363 = vmatprep.subr.mxu0 %v88_v55  ;;  %434 = vmatprep.subr.mxu1 %v90_v56 }
  0x70   :  { %364 = vmatpush1.msra.mxu0 %v87_v57  ;;  %435 = vmatpush1.msra.mxu1 %v89_v58 }
  0x71   :  { %365 = vmatprep.subr.mxu0 %v80_v59  ;;  %436 = vmatprep.subr.mxu1 %v82_v60 }
  0x72   :  { %366 = vmatpush1.msra.mxu0 %v79_v61  ;;  %437 = vmatpush1.msra.mxu1 %v81_v62 }
  0x73   :  { %367 = vmatprep.subr.mxu0 %v72_v63  ;;  %438 = vmatprep.subr.mxu1 %v74_v1 }
  0x74   :  { %368 = vmatpush1.msra.mxu0 %v71_v3  ;;  %401 = vmatprep.mubr.f32.mxu0 %v1052_v0 }
  0x75   :  { %439 = vmatpush1.msra.mxu1 %v73_v4  ;;  %472 = vmatprep.mubr.f32.mxu1 %v1052_v0 }
  0x76   :  { %402 = vmatmul.mubr.f32.vlgmr.msra.gmra.mxu0 %v1094_v2  ;;  %473 = vmatmul.mubr.f32.vlgmr.msra.gmra.mxu1 %v1094_v2 }
 0x114   :  { %v1102_v5 = vpop.f32.mrf.mxu0  ;;  %v1104_v6 = vpop.f32.mrf.mxu1 }
 0x115   :  { %v482_v7 = vsel %vm481_vm0, %v1102_v5, 0.0  ;;  %v546_v8 = vmul.f32 %v1102_v5, %v1102_v5  ;;  %v496_v0 = vsel %vm481_vm0, %v1104_v6, 0.0  ;;  %v548_v10 = vmul.f32 %v1104_v6, %v1104_v6 }
 0x116   :  { %v1110_v9 = vpop.f32.mrf.mxu0  ;;  %v483_v2 = vrot.slane %v482_v7, 4  ;;  %v497_v13 = vrot.slane %v496_v0, 4  ;;  %v1119_v14 = vpop.f32.mrf.mxu1 }
 0x117   :  { %v489_v11 = vsel %vm481_vm0, %v1110_v9, 0.0  ;;  %v554_v12 = vsel %vm481_vm0, %v546_v8, 0.0  ;;  %v568_v15 = vsel %vm481_vm0, %v548_v10, 0.0  ;;  %v547_v16 = vmul.f32 %v1110_v9, %v1110_v9 }
 0x118   :  { %v490_v17 = vrot.slane %v489_v11, 4  ;;  %v484_v18 = vadd.f32 %v483_v2, %v482_v7  ;;  %v555_v19 = vrot.slane %v554_v12, 4  ;;  %v503_v20 = vsel %vm481_vm0, %v1119_v14, 0.0 }
 0x119   :  { %v498_v21 = vadd.f32 %v497_v13, %v496_v0  ;;  %v569_v22 = vrot.slane %v568_v15, 4  ;;  %v561_v23 = vsel %vm481_vm0, %v547_v16, 0.0  ;;  %v549_v24 = vmul.f32 %v1119_v14, %v1119_v14 }
 0x11a   :  { %v491_v25 = vadd.f32 %v490_v17, %v489_v11  ;;  %v504_v26 = vrot.slane %v503_v20, 4  ;;  %v485_v27 = vrot.slane %v484_v18, 2  ;;  %v556_v28 = vadd.f32 %v555_v19, %v554_v12 }
 0x11b   :  { %v499_v29 = vrot.slane %v498_v21, 2  ;;  %v570_v30 = vadd.f32 %v569_v22, %v568_v15  ;;  %v562_v31 = vrot.slane %v561_v23, 4  ;;  %v575_v32 = vsel %vm481_vm0, %v549_v24, 0.0 }
 0x11c   :  { %v492_v33 = vrot.slane %v491_v25, 2  ;;  %v505_v34 = vadd.f32 %v504_v26, %v503_v20  ;;  %v486_v35 = vadd.f32 %v485_v27, %v484_v18  ;;  %v557_v36 = vrot.slane %v556_v28, 2 }
 0x11d   :  { %v500_v37 = vadd.f32 %v499_v29, %v498_v21  ;;  %v571_v38 = vrot.slane %v570_v30, 2  ;;  %v563_v39 = vadd.f32 %v562_v31, %v561_v23  ;;  %v576_v40 = vrot.slane %v575_v32, 4 }
 0x11e   :  { %v493_v41 = vadd.f32 %v492_v33, %v491_v25  ;;  %v506_v42 = vrot.slane %v505_v34, 2  ;;  %v487_v43 = vrot.slane %v486_v35, 1  ;;  %v558_v44 = vadd.f32 %v557_v36, %v556_v28 }
 0x11f   :  { %v501_v45 = vrot.slane %v500_v37, 1  ;;  %v572_v46 = vadd.f32 %v571_v38, %v570_v30  ;;  %v564_v47 = vrot.slane %v563_v39, 2  ;;  %v577_v48 = vadd.f32 %v576_v40, %v575_v32 }
 0x120   :  { %v494_v49 = vrot.slane %v493_v41, 1  ;;  %v507_v50 = vadd.f32 %v506_v42, %v505_v34  ;;  %v488_v51 = vadd.f32 %v487_v43, %v486_v35  ;;  %v559_v52 = vrot.slane %v558_v44, 1 }
 0x121   :  { %v502_v53 = vadd.f32 %v501_v45, %v500_v37  ;;  %v573_v54 = vrot.slane %v572_v46, 1  ;;  %v565_v55 = vadd.f32 %v564_v47, %v563_v39  ;;  %v578_v56 = vrot.slane %v577_v48, 2 }
 0x122   :  { %v495_v57 = vadd.f32 %v494_v49, %v493_v41  ;;  %v508_v58 = vrot.slane %v507_v50, 1  ;;  %v1130_v59 = vmul.f32 0.5, %v488_v51  ;;  %v560_v60 = vadd.f32 %v559_v52, %v558_v44 }
 0x123   :  { %v1132_v61 = vmul.f32 0.5, %v502_v53  ;;  %v1134_v62 = vadd.f32 %v573_v54, %v572_v46  ;;  %v566_v63 = vrot.slane %v565_v55, 1  ;;  %v579_v1 = vadd.f32 %v578_v56, %v577_v48 }
 0x124   :  { %v1148_v2 = vmul.f32 0.5, %v495_v57  ;;  %v509_v11 = vadd.f32 %v508_v58, %v507_v50  ;;  %v610_v49 = vmul.f32 0.5, %v560_v60  ;;  %v618_v53 = vmul.f32 %v1130_v59, %v1130_v59 }
 0x125   :  { %v580_v25 = vrot.slane %v579_v1, 1  ;;  %v567_v33 = vadd.f32 %v566_v63, %v565_v55 }
 0x126   :  { %v1163_v34 = vmul.f32 0.5, %v509_v11  ;;  %v619_v57 = vmul.f32 %v1148_v2, %v1148_v2 }
 0x127   :  { %v581_v41 = vadd.f32 %v580_v25, %v579_v1  ;;  %v611_v54 = vmul.f32 0.5, %v567_v33  ;;  %v626_v25 = vsub.f32 %v610_v49, %v618_v53 }
 0x136   :  { %v1136_v3 = vpop.f32.mrf.mxu0  ;;  %v1138_v4 = vpop.f32.mrf.mxu1 }
 0x137   :  { %v510_v7 = vsel %vm481_vm0, %v1136_v3, 0.0  ;;  %v550_v8 = vmul.f32 %v1136_v3, %v1136_v3  ;;  %v524_v0 = vsel %vm481_vm0, %v1138_v4, 0.0  ;;  %v552_v10 = vmul.f32 %v1138_v4, %v1138_v4 }
 0x138   :  { %v511_v12 = vrot.slane %v510_v7, 4  ;;  %v525_v13 = vrot.slane %v524_v0, 4  ;;  %v1150_v15 = vpop.f32.mrf.mxu0  ;;  %v1152_v16 = vpop.f32.mrf.mxu1 }
 0x139   :  { %v582_v17 = vsel %vm481_vm0, %v550_v8, 0.0  ;;  %v596_v18 = vsel %vm481_vm0, %v552_v10, 0.0  ;;  %v517_v19 = vsel %vm481_vm0, %v1150_v15, 0.0  ;;  %v551_v20 = vmul.f32 %v1150_v15, %v1150_v15 }
 0x13a   :  { %v512_v21 = vadd.f32 %v511_v12, %v510_v7  ;;  %v583_v22 = vrot.slane %v582_v17, 4  ;;  %v526_v23 = vadd.f32 %v525_v13, %v524_v0  ;;  %v597_v24 = vrot.slane %v596_v18, 4 }
 0x13b   :  { %v518_v26 = vrot.slane %v517_v19, 4  ;;  %v589_v27 = vsel %vm481_vm0, %v551_v20, 0.0  ;;  %v531_v28 = vsel %vm481_vm0, %v1152_v16, 0.0  ;;  %v613_v7 = vmul.f32 0.5, %v581_v41 }
 0x13c   :  { %v513_v29 = vrot.slane %v512_v21, 2  ;;  %v584_v30 = vadd.f32 %v583_v22, %v582_v17  ;;  %v527_v31 = vrot.slane %v526_v23, 2  ;;  %v598_v32 = vadd.f32 %v597_v24, %v596_v18 }
 0x13d   :  { %v519_v35 = vadd.f32 %v518_v26, %v517_v19  ;;  %v590_v36 = vrot.slane %v589_v27, 4  ;;  %v532_v44 = vrot.slane %v531_v28, 4  ;;  %v621_v8 = vmul.f32 %v1163_v34, %v1163_v34 }
 0x13e   :  { %v514_v37 = vadd.f32 %v513_v29, %v512_v21  ;;  %v585_v38 = vrot.slane %v584_v30, 2  ;;  %v528_v39 = vadd.f32 %v527_v31, %v526_v23  ;;  %v599_v40 = vrot.slane %v598_v32, 2 }
 0x13f   :  { %v520_v42 = vrot.slane %v519_v35, 2  ;;  %v591_v43 = vadd.f32 %v590_v36, %v589_v27  ;;  %v533_v52 = vadd.f32 %v532_v44, %v531_v28  ;;  %v553_v13 = vmul.f32 %v1152_v16, %v1152_v16 }
 0x140   :  { %v515_v45 = vrot.slane %v514_v37, 1  ;;  %v586_v46 = vadd.f32 %v585_v38, %v584_v30  ;;  %v529_v47 = vrot.slane %v528_v39, 1  ;;  %v600_v48 = vadd.f32 %v599_v40, %v598_v32 }
 0x141   :  { %v521_v50 = vadd.f32 %v520_v42, %v519_v35  ;;  %v592_v51 = vrot.slane %v591_v43, 2  ;;  %v534_v1 = vrot.slane %v533_v52, 2  ;;  %v612_v17 = vmul.f32 0.5, %v1134_v62 }
 0x142   :  { %v516_v55 = vadd.f32 %v515_v45, %v514_v37  ;;  %v587_v56 = vrot.slane %v586_v46, 1  ;;  %v530_v60 = vadd.f32 %v529_v47, %v528_v39  ;;  %v601_v0 = vrot.slane %v600_v48, 1 }
 0x143   :  { %v522_v58 = vrot.slane %v521_v50, 1  ;;  %v593_v63 = vadd.f32 %v592_v51, %v591_v43  ;;  %v535_v12 = vadd.f32 %v534_v1, %v533_v52  ;;  %v620_v18 = vmul.f32 %v1132_v61, %v1132_v61 }
 0x144   :  { %v1176_v19 = vmul.f32 0.5, %v516_v55  ;;  %v588_v20 = vadd.f32 %v587_v56, %v586_v46  ;;  %v603_v24 = vsel %vm481_vm0, %v553_v13, 0.0  ;;  %v627_v26 = vsub.f32 %v611_v54, %v619_v57 }
 0x145   :  { %v523_v10 = vadd.f32 %v522_v58, %v521_v50  ;;  %v594_v11 = vrot.slane %v593_v63, 1  ;;  %v536_v23 = vrot.slane %v535_v12, 1  ;;  %v629_v27 = vsub.f32 %v613_v7, %v621_v8 }
 0x146   :  { %v604_v28 = vrot.slane %v603_v24, 4  ;;  %v1181_v29 = vmul.f32 0.5, %v530_v60  ;;  %v602_v30 = vadd.f32 %v601_v0, %v600_v48  ;;  %v614_v32 = vmul.f32 0.5, %v588_v20 }
 0x147   :  { %v1178_v21 = vmul.f32 0.5, %v523_v10  ;;  %v595_v22 = vadd.f32 %v594_v11, %v593_v63  ;;  %v622_v33 = vmul.f32 %v1176_v19, %v1176_v19  ;;  %v537_v35 = vadd.f32 %v536_v23, %v535_v12 }
 0x148   :  { %v605_v36 = vadd.f32 %v604_v28, %v603_v24  ;;  %v628_v37 = vsub.f32 %v612_v17, %v620_v18  ;;  %v634_v38 = vadd.f32 1e-05, %v626_v25  ;;  %v635_v41 = vadd.f32 1e-05, %v627_v26 }
 0x149   :  { %v615_v62 = vmul.f32 0.5, %v595_v22  ;;  %v623_v31 = vmul.f32 %v1178_v21, %v1178_v21  ;;  %v616_v42 = vmul.f32 0.5, %v602_v30  ;;  %v624_v43 = vmul.f32 %v1181_v29, %v1181_v29 }
 0x14a   :  { %v606_v40 = vrot.slane %v605_v36, 2  ;;  %v637_v44 = vadd.f32 1e-05, %v629_v27  ;;  %v630_v45 = vsub.f32 %v614_v32, %v622_v33  ;;  %v1189_v46 = vmul.f32 0.5, %v537_v35 }
 0x14b   :  { %v631_v39 = vsub.f32 %v615_v62, %v623_v31  ;;  %v636_v48 = vadd.f32 1e-05, %v628_v37  ;;  %944 = vrsqrt.f32 %v634_v38  ;;  %v632_v51 = vsub.f32 %v616_v42, %v624_v43 }
 0x14c   :  { %v607_v47 = vadd.f32 %v606_v40, %v605_v36  ;;  %946 = vrsqrt.f32 %v635_v41  ;;  %v638_v52 = vadd.f32 1e-05, %v630_v45  ;;  %v625_v54 = vmul.f32 %v1189_v46, %v1189_v46  ;;  %v479_v36 = vld [vmem:[#allocation6] sm:$0xff] }
 0x14d   :  { %v639_v49 = vadd.f32 1e-05, %v631_v39  ;;  %948 = vrsqrt.f32 %v637_v44  ;;  %v640_v56 = vadd.f32 1e-05, %v632_v51  ;;  %v1053_v63 = vmov 1966171168  }
 0x14e   :  { %v608_v50 = vrot.slane %v607_v47, 1  ;;  %950 = vrsqrt.f32 %v636_v48  ;;  %v663_v1 = vunpack.c.l.s4 %v1053_v63  ;;  %v665_v7 = vlaneseq }
 0x14f   :  { %952 = vrsqrt.f32 %v639_v49 }
 0x150   :  { %v609_v53 = vadd.f32 %v608_v50, %v607_v47  ;;  %954 = vrsqrt.f32 %v638_v52  ;;  %v664_v0 = vunpack.c.0.s8 %v663_v1  ;;  %v1193_v10 = vshrl.u32 %v665_v7, 7 }
 0x151   :  { %956 = vrsqrt.f32 %v640_v56 }
 0x152   :  { %v617_v55 = vmul.f32 0.5, %v609_v53  ;;  %v667_v18 = vsub.s32 %v664_v0, %v1193_v10  ;;  %v712_v37 = vsub.s32 0, %v1193_v10  ;;  %v716_v39 = vsub.s32 1, %v1193_v10 }
 0x153   :  { %v720_v40 = vsub.s32 2, %v1193_v10  ;;  %v724_v41 = vsub.s32 3, %v1193_v10  ;;  %v728_v42 = vsub.s32 4, %v1193_v10  ;;  %v732_v43 = vsub.s32 5, %v1193_v10 }
 0x154   :  { %v633_v57 = vsub.f32 %v617_v55, %v625_v54  ;;  %v736_v44 = vsub.s32 6, %v1193_v10  ;;  %v740_v45 = vsub.s32 7, %v1193_v10 }
 0x156   :  { %v641_v58 = vadd.f32 1e-05, %v633_v57 }
 0x158   :  { %958 = vrsqrt.f32 %v641_v58  ;;  %v945_v8 = vpop.eup %944 }
 0x159   :  { %v947_v60 = vpop.eup %946 }
 0x15a   :  { %v949_v11 = vpop.eup %948  ;;  %v658_v17 = vcombine.low %v945_v8, %v947_v60 }
 0x15b   :  { %v951_v12 = vpop.eup %950 }
 0x15c   :  { %v953_v13 = vpop.eup %952  ;;  %v659_v20 = vcombine.low %v951_v12, %v949_v11  ;;  %v668_v25 = vrot.slane %v658_v17, %v667_v18 }
 0x15d   :  { %v955_v22 = vpop.eup %954 }
 0x15e   :  { %v660_v23 = vcombine.low %v955_v22, %v953_v13  ;;  %v957_v24 = vpop.eup %956  ;;  %v675_v26 = vrot.slane %v659_v20, %v667_v18  ;;  %v1054_v20 = vmov 1983009808  }
 0x160   :  { %v682_v28 = vrot.slane %v660_v23, %v667_v18  ;;  %v690_v62 = vcombine.low %v668_v25, %v675_v26 }
 0x162   :  { %v698_v33 = vrot.slane %v690_v62, %v667_v18 }
 0x165   :  { %v959_v27 = vpop.eup %958 }
 0x166   :  { %v661_v30 = vcombine.low %v957_v24, %v959_v27 }
 0x168   :  { %v689_v31 = vrot.slane %v661_v30, %v667_v18 }
 0x16a   :  { %v691_v32 = vcombine.low %v682_v28, %v689_v31 }
 0x16c   :  { %v705_v35 = vrot.slane %v691_v32, %v667_v18 }
 0x16e   :  { %v706_v38 = vcombine.low %v698_v33, %v705_v35 }
 0x170   :  { %v708_v47 = vmul.f32 %v706_v38, %v479_v36 }
 0x172   :  { %v713_v48 = vrot.slane %v708_v47, %v712_v37  ;;  %v717_v49 = vrot.slane %v708_v47, %v716_v39  ;;  %v721_v50 = vrot.slane %v708_v47, %v720_v40  ;;  %v725_v51 = vrot.slane %v708_v47, %v724_v41 }
 0x173   :  { %v729_v52 = vrot.slane %v708_v47, %v728_v42  ;;  %v733_v53 = vrot.slane %v708_v47, %v732_v43  ;;  %v737_v54 = vrot.slane %v708_v47, %v736_v44  ;;  %v741_v55 = vrot.slane %v708_v47, %v740_v45 }
 0x174   :  { %v750_v56 = vmul.f32 %v713_v48, %v1130_v59  ;;  %v751_v57 = vmul.f32 %v717_v49, %v1148_v2  ;;  %v752_v58 = vmul.f32 %v721_v50, %v1132_v61  ;;  %v753_v63 = vmul.f32 %v725_v51, %v1163_v34 }
 0x175   :  { %v754_v1 = vmul.f32 %v729_v52, %v1176_v19  ;;  %v755_v7 = vmul.f32 %v733_v53, %v1178_v21  ;;  %v756_v8 = vmul.f32 %v737_v54, %v1181_v29  ;;  %v757_v60 = vmul.f32 %v741_v55, %v1189_v46  ;;  %v480_v21 = vld [vmem:[#allocation7] sm:$0xff] }
 0x176   :  { %v766_v0 = vcombine.low %v750_v56, %v751_v57  ;;  %v767_v11 = vcombine.low %v752_v58, %v753_v63  ;;  %v893_v2 = vunpack.c.l.s4 %v1054_v20  ;;  %v817_v29 = vmul.f32 %v713_v48, %v1102_v5 }
 0x177   :  { %v768_v12 = vcombine.low %v754_v1, %v755_v7  ;;  %v769_v13 = vcombine.low %v756_v8, %v757_v60  ;;  %v818_v28 = vmul.f32 %v717_v49, %v1110_v9  ;;  %v819_v30 = vmul.f32 %v721_v50, %v1104_v6 }
 0x178   :  { %v776_v17 = vrot.slane %v766_v0, %v667_v18  ;;  %v783_v59 = vrot.slane %v767_v11, %v667_v18  ;;  %v894_v19 = vunpack.c.0.s8 %v893_v2  ;;  %v820_v62 = vmul.f32 %v725_v51, %v1119_v14 }
 0x179   :  { %v790_v22 = vrot.slane %v768_v12, %v667_v18  ;;  %v797_v61 = vrot.slane %v769_v13, %v667_v18  ;;  %v821_v31 = vmul.f32 %v729_v52, %v1136_v3  ;;  %v822_v32 = vmul.f32 %v733_v53, %v1150_v15 }
 0x17a   :  { %v798_v23 = vcombine.low %v776_v17, %v783_v59  ;;  %v897_v46 = vsub.s32 %v894_v19, %v1193_v10  ;;  %v823_v33 = vmul.f32 %v737_v54, %v1138_v4 }
 0x17b   :  { %v799_v34 = vcombine.low %v790_v22, %v797_v61 }
 0x17c   :  { %v806_v24 = vrot.slane %v798_v23, %v667_v18 }
 0x17d   :  { %v813_v25 = vrot.slane %v799_v34, %v667_v18  ;;  %v824_v18 = vmul.f32 %v741_v55, %v1152_v16 }
 0x17f   :  { %v814_v26 = vcombine.low %v806_v24, %v813_v25 }
 0x181   :  { %v816_v27 = vsub.f32 %v480_v21, %v814_v26 }
 0x183   :  { %v829_v35 = vrot.slane %v816_v27, %v712_v37  ;;  %v833_v36 = vrot.slane %v816_v27, %v716_v39  ;;  %v837_v5 = vrot.slane %v816_v27, %v720_v40  ;;  %v841_v38 = vrot.slane %v816_v27, %v724_v41 }
 0x184   :  { %v845_v10 = vrot.slane %v816_v27, %v728_v42  ;;  %v849_v47 = vrot.slane %v816_v27, %v732_v43  ;;  %v853_v48 = vrot.slane %v816_v27, %v736_v44  ;;  %v857_v9 = vrot.slane %v816_v27, %v740_v45 }
 0x185   :  { %v866_v49 = vadd.f32 %v829_v35, %v817_v29  ;;  %v867_v6 = vadd.f32 %v833_v36, %v818_v28  ;;  %v868_v50 = vadd.f32 %v837_v5, %v819_v30  ;;  %v869_v14 = vadd.f32 %v841_v38, %v820_v62 }
 0x186   :  { %v870_v51 = vadd.f32 %v845_v10, %v821_v31  ;;  %v871_v3 = vadd.f32 %v849_v47, %v822_v32  ;;  %v872_v52 = vadd.f32 %v853_v48, %v823_v33  ;;  %v873_v15 = vadd.f32 %v857_v9, %v824_v18 }
 0x187   :  { %v874_v53 = vmax.f32 %v866_v49, 0.0  ;;  %v875_v4 = vmax.f32 %v867_v6, 0.0  ;;  %v876_v54 = vmax.f32 %v868_v50, 0.0  ;;  %v877_v16 = vmax.f32 %v869_v14, 0.0 }
 0x188   :  { %v878_v37 = vmax.f32 %v870_v51, 0.0  ;;  %v879_v39 = vmax.f32 %v871_v3, 0.0  ;;  %v880_v40 = vmax.f32 %v872_v52, 0.0  ;;  %v881_v41 = vmax.f32 %v873_v15, 0.0 }
 0x189   :  { %v890_v42 = vcombine.low %v874_v53, %v875_v4  ;;  %v891_v43 = vcombine.low %v876_v54, %v877_v16 }
 0x18a   :  { %v907_v44 = vcombine.low %v878_v37, %v879_v39  ;;  %v908_v45 = vcombine.low %v880_v40, %v881_v41 }
 0x18b   :  { %v898_v55 = vrot.slane %v890_v42, %v897_v46  ;;  %v905_v56 = vrot.slane %v891_v43, %v897_v46 }
 0x18c   :  { %v915_v57 = vrot.slane %v907_v44, %v897_v46  ;;  %v922_v58 = vrot.slane %v908_v45, %v897_v46 }
 0x18d   :  { %v906_v63 = vcombine.low %v898_v55, %v905_v56 }
 0x18e   :  { %v923_v1 = vcombine.low %v915_v57, %v922_v58 }
 0x18f   :  { %926 = vst [vmem:[%s1231_s4] sm:$0xff] %v906_v63 }
 0x190   :  { %927 = vst [vmem:[%s1231_s4 + $0x8] sm:$0xff] %v923_v1 }
 0x191   :  { %932 = vsyncpa [#allocation3], 1 }
 0x192   :  { %933 = vsyncpa [#allocation5], 1 }
 0x193   :  { %934 = vsyncpa [#allocation8], 1 }

// kernel: generator_forward.3
= control target key start
LH: loop header
LB: loop body
LE: loop exit
PB: predicated region body
PF: predicated region fallthrough
CT: control target
= control target key end

     0   :  { %14 = vsyncpa [#allocation5], 0  ;;  %s4254_s0 = inlined_call_operand.vmem [shape: f32[32,64], index: 0, kind: input, shape index: {}]   ;;  %s4255_s1 = inlined_call_operand.hbm [shape: f32[64,128], index: 1, kind: input, shape index: {}]   ;;  %s4256_s2 = inlined_call_operand.hbm [shape: f32[1,32], index: 2, kind: input, shape index: {}]   ;;  %s4257_s3 = inlined_call_operand.hbm [shape: f32[1,32], index: 3, kind: input, shape index: {}]   ;;  %s4258_s4 = inlined_call_operand.hbm [shape: f32[32,64], index: 4, kind: input, shape index: {}]   ;;  %s4259_s5 = inlined_call_operand.hbm [shape: f32[1,16], index: 5, kind: input, shape index: {}]   ;;  %s4260_s6 = inlined_call_operand.hbm [shape: f32[1,16], index: 6, kind: input, shape index: {}]   ;;  %s4261_s7 = inlined_call_operand.hbm [shape: f32[16,12], index: 7, kind: input, shape index: {}]   ;;  %s4262_s8 = inlined_call_operand.hbm [shape: f32[1,12], index: 8, kind: input, shape index: {}]   ;;  %s4263_s9 = inlined_call_operand.vmem [shape: f32[512,12], index: 9, kind: output, shape index: {}]  }
   0x1   :  { %15 = vsyncpa [#allocation7], 0 }
   0x2   :  { %16 = vsyncpa [#allocation10], 0 }
   0x3   :  { %17 = vsyncpa [#allocation13], 0 }
   0x4   :  { %18 = vsyncpa [#allocation16], 0  ;;  %s2921_s30 = smov [#allocation6]  }
   0x5   :  { %s39_s10 = sshll.u32 %s2921_s30, 4  ;;  %s40_s10 = int_to_ptr.vmem [resolvable:$true] %s39_s10 }
   0x6   :  { %s2759_s11 = scalar_lea.vmem %s40_s10, 16  ;;  %s2763_s12 = scalar_lea.vmem %s40_s10, 32 }
   0x7   :  { %p2760_p0 = scmp.ne.s32.totalorder %s40_s10, %s2759_s11  ;;  %p2764_p1 = scmp.lt.s32.totalorder %s40_s10, %s40_s10 }
   0x8   :  { %p2765_p2 = scmp.lt.s32.totalorder %s2763_s12, %s2759_s11 }
   0xa   :  { %p2766_p3 = por %p2765_p2, %p2764_p1 }
   0xc   :  { %p2767_p4 = pnand %p2766_p3, %p2760_p0 }
   0xe   :  { %2770 = shalt.err (!%p2767_p4)
}
   0xf   :  { %42 = dma.hbm_to_vmem [thread:$0]  %s4256_s2, 16, %s40_s10, [#allocation7]  }
  0x10   :  { %s2922_s15 = smov [#allocation9]   ;;  %s2923_s17 = smov [#allocation12]  }
  0x11   :  { %s58_s16 = sshll.u32 %s2922_s15, 4  ;;  %s81_s18 = sshll.u32 %s2923_s17, 4  ;;  %s59_s16 = int_to_ptr.vmem [resolvable:$true] %s58_s16  ;;  %s82_s18 = int_to_ptr.vmem [resolvable:$true] %s81_s18 }
  0x12   :  { %s2779_s19 = scalar_lea.vmem %s59_s16, 512  ;;  %p2784_p6 = scmp.lt.s32.totalorder %s59_s16, %s59_s16 }
  0x13   :  { %p2780_p5 = scmp.ne.s32.totalorder %s59_s16, %s2779_s19  ;;  %p2785_p7 = scmp.lt.s32.totalorder %s2779_s19, %s2779_s19 }
  0x15   :  { %p2786_p8 = por %p2785_p7, %p2784_p6 }
  0x17   :  { %p2787_p9 = pnand %p2786_p8, %p2780_p5 }
  0x19   :  { %2790 = shalt.err (!%p2787_p9)
}
  0x1a   :  { %s2924_s20 = smov 128   ;;  %s2925_s21 = smov 8  }
  0x1b   :  { %64 = dma.hbm_to_vmem [thread:$0]  %s4258_s4, 512, %s59_s16, [#allocation10], %s2924_s20, %s2924_s20, %s2925_s21  }
  0x1c   :  { %s2799_s2 = scalar_lea.vmem %s82_s18, 16  ;;  %s2803_s24 = scalar_lea.vmem %s82_s18, 32 }
  0x1d   :  { %p2800_p10 = scmp.ne.s32.totalorder %s82_s18, %s2799_s2  ;;  %p2804_p11 = scmp.lt.s32.totalorder %s82_s18, %s82_s18 }
  0x1e   :  { %p2805_p12 = scmp.lt.s32.totalorder %s2803_s24, %s2799_s2 }
  0x20   :  { %p2806_p13 = por %p2805_p12, %p2804_p11 }
  0x22   :  { %p2807_p0 = pnand %p2806_p13, %p2800_p10 }
  0x24   :  { %2810 = shalt.err (!%p2807_p0)
}
  0x25   :  { %84 = dma.hbm_to_vmem [thread:$0]  %s4260_s6, 16, %s82_s18, [#allocation13]  }
  0x26   :  { %s2926_s27 = smov [#allocation4]   ;;  %s2927_s29 = smov [#allocation8]  }
  0x27   :  { %s26_s28 = sshll.u32 %s2926_s27, 4  ;;  %s49_s30 = sshll.u32 %s2927_s29, 4  ;;  %s27_s28 = int_to_ptr.vmem [resolvable:$true] %s26_s28  ;;  %s50_s30 = int_to_ptr.vmem [resolvable:$true] %s49_s30 }
  0x28   :  { %s2819_s10 = scalar_lea.vmem %s27_s28, 1024  ;;  %p2824_p2 = scmp.lt.s32.totalorder %s27_s28, %s27_s28 }
  0x29   :  { %p2820_p1 = scmp.ne.s32.totalorder %s27_s28, %s2819_s10  ;;  %p2825_p3 = scmp.lt.s32.totalorder %s2819_s10, %s2819_s10 }
  0x2b   :  { %p2826_p4 = por %p2825_p3, %p2824_p2 }
  0x2d   :  { %p2827_p5 = pnand %p2826_p4, %p2820_p1 }
  0x2f   :  { %2830 = shalt.err (!%p2827_p5)
}
  0x30   :  { %32 = dma.hbm_to_vmem [thread:$0]  %s4255_s1, 1024, %s27_s28, [#allocation5], %s2924_s20, %s2924_s20, %s2925_s21  }
  0x31   :  { %s2839_s6 = scalar_lea.vmem %s50_s30, 16  ;;  %s2843_s12 = scalar_lea.vmem %s50_s30, 32 }
  0x32   :  { %p2840_p6 = scmp.ne.s32.totalorder %s50_s30, %s2839_s6  ;;  %p2844_p7 = scmp.lt.s32.totalorder %s50_s30, %s50_s30 }
  0x33   :  { %p2845_p8 = scmp.lt.s32.totalorder %s2843_s12, %s2839_s6 }
  0x35   :  { %p2846_p9 = por %p2845_p8, %p2844_p7 }
  0x37   :  { %p2847_p10 = pnand %p2846_p9, %p2840_p6 }
  0x39   :  { %2850 = shalt.err (!%p2847_p10)
}
  0x3a   :  { %52 = dma.hbm_to_vmem [thread:$0]  %s4257_s3, 16, %s50_s30, [#allocation7]  }
  0x3b   :  { %s2928_s15 = smov [#allocation11]   ;;  %s2929_s17 = smov [#allocation14]  }
  0x3c   :  { %s71_s16 = sshll.u32 %s2928_s15, 4  ;;  %s90_s18 = sshll.u32 %s2929_s17, 4  ;;  %s72_s16 = int_to_ptr.vmem [resolvable:$true] %s71_s16  ;;  %s91_s18 = int_to_ptr.vmem [resolvable:$true] %s90_s18 }
  0x3d   :  { %s2859_s19 = scalar_lea.vmem %s72_s16, 16  ;;  %s2863_s1 = scalar_lea.vmem %s72_s16, 32 }
  0x3e   :  { %p2860_p11 = scmp.ne.s32.totalorder %s72_s16, %s2859_s19  ;;  %p2864_p12 = scmp.lt.s32.totalorder %s72_s16, %s72_s16 }
  0x3f   :  { %p2865_p13 = scmp.lt.s32.totalorder %s2863_s1, %s2859_s19 }
  0x41   :  { %p2866_p0 = por %p2865_p13, %p2864_p12 }
  0x43   :  { %p2867_p1 = pnand %p2866_p0, %p2860_p11 }
  0x45   :  { %2870 = shalt.err (!%p2867_p1)
}
  0x46   :  { %74 = dma.hbm_to_vmem [thread:$0]  %s4259_s5, 16, %s72_s16, [#allocation10]  }
  0x47   :  { %s2879_s2 = scalar_lea.vmem %s91_s18, 256  ;;  %p2884_p3 = scmp.lt.s32.totalorder %s91_s18, %s91_s18 }
  0x48   :  { %p2880_p2 = scmp.ne.s32.totalorder %s91_s18, %s2879_s2  ;;  %p2885_p4 = scmp.lt.s32.totalorder %s2879_s2, %s2879_s2 }
  0x4a   :  { %p2886_p5 = por %p2885_p4, %p2884_p3 }
  0x4c   :  { %p2887_p6 = pnand %p2886_p5, %p2880_p2 }
  0x4e   :  { %2890 = shalt.err (!%p2887_p6)
}
  0x4f   :  { %96 = dma.hbm_to_vmem [thread:$0]  %s4261_s7, 256, %s91_s18, [#allocation13], %s2924_s20, %s2924_s20, %s2925_s21  }
  0x50   :  { %s2930_s25 = smov [#allocation15]  }
  0x51   :  { %s103_s26 = sshll.u32 %s2930_s25, 4  ;;  %s104_s26 = int_to_ptr.vmem [resolvable:$true] %s103_s26 }
  0x52   :  { %s2899_s27 = scalar_lea.vmem %s104_s26, 16  ;;  %s2903_s5 = scalar_lea.vmem %s104_s26, 32 }
  0x53   :  { %p2900_p7 = scmp.ne.s32.totalorder %s104_s26, %s2899_s27  ;;  %p2904_p8 = scmp.lt.s32.totalorder %s104_s26, %s104_s26 }
  0x54   :  { %p2905_p9 = scmp.lt.s32.totalorder %s2903_s5, %s2899_s27 }
  0x56   :  { %p2906_p10 = por %p2905_p9, %p2904_p8 }
  0x58   :  { %p2907_p11 = pnand %p2906_p10, %p2900_p7 }
  0x5a   :  { %2910 = shalt.err (!%p2907_p11)
}
  0x5b   :  { %106 = dma.hbm_to_vmem [thread:$0]  %s4262_s8, 16, %s104_s26, [#allocation16]  }
  0x5c   :  { %2911 = dma.done.wait [#allocation5], 1024  }
  0x5d   :  { %2912 = vsyncadd [#allocation5], 4294966272 }
  0x5e   :  { %2913 = dma.done.wait [#allocation7], 32  }
  0x5f   :  { %2914 = vsyncadd [#allocation7], 4294967264 }
  0x60   :  { %2915 = dma.done.wait [#allocation10], 528  }
  0x61   :  { %2916 = vsyncadd [#allocation10], 4294966768 }
  0x62   :  { %2917 = dma.done.wait [#allocation13], 272  }
  0x63   :  { %2918 = vsyncadd [#allocation13], 4294967024 }
  0x64   :  { %2919 = dma.done.wait [#allocation16], 16  }
  0x65   :  { %2920 = vsyncadd [#allocation16], 4294967280  ;;  %v142_v0 = vld [vmem:[#allocation4 + $0x38] sm:$0xff]  ;;  %v141_v1 = vld [vmem:[#allocation4 + $0x30] sm:$0xff]  ;;  %vm143_vm0 = vcmask 523264   ;;  %vm241_vm1 = vcmask 261120  }
  0x66   :  { %2413 = vmatprep.subr.mxu0 %v142_v0  ;;  %v140_v2 = vld [vmem:[#allocation4 + $0x28] sm:$0xff]  ;;  %v131_v3 = vld [vmem:[%s4254_s0] sm:$0xff]  ;;  %v138_v5 = vld [vmem:[#allocation4 + $0x18] sm:$0xff]  ;;  %s2931_s6 = smov 96   ;;  %s2933_s12 = smov 32   ;;  %vm672_vm2 = vcmask 130048  }
  0x67   :  { %2414 = vmatpush3.msra.mxu0 %v142_v0  ;;  %2429 = vmatprep.mubr.msk.f32.mxu0 %vm143_vm0, %v131_v3  ;;  %v139_v4 = vld [vmem:[#allocation4 + $0x20] sm:$0xff]  ;;  %v137_v6 = vld [vmem:[#allocation4 + $0x10] sm:$0xff]  ;;  %v136_v7 = vld [vmem:[#allocation4 + $0x8] sm:$0xff]  ;;  %s2934_s13 = smov 112   ;;  %s2935_s14 = smov 80   ;;  %vm2156_vm3 = vcmask 97280  }
  0x68   :  { %2415 = vmatprep.subr.mxu0 %v141_v1  ;;  %v135_v8 = vld [vmem:[#allocation4] sm:$0xff]  ;;  %v132_v9 = vld [vmem:[%s4254_s0 + $0x8] sm:$0xff]  ;;  %v133_v10 = vld [vmem:[%s4254_s0 + $0x10] sm:$0xff] }
  0x69   :  { %2416 = vmatpush3.msra.mxu0 %v141_v1  ;;  %v134_v11 = vld [vmem:[%s4254_s0 + $0x18] sm:$0xff]  ;;  %s2932_s0 = smov 64   ;;  %v476_v18 = vld [vmem:[#allocation9 + $0x8] sm:$0xff]  ;;  %v475_v19 = vld [vmem:[#allocation9] sm:$0xff] }
  0x6a   :  { %2417 = vmatprep.subr.mxu0 %v140_v2  ;;  %v478_v16 = vld [vmem:[#allocation9 + $0x18] sm:$0xff]  ;;  %v477_v17 = vld [vmem:[#allocation9 + $0x10] sm:$0xff] }
  0x6b   :  { %2418 = vmatpush3.msra.mxu0 %v140_v2  ;;  %2435 = vmatprep.subr.mxu1 %v478_v16 }
  0x6c   :  { %2419 = vmatprep.subr.mxu0 %v139_v4  ;;  %2436 = vmatpush3.msra.mxu1 %v478_v16 }
  0x6d   :  { %2420 = vmatpush3.msra.mxu0 %v139_v4  ;;  %2437 = vmatprep.subr.mxu1 %v477_v17 }
  0x6e   :  { %2421 = vmatprep.subr.mxu0 %v138_v5  ;;  %2438 = vmatpush3.msra.mxu1 %v477_v17 }
  0x6f   :  { %2422 = vmatpush3.msra.mxu0 %v138_v5  ;;  %2439 = vmatprep.subr.mxu1 %v476_v18 }
  0x70   :  { %2423 = vmatprep.subr.mxu0 %v137_v6  ;;  %2440 = vmatpush3.msra.mxu1 %v476_v18 }
  0x71   :  { %2424 = vmatpush3.msra.mxu0 %v137_v6  ;;  %2441 = vmatprep.subr.mxu1 %v475_v19 }
  0x72   :  { %2425 = vmatprep.subr.mxu0 %v136_v7  ;;  %2442 = vmatpush3.msra.mxu1 %v475_v19 }
  0x73   :  { %2426 = vmatpush3.msra.mxu0 %v136_v7 }
  0x74   :  { %2427 = vmatprep.subr.mxu0 %v135_v8 }
  0x75   :  { %2428 = vmatpush3.msra.mxu0 %v135_v8 }
  0x76   :  { %2430 = vmatmul.mubr.msk.f32.vlgmr.msra.gmra.mxu0 %vm143_vm0, %v132_v9 }
  0x77   :  { %2432 = vmatprep.mubr.msk.f32.mxu0 %vm143_vm0, %v133_v10 }
  0x7a   :  { %2433 = vmatmul.mubr.msk.f32.gmra.mxu0 %vm143_vm0, %v134_v11 }
 0x136   :  { %v2431_v12 = vpop.f32.mrf.mxu0 }
 0x137   :  { %243 = vst.msk [vmem:[#allocation2 + $0x8] sm:$0xff] %vm241_vm1, %v2431_v12 }
 0x138   :  { %v222_v13 = vpop.f32.mrf.mxu0 }
 0x139   :  { %242 = vst.msk [vmem:[#allocation2] sm:$0xff] %vm241_vm1, %v222_v13  ;;  %250 = vrot.lane.b32.xlu0 %v222_v13, %s2931_s6 }
 0x13a   :  { %v2434_v14 = vpop.f32.mrf.mxu0 }
 0x13b   :  { %245 = vst.msk [vmem:[#allocation2 + $0x18] sm:$0xff] %vm241_vm1, %v2434_v14 }
 0x13c   :  { %v232_v15 = vpop.f32.mrf.mxu0 }
 0x13d   :  { %244 = vst.msk [vmem:[#allocation2 + $0x10] sm:$0xff] %vm241_vm1, %v232_v15  ;;  %252 = vrot.lane.b32.xlu0 %v2431_v12, %s2931_s6  ;;  %254 = vrot.lane.b32.xlu1 %v232_v15, %s2931_s6 }
 0x13e   :  { %v3045_v21 = vld [vmem:[#allocation2 + $0x8] sm:$0xff] }
 0x13f   :  { %v355_v26 = vmul.f32 %v3045_v21, %v3045_v21  ;;  %v317_v28 = vsel %vm241_vm1, %v3045_v21, 0.0 }
 0x140   :  { %v3043_v20 = vld [vmem:[#allocation2] sm:$0xff] }
 0x141   :  { %266 = vrot.lane.b32.xlu0 %v222_v13, %s2932_s0  ;;  %256 = vrot.lane.b32.xlu1 %v2434_v14, %s2931_s6  ;;  %v354_v23 = vmul.f32 %v3043_v20, %v3043_v20  ;;  %v316_v25 = vsel %vm241_vm1, %v3043_v20, 0.0  ;;  %v371_v35 = vsel %vm241_vm1, %v355_v26, 0.0 }
 0x142   :  { %v3063_v33 = vld [vmem:[#allocation2 + $0x18] sm:$0xff]  ;;  %v318_v34 = vadd.f32 %v317_v28, %v316_v25 }
 0x143   :  { %v370_v30 = vsel %vm241_vm1, %v354_v23, 0.0  ;;  %v357_v39 = vmul.f32 %v3063_v33, %v3063_v33  ;;  %v321_v44 = vsel %vm241_vm1, %v3063_v33, 0.0 }
 0x144   :  { %v3047_v22 = vld [vmem:[#allocation2 + $0x10] sm:$0xff]  ;;  %v372_v38 = vadd.f32 %v371_v35, %v370_v30 }
 0x145   :  { %270 = vrot.lane.b32.xlu0 %v232_v15, %s2932_s0  ;;  %268 = vrot.lane.b32.xlu1 %v2431_v12, %s2932_s0  ;;  %v356_v27 = vmul.f32 %v3047_v22, %v3047_v22  ;;  %v319_v29 = vsel %vm241_vm1, %v3047_v22, 0.0  ;;  %v375_v48 = vsel %vm241_vm1, %v357_v39, 0.0 }
 0x146   :  { %v320_v37 = vadd.f32 %v319_v29, %v318_v34 }
 0x147   :  { %v373_v36 = vsel %vm241_vm1, %v356_v27, 0.0 }
 0x148   :  { %v374_v43 = vadd.f32 %v373_v36, %v372_v38  ;;  %v322_v47 = vadd.f32 %v321_v44, %v320_v37 }
 0x149   :  { %282 = vrot.lane.b32.xlu0 %v222_v13, %s2933_s12  ;;  %272 = vrot.lane.b32.xlu1 %v2434_v14, %s2932_s0 }
 0x14a   :  { %v376_v55 = vadd.f32 %v375_v48, %v374_v43 }
 0x14d   :  { %286 = vrot.lane.b32.xlu0 %v232_v15, %s2933_s12  ;;  %284 = vrot.lane.b32.xlu1 %v2431_v12, %s2933_s12 }
 0x151   :  { %288 = vrot.lane.b32.xlu1 %v2434_v14, %s2933_s12 }
 0x1ab   :  { %v251_v24 = vpop.permute.xlu0 %250 }
 0x1ac   :  { %262 = vst.msk [vmem:[#allocation2 + $0x20] sm:$0xff] %vm241_vm1, %v251_v24 }
 0x1af   :  { %v253_v31 = vpop.permute.xlu0 %252  ;;  %v255_v32 = vpop.permute.xlu1 %254 }
 0x1b0   :  { %263 = vst.msk [vmem:[#allocation2 + $0x28] sm:$0xff] %vm241_vm1, %v253_v31  ;;  %264 = vst.msk [vmem:[#allocation2 + $0x30] sm:$0xff] %vm241_vm1, %v255_v32 }
 0x1b3   :  { %v267_v40 = vpop.permute.xlu0 %266  ;;  %v257_v41 = vpop.permute.xlu1 %256  ;;  %v3071_v42 = vld [vmem:[#allocation2 + $0x20] sm:$0xff] }
 0x1b4   :  { %278 = vst.msk [vmem:[#allocation2 + $0x40] sm:$0xff] %vm241_vm1, %v267_v40  ;;  %265 = vst.msk [vmem:[#allocation2 + $0x38] sm:$0xff] %vm241_vm1, %v257_v41  ;;  %v323_v45 = vsel %vm241_vm1, %v3071_v42, 0.0  ;;  %v358_v46 = vmul.f32 %v3071_v42, %v3071_v42 }
 0x1b5   :  { %v324_v54 = vadd.f32 %v323_v45, %v322_v47 }
 0x1b6   :  { %v377_v49 = vsel %vm241_vm1, %v358_v46, 0.0 }
 0x1b7   :  { %v271_v50 = vpop.permute.xlu0 %270  ;;  %v269_v51 = vpop.permute.xlu1 %268  ;;  %v3083_v52 = vld [vmem:[#allocation2 + $0x28] sm:$0xff]  ;;  %v3085_v53 = vld [vmem:[#allocation2 + $0x30] sm:$0xff]  ;;  %v378_v60 = vadd.f32 %v377_v49, %v376_v55 }
 0x1b8   :  { %280 = vst.msk [vmem:[#allocation2 + $0x50] sm:$0xff] %vm241_vm1, %v271_v50  ;;  %279 = vst.msk [vmem:[#allocation2 + $0x48] sm:$0xff] %vm241_vm1, %v269_v51  ;;  %v325_v56 = vsel %vm241_vm1, %v3083_v52, 0.0  ;;  %v359_v57 = vmul.f32 %v3083_v52, %v3083_v52  ;;  %v360_v58 = vmul.f32 %v3085_v53, %v3085_v53  ;;  %v327_v61 = vsel %vm241_vm1, %v3085_v53, 0.0 }
 0x1b9   :  { %v326_v59 = vadd.f32 %v325_v56, %v324_v54 }
 0x1ba   :  { %v379_v62 = vsel %vm241_vm1, %v359_v57, 0.0  ;;  %v381_v8 = vsel %vm241_vm1, %v360_v58, 0.0 }
 0x1bb   :  { %v283_v63 = vpop.permute.xlu0 %282  ;;  %v273_v0 = vpop.permute.xlu1 %272  ;;  %v3098_v1 = vld [vmem:[#allocation2 + $0x38] sm:$0xff]  ;;  %v3100_v2 = vld [vmem:[#allocation2 + $0x40] sm:$0xff]  ;;  %v328_v3 = vadd.f32 %v327_v61, %v326_v59  ;;  %v380_v4 = vadd.f32 %v379_v62, %v378_v60 }
 0x1bc   :  { %294 = vst.msk [vmem:[#allocation2 + $0x60] sm:$0xff] %vm241_vm1, %v283_v63  ;;  %281 = vst.msk [vmem:[#allocation2 + $0x58] sm:$0xff] %vm241_vm1, %v273_v0  ;;  %v329_v5 = vsel %vm241_vm1, %v3098_v1, 0.0  ;;  %v361_v6 = vmul.f32 %v3098_v1, %v3098_v1  ;;  %v362_v7 = vmul.f32 %v3100_v2, %v3100_v2  ;;  %v331_v11 = vsel %vm241_vm1, %v3100_v2, 0.0 }
 0x1bd   :  { %v330_v9 = vadd.f32 %v329_v5, %v328_v3  ;;  %v382_v10 = vadd.f32 %v381_v8, %v380_v4 }
 0x1be   :  { %v383_v12 = vsel %vm241_vm1, %v361_v6, 0.0  ;;  %v385_v25 = vsel %vm241_vm1, %v362_v7, 0.0 }
 0x1bf   :  { %v287_v13 = vpop.permute.xlu0 %286  ;;  %v285_v14 = vpop.permute.xlu1 %284  ;;  %v3114_v15 = vld [vmem:[#allocation2 + $0x48] sm:$0xff]  ;;  %v3116_v16 = vld [vmem:[#allocation2 + $0x50] sm:$0xff]  ;;  %v332_v17 = vadd.f32 %v331_v11, %v330_v9  ;;  %v384_v18 = vadd.f32 %v383_v12, %v382_v10 }
 0x1c0   :  { %296 = vst.msk [vmem:[#allocation2 + $0x70] sm:$0xff] %vm241_vm1, %v287_v13  ;;  %295 = vst.msk [vmem:[#allocation2 + $0x68] sm:$0xff] %vm241_vm1, %v285_v14  ;;  %v333_v19 = vsel %vm241_vm1, %v3114_v15, 0.0  ;;  %v363_v23 = vmul.f32 %v3114_v15, %v3114_v15  ;;  %v364_v24 = vmul.f32 %v3116_v16, %v3116_v16  ;;  %v335_v28 = vsel %vm241_vm1, %v3116_v16, 0.0 }
 0x1c1   :  { %v334_v26 = vadd.f32 %v333_v19, %v332_v17  ;;  %v386_v27 = vadd.f32 %v385_v25, %v384_v18 }
 0x1c2   :  { %v387_v29 = vsel %vm241_vm1, %v363_v23, 0.0  ;;  %v389_v39 = vsel %vm241_vm1, %v364_v24, 0.0 }
 0x1c3   :  { %v3130_v30 = vld [vmem:[#allocation2 + $0x60] sm:$0xff]  ;;  %v289_v31 = vpop.permute.xlu1 %288  ;;  %v3132_v32 = vld [vmem:[#allocation2 + $0x58] sm:$0xff]  ;;  %v336_v34 = vadd.f32 %v335_v28, %v334_v26  ;;  %v388_v35 = vadd.f32 %v387_v29, %v386_v27  ;;  %v416_v29 = vlaneseq }
 0x1c4   :  { %v366_v36 = vmul.f32 %v3130_v30, %v3130_v30  ;;  %297 = vst.msk [vmem:[#allocation2 + $0x78] sm:$0xff] %vm241_vm1, %v289_v31  ;;  %v337_v37 = vsel %vm241_vm1, %v3132_v32, 0.0  ;;  %v365_v38 = vmul.f32 %v3132_v32, %v3132_v32  ;;  %v339_v43 = vsel %vm241_vm1, %v3130_v30, 0.0 }
 0x1c5   :  { %v338_v40 = vadd.f32 %v337_v37, %v336_v34  ;;  %v390_v41 = vadd.f32 %v389_v39, %v388_v35  ;;  %v417_v31 = vshrl.u32 %v416_v29, 7  ;;  %v314_v34 = vld [vmem:[#allocation6] sm:$0x1] }
 0x1c6   :  { %v391_v44 = vsel %vm241_vm1, %v365_v38, 0.0  ;;  %v393_v54 = vsel %vm241_vm1, %v366_v36, 0.0  ;;  %v315_v38 = vld [vmem:[#allocation8] sm:$0x1] }
 0x1c7   :  { %v3145_v45 = vld [vmem:[#allocation2 + $0x70] sm:$0xff]  ;;  %v3147_v46 = vld [vmem:[#allocation2 + $0x68] sm:$0xff]  ;;  %v340_v47 = vadd.f32 %v339_v43, %v338_v40  ;;  %v392_v48 = vadd.f32 %v391_v44, %v390_v41  ;;  %v3167_v35 = vsub.s32 0, %v417_v31 }
 0x1c8   :  { %v368_v49 = vmul.f32 %v3145_v45, %v3145_v45  ;;  %v367_v50 = vmul.f32 %v3147_v46, %v3147_v46  ;;  %v341_v51 = vsel %vm241_vm1, %v3147_v46, 0.0  ;;  %v343_v57 = vsel %vm241_vm1, %v3145_v45, 0.0 }
 0x1c9   :  { %v342_v55 = vadd.f32 %v341_v51, %v340_v47  ;;  %v394_v56 = vadd.f32 %v393_v54, %v392_v48 }
 0x1ca   :  { %v395_v58 = vsel %vm241_vm1, %v367_v50, 0.0  ;;  %v397_v62 = vsel %vm241_vm1, %v368_v49, 0.0 }
 0x1cb   :  { %v3159_v59 = vld [vmem:[#allocation2 + $0x78] sm:$0xff]  ;;  %v344_v60 = vadd.f32 %v343_v57, %v342_v55  ;;  %v396_v61 = vadd.f32 %v395_v58, %v394_v56 }
 0x1cc   :  { %v345_v63 = vsel %vm241_vm1, %v3159_v59, 0.0  ;;  %v369_v0 = vmul.f32 %v3159_v59, %v3159_v59 }
 0x1cd   :  { %v346_v3 = vadd.f32 %v345_v63, %v344_v60  ;;  %v398_v4 = vadd.f32 %v397_v62, %v396_v61 }
 0x1ce   :  { %v399_v5 = vsel %vm241_vm1, %v369_v0, 0.0 }
 0x1cf   :  { %v347_v6 = vrot.slane %v346_v3, 4  ;;  %v400_v7 = vadd.f32 %v399_v5, %v398_v4 }
 0x1d1   :  { %v348_v8 = vadd.f32 %v347_v6, %v346_v3  ;;  %v401_v9 = vrot.slane %v400_v7, 4 }
 0x1d3   :  { %v349_v10 = vrot.slane %v348_v8, 2  ;;  %v402_v11 = vadd.f32 %v401_v9, %v400_v7 }
 0x1d5   :  { %v350_v12 = vadd.f32 %v349_v10, %v348_v8  ;;  %v403_v13 = vrot.slane %v402_v11, 2 }
 0x1d7   :  { %v351_v14 = vrot.slane %v350_v12, 1  ;;  %v404_v17 = vadd.f32 %v403_v13, %v402_v11 }
 0x1d9   :  { %v352_v18 = vadd.f32 %v351_v14, %v350_v12  ;;  %v405_v19 = vrot.slane %v404_v17, 1 }
 0x1db   :  { %v353_v23 = vmul.f32 0.0078125, %v352_v18  ;;  %v406_v24 = vadd.f32 %v405_v19, %v404_v17 }
 0x1dd   :  { %v407_v25 = vmul.f32 0.0078125, %v406_v24  ;;  %v408_v26 = vmul.f32 %v353_v23, %v353_v23 }
 0x1df   :  { %v409_v27 = vsub.f32 %v407_v25, %v408_v26 }
 0x1e1   :  { %v410_v28 = vadd.f32 1e-05, %v409_v27 }
 0x1e3   :  { %2586 = vrsqrt.f32 %v410_v28 }
 0x1f0   :  { %v2587_v36 = vpop.eup %2586 }
 0x1f1   :  { %v412_v37 = vmul.f32 %v2587_v36, %v314_v34 }
 0x1f3   :  { %v413_v39 = vmul.f32 %v412_v37, %v353_v23  ;;  %v419_v40 = vrot.slane %v412_v37, %v3167_v35 }
 0x1f5   :  { %v414_v41 = vsub.f32 %v315_v38, %v413_v39  ;;  %v421_v43 = vmul.f32 %v419_v40, %v3043_v20  ;;  %v422_v47 = vmul.f32 %v419_v40, %v3045_v21  ;;  %v423_v48 = vmul.f32 %v419_v40, %v3047_v22 }
 0x1f6   :  { %v424_v54 = vmul.f32 %v419_v40, %v3063_v33  ;;  %v425_v57 = vmul.f32 %v419_v40, %v3071_v42  ;;  %v426_v21 = vmul.f32 %v419_v40, %v3083_v52  ;;  %v427_v22 = vmul.f32 %v419_v40, %v3085_v53 }
 0x1f7   :  { %v441_v44 = vrot.slane %v414_v41, %v3167_v35  ;;  %v428_v42 = vmul.f32 %v419_v40, %v3098_v1  ;;  %v429_v0 = vmul.f32 %v419_v40, %v3100_v2  ;;  %v430_v53 = vmul.f32 %v419_v40, %v3114_v15 }
 0x1f8   :  { %v431_v6 = vmul.f32 %v419_v40, %v3116_v16  ;;  %v432_v2 = vmul.f32 %v419_v40, %v3132_v32  ;;  %v433_v10 = vmul.f32 %v419_v40, %v3130_v30  ;;  %v434_v16 = vmul.f32 %v419_v40, %v3147_v46 }
 0x1f9   :  { %v443_v49 = vadd.f32 %v441_v44, %v421_v43  ;;  %v444_v50 = vadd.f32 %v441_v44, %v422_v47  ;;  %v445_v51 = vadd.f32 %v441_v44, %v423_v48  ;;  %v446_v58 = vadd.f32 %v441_v44, %v424_v54 }
 0x1fa   :  { %v447_v20 = vadd.f32 %v441_v44, %v425_v57  ;;  %v448_v62 = vadd.f32 %v441_v44, %v426_v21  ;;  %v449_v63 = vadd.f32 %v441_v44, %v427_v22  ;;  %v450_v4 = vadd.f32 %v441_v44, %v428_v42 }
 0x1fb   :  { %v459_v55 = vmax.f32 %v443_v49, 0.0  ;;  %v460_v56 = vmax.f32 %v444_v50, 0.0  ;;  %v461_v60 = vmax.f32 %v445_v51, 0.0  ;;  %v462_v61 = vmax.f32 %v446_v58, 0.0 }
 0x1fc   :  { %v463_v33 = vmax.f32 %v447_v20, 0.0  ;;  %v464_v3 = vmax.f32 %v448_v62, 0.0  ;;  %v465_v5 = vmax.f32 %v449_v63, 0.0  ;;  %v451_v52 = vadd.f32 %v441_v44, %v429_v0 }
 0x1fd   :  { %2443 = vmatprep.mubr.msk.f32.mxu1 %vm241_vm1, %v459_v55  ;;  %v466_v7 = vmax.f32 %v450_v4, 0.0  ;;  %v452_v8 = vadd.f32 %v441_v44, %v430_v53  ;;  %v453_v1 = vadd.f32 %v441_v44, %v431_v6  ;;  %v454_v12 = vadd.f32 %v441_v44, %v432_v2 }
 0x1fe   :  { %2444 = vmatmul.mubr.msk.f32.vlgmr.msra.gmra.mxu1 %vm241_vm1, %v460_v56  ;;  %v467_v9 = vmax.f32 %v451_v52, 0.0  ;;  %v455_v15 = vadd.f32 %v441_v44, %v433_v10  ;;  %v435_v14 = vmul.f32 %v419_v40, %v3145_v45  ;;  %v456_v18 = vadd.f32 %v441_v44, %v434_v16 }
 0x1ff   :  { %2446 = vmatprep.mubr.msk.f32.mxu1 %vm241_vm1, %v461_v60  ;;  %v468_v11 = vmax.f32 %v452_v8, 0.0  ;;  %v469_v13 = vmax.f32 %v453_v1, 0.0  ;;  %v470_v17 = vmax.f32 %v454_v12, 0.0  ;;  %v436_v30 = vmul.f32 %v419_v40, %v3159_v59 }
 0x200   :  { %v471_v19 = vmax.f32 %v455_v15, 0.0  ;;  %v457_v32 = vadd.f32 %v441_v44, %v435_v14  ;;  %v472_v23 = vmax.f32 %v456_v18, 0.0 }
 0x201   :  { %v458_v24 = vadd.f32 %v441_v44, %v436_v30 }
 0x202   :  { %2447 = vmatmul.mubr.msk.f32.gmra.mxu1 %vm241_vm1, %v462_v61  ;;  %v473_v25 = vmax.f32 %v457_v32, 0.0 }
 0x203   :  { %2449 = vmatprep.mubr.msk.f32.mxu1 %vm241_vm1, %v463_v33  ;;  %v474_v46 = vmax.f32 %v458_v24, 0.0 }
 0x206   :  { %2450 = vmatmul.mubr.msk.f32.gmra.mxu1 %vm241_vm1, %v464_v3 }
 0x207   :  { %2452 = vmatprep.mubr.msk.f32.mxu1 %vm241_vm1, %v465_v5 }
 0x20a   :  { %2453 = vmatmul.mubr.msk.f32.gmra.mxu1 %vm241_vm1, %v466_v7 }
 0x20b   :  { %2455 = vmatprep.mubr.msk.f32.mxu1 %vm241_vm1, %v467_v9 }
 0x20e   :  { %2456 = vmatmul.mubr.msk.f32.gmra.mxu1 %vm241_vm1, %v468_v11 }
 0x20f   :  { %2458 = vmatprep.mubr.msk.f32.mxu1 %vm241_vm1, %v469_v13 }
 0x212   :  { %2459 = vmatmul.mubr.msk.f32.gmra.mxu1 %vm241_vm1, %v470_v17 }
 0x213   :  { %2461 = vmatprep.mubr.msk.f32.mxu1 %vm241_vm1, %v471_v19 }
 0x216   :  { %2462 = vmatmul.mubr.msk.f32.gmra.mxu1 %vm241_vm1, %v472_v23  ;;  %v1507_v23 = vld [vmem:[#allocation14 + $0x8] sm:$0xff] }
 0x217   :  { %2464 = vmatprep.mubr.msk.f32.mxu1 %vm241_vm1, %v473_v25  ;;  %2567 = vmatprep.subr.mxu1 %v1507_v23 }
 0x218   :  { %2569 = vmatpush3.msra.mxu1 %v1507_v23  ;;  %2467 = vmatprep.subr.mxu0 %v1507_v23 }
 0x219   :  { %2468 = vmatpush3.msra.mxu0 %v1507_v23 }
 0x21a   :  { %2465 = vmatmul.mubr.msk.f32.gmra.mxu1 %vm241_vm1, %v474_v46  ;;  %v1506_v46 = vld [vmem:[#allocation14] sm:$0xff] }
 0x21b   :  { %2469 = vmatprep.subr.mxu0 %v1506_v46  ;;  %2568 = vmatprep.subr.mxu1 %v1506_v46 }
 0x21c   :  { %2470 = vmatpush3.msra.mxu0 %v1506_v46  ;;  %2570 = vmatpush3.msra.mxu1 %v1506_v46 }
 0x2be   :  { %v3203_v45 = vpop.f32.mrf.mxu1 }
 0x2bf   :  { %674 = vst.msk [vmem:[#allocation3 + $0x8] sm:$0xff] %vm672_vm2, %v3203_v45  ;;  %707 = vrot.lane.b32.xlu1 %v3203_v45, %s2934_s13 }
 0x2c0   :  { %v3209_v59 = vpop.f32.mrf.mxu1 }
 0x2c1   :  { %673 = vst.msk [vmem:[#allocation3] sm:$0xff] %vm672_vm2, %v3209_v59  ;;  %705 = vrot.lane.b32.xlu0 %v3209_v59, %s2934_s13 }
 0x2c2   :  { %v3215_v26 = vpop.f32.mrf.mxu1 }
 0x2c3   :  { %676 = vst.msk [vmem:[#allocation3 + $0x18] sm:$0xff] %vm672_vm2, %v3215_v26  ;;  %711 = vrot.lane.b32.xlu1 %v3215_v26, %s2934_s13 }
 0x2c4   :  { %v3221_v27 = vpop.f32.mrf.mxu1 }
 0x2c5   :  { %675 = vst.msk [vmem:[#allocation3 + $0x10] sm:$0xff] %vm672_vm2, %v3221_v27  ;;  %709 = vrot.lane.b32.xlu0 %v3221_v27, %s2934_s13 }
 0x2c6   :  { %v3227_v28 = vpop.f32.mrf.mxu1  ;;  %v898_v48 = vld [vmem:[#allocation3 + $0x8] sm:$0xff] }
 0x2c7   :  { %678 = vst.msk [vmem:[#allocation3 + $0x28] sm:$0xff] %vm672_vm2, %v3227_v28  ;;  %715 = vrot.lane.b32.xlu1 %v3227_v28, %s2934_s13  ;;  %v1098_v54 = vmul.f32 %v898_v48, %v898_v48  ;;  %v964_v56 = vsel %vm672_vm2, %v898_v48, 0.0 }
 0x2c8   :  { %v3233_v29 = vpop.f32.mrf.mxu1  ;;  %v897_v47 = vld [vmem:[#allocation3] sm:$0xff] }
 0x2c9   :  { %677 = vst.msk [vmem:[#allocation3 + $0x20] sm:$0xff] %vm672_vm2, %v3233_v29  ;;  %713 = vrot.lane.b32.xlu0 %v3233_v29, %s2934_s13  ;;  %v1097_v50 = vmul.f32 %v897_v47, %v897_v47  ;;  %v963_v51 = vsel %vm672_vm2, %v897_v47, 0.0  ;;  %v1162_v21 = vsel %vm672_vm2, %v1098_v54, 0.0 }
 0x2ca   :  { %v3239_v31 = vpop.f32.mrf.mxu1  ;;  %v900_v60 = vld [vmem:[#allocation3 + $0x18] sm:$0xff]  ;;  %v965_v20 = vadd.f32 %v964_v56, %v963_v51 }
 0x2cb   :  { %680 = vst.msk [vmem:[#allocation3 + $0x38] sm:$0xff] %vm672_vm2, %v3239_v31  ;;  %719 = vrot.lane.b32.xlu1 %v3239_v31, %s2934_s13  ;;  %v1161_v58 = vsel %vm672_vm2, %v1097_v50, 0.0  ;;  %v1100_v63 = vmul.f32 %v900_v60, %v900_v60  ;;  %v968_v0 = vsel %vm672_vm2, %v900_v60, 0.0 }
 0x2cc   :  { %v3245_v34 = vpop.f32.mrf.mxu1  ;;  %v899_v49 = vld [vmem:[#allocation3 + $0x10] sm:$0xff]  ;;  %v1163_v33 = vadd.f32 %v1162_v21, %v1161_v58 }
 0x2cd   :  { %679 = vst.msk [vmem:[#allocation3 + $0x30] sm:$0xff] %vm672_vm2, %v3245_v34  ;;  %717 = vrot.lane.b32.xlu0 %v3245_v34, %s2934_s13  ;;  %v1099_v55 = vmul.f32 %v899_v49, %v899_v49  ;;  %v966_v57 = vsel %vm672_vm2, %v899_v49, 0.0  ;;  %v1166_v52 = vsel %vm672_vm2, %v1100_v63, 0.0 }
 0x2ce   :  { %v3251_v36 = vpop.f32.mrf.mxu1  ;;  %v967_v62 = vadd.f32 %v966_v57, %v965_v20  ;;  %v902_v53 = vld [vmem:[#allocation3 + $0x28] sm:$0xff] }
 0x2cf   :  { %682 = vst.msk [vmem:[#allocation3 + $0x48] sm:$0xff] %vm672_vm2, %v3251_v36  ;;  %723 = vrot.lane.b32.xlu1 %v3251_v36, %s2934_s13  ;;  %v1164_v22 = vsel %vm672_vm2, %v1099_v55, 0.0  ;;  %v1102_v1 = vmul.f32 %v902_v53, %v902_v53  ;;  %v972_v10 = vsel %vm672_vm2, %v902_v53, 0.0 }
 0x2d0   :  { %v3257_v37 = vpop.f32.mrf.mxu1  ;;  %v901_v61 = vld [vmem:[#allocation3 + $0x20] sm:$0xff]  ;;  %v1165_v42 = vadd.f32 %v1164_v22, %v1163_v33  ;;  %v969_v4 = vadd.f32 %v968_v0, %v967_v62 }
 0x2d1   :  { %681 = vst.msk [vmem:[#allocation3 + $0x40] sm:$0xff] %vm672_vm2, %v3257_v37  ;;  %721 = vrot.lane.b32.xlu0 %v3257_v37, %s2934_s13  ;;  %v1101_v3 = vmul.f32 %v901_v61, %v901_v61  ;;  %v970_v5 = vsel %vm672_vm2, %v901_v61, 0.0  ;;  %v1170_v15 = vsel %vm672_vm2, %v1102_v1, 0.0 }
 0x2d2   :  { %v3263_v38 = vpop.f32.mrf.mxu1  ;;  %v1167_v6 = vadd.f32 %v1166_v52, %v1165_v42  ;;  %v971_v9 = vadd.f32 %v970_v5, %v969_v4  ;;  %v904_v16 = vld [vmem:[#allocation3 + $0x38] sm:$0xff] }
 0x2d3   :  { %684 = vst.msk [vmem:[#allocation3 + $0x58] sm:$0xff] %vm672_vm2, %v3263_v38  ;;  %727 = vrot.lane.b32.xlu1 %v3263_v38, %s2934_s13  ;;  %v1168_v7 = vsel %vm672_vm2, %v1101_v3, 0.0  ;;  %v1104_v32 = vmul.f32 %v904_v16, %v904_v16  ;;  %v976_v24 = vsel %vm672_vm2, %v904_v16, 0.0 }
 0x2d4   :  { %v3269_v39 = vpop.f32.mrf.mxu1  ;;  %v903_v8 = vld [vmem:[#allocation3 + $0x30] sm:$0xff]  ;;  %v1169_v2 = vadd.f32 %v1168_v7, %v1167_v6  ;;  %v973_v12 = vadd.f32 %v972_v10, %v971_v9 }
 0x2d5   :  { %683 = vst.msk [vmem:[#allocation3 + $0x50] sm:$0xff] %vm672_vm2, %v3269_v39  ;;  %725 = vrot.lane.b32.xlu0 %v3269_v39, %s2934_s13  ;;  %v1103_v11 = vmul.f32 %v903_v8, %v903_v8  ;;  %v974_v13 = vsel %vm672_vm2, %v903_v8, 0.0 }
 0x2d6   :  { %v3275_v40 = vpop.f32.mrf.mxu1  ;;  %v1171_v14 = vadd.f32 %v1170_v15, %v1169_v2  ;;  %v975_v19 = vadd.f32 %v974_v13, %v973_v12 }
 0x2d7   :  { %686 = vst.msk [vmem:[#allocation3 + $0x68] sm:$0xff] %vm672_vm2, %v3275_v40  ;;  %731 = vrot.lane.b32.xlu1 %v3275_v40, %s2934_s13  ;;  %v1172_v17 = vsel %vm672_vm2, %v1103_v11, 0.0 }
 0x2d8   :  { %v3281_v41 = vpop.f32.mrf.mxu1  ;;  %v905_v18 = vld [vmem:[#allocation3 + $0x40] sm:$0xff]  ;;  %v1173_v30 = vadd.f32 %v1172_v17, %v1171_v14 }
 0x2d9   :  { %685 = vst.msk [vmem:[#allocation3 + $0x60] sm:$0xff] %vm672_vm2, %v3281_v41  ;;  %729 = vrot.lane.b32.xlu0 %v3281_v41, %s2934_s13  ;;  %v1105_v25 = vmul.f32 %v905_v18, %v905_v18 }
 0x2da   :  { %v3287_v43 = vpop.f32.mrf.mxu1 }
 0x2db   :  { %688 = vst.msk [vmem:[#allocation3 + $0x78] sm:$0xff] %vm672_vm2, %v3287_v43  ;;  %735 = vrot.lane.b32.xlu1 %v3287_v43, %s2934_s13 }
 0x2dc   :  { %v3293_v44 = vpop.f32.mrf.mxu1 }
 0x2dd   :  { %687 = vst.msk [vmem:[#allocation3 + $0x70] sm:$0xff] %vm672_vm2, %v3293_v44  ;;  %733 = vrot.lane.b32.xlu0 %v3293_v44, %s2934_s13 }
 0x2de   :  { %v910_v20 = vld [vmem:[#allocation3 + $0x68] sm:$0xff] }
 0x2df   :  { %771 = vrot.lane.b32.xlu1 %v3203_v45, %s2931_s6  ;;  %v1110_v33 = vmul.f32 %v910_v20, %v910_v20  ;;  %v988_v0 = vsel %vm672_vm2, %v910_v20, 0.0 }
 0x2e0   :  { %v909_v49 = vld [vmem:[#allocation3 + $0x60] sm:$0xff] }
 0x2e1   :  { %769 = vrot.lane.b32.xlu0 %v3209_v59, %s2931_s6  ;;  %v1109_v55 = vmul.f32 %v909_v49, %v909_v49  ;;  %v986_v58 = vsel %vm672_vm2, %v909_v49, 0.0  ;;  %v1186_v52 = vsel %vm672_vm2, %v1110_v33, 0.0 }
 0x2e2   :  { %v912_v6 = vld [vmem:[#allocation3 + $0x78] sm:$0xff] }
 0x2e3   :  { %775 = vrot.lane.b32.xlu1 %v3215_v26, %s2931_s6  ;;  %v1184_v22 = vsel %vm672_vm2, %v1109_v55, 0.0  ;;  %v1112_v10 = vmul.f32 %v912_v6, %v912_v6  ;;  %v992_v15 = vsel %vm672_vm2, %v912_v6, 0.0 }
 0x2e4   :  { %v911_v61 = vld [vmem:[#allocation3 + $0x70] sm:$0xff] }
 0x2e5   :  { %773 = vrot.lane.b32.xlu0 %v3221_v27, %s2931_s6  ;;  %v1111_v3 = vmul.f32 %v911_v61, %v911_v61  ;;  %v990_v53 = vsel %vm672_vm2, %v911_v61, 0.0 }
 0x2e7   :  { %779 = vrot.lane.b32.xlu1 %v3227_v28, %s2931_s6  ;;  %v1188_v9 = vsel %vm672_vm2, %v1111_v3, 0.0 }
 0x2e9   :  { %777 = vrot.lane.b32.xlu0 %v3233_v29, %s2931_s6 }
 0x2eb   :  { %783 = vrot.lane.b32.xlu1 %v3239_v31, %s2931_s6 }
 0x2ed   :  { %781 = vrot.lane.b32.xlu0 %v3245_v34, %s2931_s6 }
 0x2ef   :  { %787 = vrot.lane.b32.xlu1 %v3251_v36, %s2931_s6 }
 0x2f1   :  { %785 = vrot.lane.b32.xlu0 %v3257_v37, %s2931_s6 }
 0x2f3   :  { %791 = vrot.lane.b32.xlu1 %v3263_v38, %s2931_s6 }
 0x2f5   :  { %789 = vrot.lane.b32.xlu0 %v3269_v39, %s2931_s6 }
 0x2f7   :  { %795 = vrot.lane.b32.xlu1 %v3275_v40, %s2931_s6 }
 0x2f9   :  { %793 = vrot.lane.b32.xlu0 %v3281_v41, %s2931_s6 }
 0x2fb   :  { %799 = vrot.lane.b32.xlu1 %v3287_v43, %s2931_s6 }
 0x2fd   :  { %797 = vrot.lane.b32.xlu0 %v3293_v44, %s2931_s6 }
 0x2ff   :  { %835 = vrot.lane.b32.xlu1 %v3203_v45, %s2935_s14  ;;  %v977_v45 = vadd.f32 %v976_v24, %v975_v19 }
 0x301   :  { %833 = vrot.lane.b32.xlu0 %v3209_v59, %s2935_s14  ;;  %v978_v59 = vsel %vm672_vm2, %v905_v18, 0.0  ;;  %v1190_v18 = vsel %vm672_vm2, %v1112_v10, 0.0 }
 0x303   :  { %839 = vrot.lane.b32.xlu1 %v3215_v26, %s2935_s14  ;;  %v1174_v26 = vsel %vm672_vm2, %v1104_v32, 0.0 }
 0x305   :  { %837 = vrot.lane.b32.xlu0 %v3221_v27, %s2935_s14  ;;  %v906_v27 = vld [vmem:[#allocation3 + $0x48] sm:$0xff] }
 0x307   :  { %843 = vrot.lane.b32.xlu1 %v3227_v28, %s2935_s14  ;;  %v1175_v28 = vadd.f32 %v1174_v26, %v1173_v30 }
 0x309   :  { %841 = vrot.lane.b32.xlu0 %v3233_v29, %s2935_s14  ;;  %v1176_v29 = vsel %vm672_vm2, %v1105_v25, 0.0 }
 0x30b   :  { %847 = vrot.lane.b32.xlu1 %v3239_v31, %s2935_s14  ;;  %v907_v31 = vld [vmem:[#allocation3 + $0x50] sm:$0xff] }
 0x30d   :  { %845 = vrot.lane.b32.xlu0 %v3245_v34, %s2935_s14  ;;  %v979_v34 = vadd.f32 %v978_v59, %v977_v45 }
 0x30f   :  { %851 = vrot.lane.b32.xlu1 %v3251_v36, %s2935_s14  ;;  %v1106_v36 = vmul.f32 %v906_v27, %v906_v27 }
 0x311   :  { %849 = vrot.lane.b32.xlu0 %v3257_v37, %s2935_s14  ;;  %v1177_v37 = vadd.f32 %v1176_v29, %v1175_v28 }
 0x313   :  { %855 = vrot.lane.b32.xlu1 %v3263_v38, %s2935_s14  ;;  %v980_v38 = vsel %vm672_vm2, %v906_v27, 0.0 }
 0x315   :  { %853 = vrot.lane.b32.xlu0 %v3269_v39, %s2935_s14  ;;  %v1107_v39 = vmul.f32 %v907_v31, %v907_v31 }
 0x317   :  { %859 = vrot.lane.b32.xlu1 %v3275_v40, %s2935_s14  ;;  %v981_v40 = vadd.f32 %v980_v38, %v979_v34  ;;  %v1180_v48 = vsel %vm672_vm2, %v1107_v39, 0.0 }
 0x319   :  { %857 = vrot.lane.b32.xlu0 %v3281_v41, %s2935_s14  ;;  %v982_v41 = vsel %vm672_vm2, %v907_v31, 0.0 }
 0x31a   :  { %v983_v50 = vadd.f32 %v982_v41, %v981_v40 }
 0x31b   :  { %863 = vrot.lane.b32.xlu1 %v3287_v43, %s2935_s14  ;;  %v1178_v43 = vsel %vm672_vm2, %v1106_v36, 0.0 }
 0x31c   :  { %v1179_v47 = vadd.f32 %v1178_v43, %v1177_v37 }
 0x31d   :  { %861 = vrot.lane.b32.xlu0 %v3293_v44, %s2935_s14  ;;  %v908_v44 = vld [vmem:[#allocation3 + $0x58] sm:$0xff] }
 0x31e   :  { %v1108_v51 = vmul.f32 %v908_v44, %v908_v44  ;;  %v1181_v54 = vadd.f32 %v1180_v48, %v1179_v47  ;;  %v984_v56 = vsel %vm672_vm2, %v908_v44, 0.0 }
 0x31f   :  { %v985_v57 = vadd.f32 %v984_v56, %v983_v50 }
 0x320   :  { %v1182_v60 = vsel %vm672_vm2, %v1108_v51, 0.0 }
 0x321   :  { %v1183_v21 = vadd.f32 %v1182_v60, %v1181_v54  ;;  %v987_v62 = vadd.f32 %v986_v58, %v985_v57 }
 0x323   :  { %v1185_v42 = vadd.f32 %v1184_v22, %v1183_v21  ;;  %v989_v5 = vadd.f32 %v988_v0, %v987_v62 }
 0x325   :  { %v1187_v8 = vadd.f32 %v1186_v52, %v1185_v42  ;;  %v991_v2 = vadd.f32 %v990_v53, %v989_v5 }
 0x327   :  { %v1189_v13 = vadd.f32 %v1188_v9, %v1187_v8  ;;  %v993_v17 = vadd.f32 %v992_v15, %v991_v2 }
 0x329   :  { %v1191_v46 = vadd.f32 %v1190_v18, %v1189_v13 }
 0x331   :  { %v708_v63 = vpop.permute.xlu1 %707 }
 0x332   :  { %754 = vst.msk [vmem:[#allocation3 + $0x88] sm:$0xff] %vm672_vm2, %v708_v63 }
 0x333   :  { %v706_v4 = vpop.permute.xlu0 %705 }
 0x334   :  { %753 = vst.msk [vmem:[#allocation3 + $0x80] sm:$0xff] %vm672_vm2, %v706_v4 }
 0x335   :  { %v712_v7 = vpop.permute.xlu1 %711 }
 0x336   :  { %756 = vst.msk [vmem:[#allocation3 + $0x98] sm:$0xff] %vm672_vm2, %v712_v7 }
 0x337   :  { %v710_v1 = vpop.permute.xlu0 %709 }
 0x338   :  { %755 = vst.msk [vmem:[#allocation3 + $0x90] sm:$0xff] %vm672_vm2, %v710_v1 }
 0x339   :  { %v914_v11 = vld [vmem:[#allocation3 + $0x88] sm:$0xff]  ;;  %v716_v12 = vpop.permute.xlu1 %715 }
 0x33a   :  { %758 = vst.msk [vmem:[#allocation3 + $0xa8] sm:$0xff] %vm672_vm2, %v716_v12  ;;  %v1114_v19 = vmul.f32 %v914_v11, %v914_v11  ;;  %v996_v45 = vsel %vm672_vm2, %v914_v11, 0.0 }
 0x33b   :  { %v913_v16 = vld [vmem:[#allocation3 + $0x80] sm:$0xff]  ;;  %v714_v14 = vpop.permute.xlu0 %713 }
 0x33c   :  { %v994_v32 = vsel %vm672_vm2, %v913_v16, 0.0  ;;  %v1113_v30 = vmul.f32 %v913_v16, %v913_v16  ;;  %757 = vst.msk [vmem:[#allocation3 + $0xa0] sm:$0xff] %vm672_vm2, %v714_v14  ;;  %v1194_v31 = vsel %vm672_vm2, %v1114_v19, 0.0 }
 0x33d   :  { %v916_v23 = vld [vmem:[#allocation3 + $0x98] sm:$0xff]  ;;  %v720_v24 = vpop.permute.xlu1 %719  ;;  %v995_v25 = vadd.f32 %v994_v32, %v993_v17 }
 0x33e   :  { %v1192_v59 = vsel %vm672_vm2, %v1113_v30, 0.0  ;;  %760 = vst.msk [vmem:[#allocation3 + $0xb8] sm:$0xff] %vm672_vm2, %v720_v24  ;;  %v1116_v34 = vmul.f32 %v916_v23, %v916_v23  ;;  %v1000_v43 = vsel %vm672_vm2, %v916_v23, 0.0 }
 0x33f   :  { %v915_v26 = vld [vmem:[#allocation3 + $0x90] sm:$0xff]  ;;  %v718_v27 = vpop.permute.xlu0 %717  ;;  %v997_v28 = vadd.f32 %v996_v45, %v995_v25  ;;  %v1193_v29 = vadd.f32 %v1192_v59, %v1191_v46 }
 0x340   :  { %v998_v36 = vsel %vm672_vm2, %v915_v26, 0.0  ;;  %v1115_v37 = vmul.f32 %v915_v26, %v915_v26  ;;  %759 = vst.msk [vmem:[#allocation3 + $0xb0] sm:$0xff] %vm672_vm2, %v718_v27  ;;  %v1198_v51 = vsel %vm672_vm2, %v1116_v34, 0.0 }
 0x341   :  { %v918_v38 = vld [vmem:[#allocation3 + $0xa8] sm:$0xff]  ;;  %v724_v39 = vpop.permute.xlu1 %723  ;;  %v999_v40 = vadd.f32 %v998_v36, %v997_v28  ;;  %v1195_v41 = vadd.f32 %v1194_v31, %v1193_v29 }
 0x342   :  { %v1196_v44 = vsel %vm672_vm2, %v1115_v37, 0.0  ;;  %762 = vst.msk [vmem:[#allocation3 + $0xc8] sm:$0xff] %vm672_vm2, %v724_v39  ;;  %v1118_v54 = vmul.f32 %v918_v38, %v918_v38  ;;  %v1004_v21 = vsel %vm672_vm2, %v918_v38, 0.0 }
 0x343   :  { %v917_v47 = vld [vmem:[#allocation3 + $0xa0] sm:$0xff]  ;;  %v722_v48 = vpop.permute.xlu0 %721  ;;  %v1001_v49 = vadd.f32 %v1000_v43, %v999_v40  ;;  %v1197_v50 = vadd.f32 %v1196_v44, %v1195_v41 }
 0x344   :  { %v1002_v55 = vsel %vm672_vm2, %v917_v47, 0.0  ;;  %v1117_v56 = vmul.f32 %v917_v47, %v917_v47  ;;  %761 = vst.msk [vmem:[#allocation3 + $0xc0] sm:$0xff] %vm672_vm2, %v722_v48  ;;  %v1202_v42 = vsel %vm672_vm2, %v1118_v54, 0.0 }
 0x345   :  { %v920_v57 = vld [vmem:[#allocation3 + $0xb8] sm:$0xff]  ;;  %v728_v58 = vpop.permute.xlu1 %727  ;;  %v1003_v60 = vadd.f32 %v1002_v55, %v1001_v49  ;;  %v1199_v20 = vadd.f32 %v1198_v51, %v1197_v50 }
 0x346   :  { %v1200_v22 = vsel %vm672_vm2, %v1117_v56, 0.0  ;;  %764 = vst.msk [vmem:[#allocation3 + $0xd8] sm:$0xff] %vm672_vm2, %v728_v58  ;;  %v1120_v0 = vmul.f32 %v920_v57, %v920_v57  ;;  %v1008_v7 = vsel %vm672_vm2, %v920_v57, 0.0 }
 0x347   :  { %v919_v61 = vld [vmem:[#allocation3 + $0xb0] sm:$0xff]  ;;  %v726_v62 = vpop.permute.xlu0 %725  ;;  %v1005_v33 = vadd.f32 %v1004_v21, %v1003_v60  ;;  %v1201_v63 = vadd.f32 %v1200_v22, %v1199_v20 }
 0x348   :  { %v1006_v3 = vsel %vm672_vm2, %v919_v61, 0.0  ;;  %v1119_v4 = vmul.f32 %v919_v61, %v919_v61  ;;  %763 = vst.msk [vmem:[#allocation3 + $0xd0] sm:$0xff] %vm672_vm2, %v726_v62  ;;  %v1206_v11 = vsel %vm672_vm2, %v1120_v0, 0.0 }
 0x349   :  { %v922_v5 = vld [vmem:[#allocation3 + $0xc8] sm:$0xff]  ;;  %v732_v52 = vpop.permute.xlu1 %731  ;;  %v1007_v53 = vadd.f32 %v1006_v3, %v1005_v33  ;;  %v1203_v6 = vadd.f32 %v1202_v42, %v1201_v63 }
 0x34a   :  { %v1204_v8 = vsel %vm672_vm2, %v1119_v4, 0.0  ;;  %766 = vst.msk [vmem:[#allocation3 + $0xe8] sm:$0xff] %vm672_vm2, %v732_v52  ;;  %v1122_v12 = vmul.f32 %v922_v5, %v922_v5  ;;  %v1012_v19 = vsel %vm672_vm2, %v922_v5, 0.0 }
 0x34b   :  { %v921_v9 = vld [vmem:[#allocation3 + $0xc0] sm:$0xff]  ;;  %v730_v1 = vpop.permute.xlu0 %729  ;;  %v1009_v2 = vadd.f32 %v1008_v7, %v1007_v53  ;;  %v1205_v10 = vadd.f32 %v1204_v8, %v1203_v6 }
 0x34c   :  { %v1010_v13 = vsel %vm672_vm2, %v921_v9, 0.0  ;;  %v1121_v15 = vmul.f32 %v921_v9, %v921_v9  ;;  %765 = vst.msk [vmem:[#allocation3 + $0xe0] sm:$0xff] %vm672_vm2, %v730_v1  ;;  %v1210_v46 = vsel %vm672_vm2, %v1122_v12, 0.0 }
 0x34d   :  { %v924_v16 = vld [vmem:[#allocation3 + $0xd8] sm:$0xff]  ;;  %v736_v14 = vpop.permute.xlu1 %735  ;;  %v1011_v17 = vadd.f32 %v1010_v13, %v1009_v2  ;;  %v1207_v18 = vadd.f32 %v1206_v11, %v1205_v10 }
 0x34e   :  { %v1208_v32 = vsel %vm672_vm2, %v1121_v15, 0.0  ;;  %768 = vst.msk [vmem:[#allocation3 + $0xf8] sm:$0xff] %vm672_vm2, %v736_v14  ;;  %v1124_v45 = vmul.f32 %v924_v16, %v924_v16  ;;  %v1016_v34 = vsel %vm672_vm2, %v924_v16, 0.0 }
 0x34f   :  { %v923_v30 = vld [vmem:[#allocation3 + $0xd0] sm:$0xff]  ;;  %v734_v23 = vpop.permute.xlu0 %733  ;;  %v1013_v24 = vadd.f32 %v1012_v19, %v1011_v17  ;;  %v1209_v25 = vadd.f32 %v1208_v32, %v1207_v18 }
 0x350   :  { %v1014_v59 = vsel %vm672_vm2, %v923_v30, 0.0  ;;  %v1123_v26 = vmul.f32 %v923_v30, %v923_v30  ;;  %767 = vst.msk [vmem:[#allocation3 + $0xf0] sm:$0xff] %vm672_vm2, %v734_v23  ;;  %v1214_v41 = vsel %vm672_vm2, %v1124_v45, 0.0 }
 0x351   :  { %v926_v27 = vld [vmem:[#allocation3 + $0xe8] sm:$0xff]  ;;  %v772_v28 = vpop.permute.xlu1 %771  ;;  %v1015_v29 = vadd.f32 %v1014_v59, %v1013_v24  ;;  %v1211_v31 = vadd.f32 %v1210_v46, %v1209_v25 }
 0x352   :  { %v1212_v36 = vsel %vm672_vm2, %v1123_v26, 0.0  ;;  %818 = vst.msk [vmem:[#allocation3 + $0x108] sm:$0xff] %vm672_vm2, %v772_v28  ;;  %v1126_v43 = vmul.f32 %v926_v27, %v926_v27  ;;  %v1020_v54 = vsel %vm672_vm2, %v926_v27, 0.0 }
 0x353   :  { %v925_v37 = vld [vmem:[#allocation3 + $0xe0] sm:$0xff]  ;;  %v770_v38 = vpop.permute.xlu0 %769  ;;  %v1017_v39 = vadd.f32 %v1016_v34, %v1015_v29  ;;  %v1213_v40 = vadd.f32 %v1212_v36, %v1211_v31 }
 0x354   :  { %v1018_v44 = vsel %vm672_vm2, %v925_v37, 0.0  ;;  %v1125_v47 = vmul.f32 %v925_v37, %v925_v37  ;;  %817 = vst.msk [vmem:[#allocation3 + $0x100] sm:$0xff] %vm672_vm2, %v770_v38  ;;  %v1218_v20 = vsel %vm672_vm2, %v1126_v43, 0.0 }
 0x355   :  { %v928_v48 = vld [vmem:[#allocation3 + $0xf8] sm:$0xff]  ;;  %v776_v49 = vpop.permute.xlu1 %775  ;;  %v1019_v50 = vadd.f32 %v1018_v44, %v1017_v39  ;;  %v1215_v51 = vadd.f32 %v1214_v41, %v1213_v40 }
 0x356   :  { %v1216_v55 = vsel %vm672_vm2, %v1125_v47, 0.0  ;;  %820 = vst.msk [vmem:[#allocation3 + $0x118] sm:$0xff] %vm672_vm2, %v776_v49  ;;  %v1128_v21 = vmul.f32 %v928_v48, %v928_v48  ;;  %v1024_v0 = vsel %vm672_vm2, %v928_v48, 0.0 }
 0x357   :  { %v927_v56 = vld [vmem:[#allocation3 + $0xf0] sm:$0xff]  ;;  %v774_v57 = vpop.permute.xlu0 %773  ;;  %v1021_v58 = vadd.f32 %v1020_v54, %v1019_v50  ;;  %v1217_v60 = vadd.f32 %v1216_v55, %v1215_v51 }
 0x358   :  { %v1022_v22 = vsel %vm672_vm2, %v927_v56, 0.0  ;;  %v1127_v61 = vmul.f32 %v927_v56, %v927_v56  ;;  %819 = vst.msk [vmem:[#allocation3 + $0x110] sm:$0xff] %vm672_vm2, %v774_v57  ;;  %v1222_v6 = vsel %vm672_vm2, %v1128_v21, 0.0 }
 0x359   :  { %v3444_v62 = vld [vmem:[#allocation3 + $0x108] sm:$0xff]  ;;  %v780_v33 = vpop.permute.xlu1 %779  ;;  %v1023_v63 = vadd.f32 %v1022_v22, %v1021_v58  ;;  %v1219_v42 = vadd.f32 %v1218_v20, %v1217_v60 }
 0x35a   :  { %v1220_v3 = vsel %vm672_vm2, %v1127_v61, 0.0  ;;  %822 = vst.msk [vmem:[#allocation3 + $0x128] sm:$0xff] %vm672_vm2, %v780_v33  ;;  %v1130_v7 = vmul.f32 %v3444_v62, %v3444_v62  ;;  %v1028_v12 = vsel %vm672_vm2, %v3444_v62, 0.0 }
 0x35b   :  { %v929_v4 = vld [vmem:[#allocation3 + $0x100] sm:$0xff]  ;;  %v778_v5 = vpop.permute.xlu0 %777  ;;  %v1025_v52 = vadd.f32 %v1024_v0, %v1023_v63  ;;  %v1221_v53 = vadd.f32 %v1220_v3, %v1219_v42 }
 0x35c   :  { %v1026_v8 = vsel %vm672_vm2, %v929_v4, 0.0  ;;  %v1129_v9 = vmul.f32 %v929_v4, %v929_v4  ;;  %821 = vst.msk [vmem:[#allocation3 + $0x120] sm:$0xff] %vm672_vm2, %v778_v5  ;;  %v1226_v18 = vsel %vm672_vm2, %v1130_v7, 0.0 }
 0x35d   :  { %v3454_v1 = vld [vmem:[#allocation3 + $0x118] sm:$0xff]  ;;  %v784_v2 = vpop.permute.xlu1 %783  ;;  %v1027_v10 = vadd.f32 %v1026_v8, %v1025_v52  ;;  %v1223_v11 = vadd.f32 %v1222_v6, %v1221_v53 }
 0x35e   :  { %v1224_v13 = vsel %vm672_vm2, %v1129_v9, 0.0  ;;  %824 = vst.msk [vmem:[#allocation3 + $0x138] sm:$0xff] %vm672_vm2, %v784_v2  ;;  %v1132_v19 = vmul.f32 %v3454_v1, %v3454_v1  ;;  %v1032_v45 = vsel %vm672_vm2, %v3454_v1, 0.0 }
 0x35f   :  { %v3460_v15 = vld [vmem:[#allocation3 + $0x110] sm:$0xff]  ;;  %v782_v16 = vpop.permute.xlu0 %781  ;;  %v1029_v14 = vadd.f32 %v1028_v12, %v1027_v10  ;;  %v1225_v17 = vadd.f32 %v1224_v13, %v1223_v11 }
 0x360   :  { %v1030_v32 = vsel %vm672_vm2, %v3460_v15, 0.0  ;;  %v1131_v30 = vmul.f32 %v3460_v15, %v3460_v15  ;;  %823 = vst.msk [vmem:[#allocation3 + $0x130] sm:$0xff] %vm672_vm2, %v782_v16  ;;  %v1230_v31 = vsel %vm672_vm2, %v1132_v19, 0.0 }
 0x361   :  { %v3470_v23 = vld [vmem:[#allocation3 + $0x128] sm:$0xff]  ;;  %v788_v24 = vpop.permute.xlu1 %787  ;;  %v1031_v25 = vadd.f32 %v1030_v32, %v1029_v14  ;;  %v1227_v46 = vadd.f32 %v1226_v18, %v1225_v17 }
 0x362   :  { %v1228_v59 = vsel %vm672_vm2, %v1131_v30, 0.0  ;;  %826 = vst.msk [vmem:[#allocation3 + $0x148] sm:$0xff] %vm672_vm2, %v788_v24  ;;  %v1134_v34 = vmul.f32 %v3470_v23, %v3470_v23  ;;  %v1036_v43 = vsel %vm672_vm2, %v3470_v23, 0.0 }
 0x363   :  { %v3476_v26 = vld [vmem:[#allocation3 + $0x120] sm:$0xff]  ;;  %v786_v27 = vpop.permute.xlu0 %785  ;;  %v1033_v28 = vadd.f32 %v1032_v45, %v1031_v25  ;;  %v1229_v29 = vadd.f32 %v1228_v59, %v1227_v46 }
 0x364   :  { %v1034_v36 = vsel %vm672_vm2, %v3476_v26, 0.0  ;;  %v1133_v37 = vmul.f32 %v3476_v26, %v3476_v26  ;;  %825 = vst.msk [vmem:[#allocation3 + $0x140] sm:$0xff] %vm672_vm2, %v786_v27  ;;  %v1234_v51 = vsel %vm672_vm2, %v1134_v34, 0.0 }
 0x365   :  { %v3486_v38 = vld [vmem:[#allocation3 + $0x138] sm:$0xff]  ;;  %v792_v39 = vpop.permute.xlu1 %791  ;;  %v1035_v40 = vadd.f32 %v1034_v36, %v1033_v28  ;;  %v1231_v41 = vadd.f32 %v1230_v31, %v1229_v29 }
 0x366   :  { %v1232_v44 = vsel %vm672_vm2, %v1133_v37, 0.0  ;;  %828 = vst.msk [vmem:[#allocation3 + $0x158] sm:$0xff] %vm672_vm2, %v792_v39  ;;  %v1136_v54 = vmul.f32 %v3486_v38, %v3486_v38  ;;  %v1040_v21 = vsel %vm672_vm2, %v3486_v38, 0.0 }
 0x367   :  { %v3492_v47 = vld [vmem:[#allocation3 + $0x130] sm:$0xff]  ;;  %v790_v48 = vpop.permute.xlu0 %789  ;;  %v1037_v49 = vadd.f32 %v1036_v43, %v1035_v40  ;;  %v1233_v50 = vadd.f32 %v1232_v44, %v1231_v41 }
 0x368   :  { %v1038_v55 = vsel %vm672_vm2, %v3492_v47, 0.0  ;;  %v1135_v56 = vmul.f32 %v3492_v47, %v3492_v47  ;;  %827 = vst.msk [vmem:[#allocation3 + $0x150] sm:$0xff] %vm672_vm2, %v790_v48  ;;  %v1238_v0 = vsel %vm672_vm2, %v1136_v54, 0.0 }
 0x369   :  { %v3502_v57 = vld [vmem:[#allocation3 + $0x148] sm:$0xff]  ;;  %v796_v58 = vpop.permute.xlu1 %795  ;;  %v1039_v60 = vadd.f32 %v1038_v55, %v1037_v49  ;;  %v1235_v20 = vadd.f32 %v1234_v51, %v1233_v50 }
 0x36a   :  { %v1236_v22 = vsel %vm672_vm2, %v1135_v56, 0.0  ;;  %830 = vst.msk [vmem:[#allocation3 + $0x168] sm:$0xff] %vm672_vm2, %v796_v58  ;;  %v1138_v3 = vmul.f32 %v3502_v57, %v3502_v57  ;;  %v1044_v8 = vsel %vm672_vm2, %v3502_v57, 0.0 }
 0x36b   :  { %v3508_v61 = vld [vmem:[#allocation3 + $0x140] sm:$0xff]  ;;  %v794_v33 = vpop.permute.xlu0 %793  ;;  %v1041_v63 = vadd.f32 %v1040_v21, %v1039_v60  ;;  %v1237_v42 = vadd.f32 %v1236_v22, %v1235_v20 }
 0x36c   :  { %v1042_v4 = vsel %vm672_vm2, %v3508_v61, 0.0  ;;  %v1137_v5 = vmul.f32 %v3508_v61, %v3508_v61  ;;  %829 = vst.msk [vmem:[#allocation3 + $0x160] sm:$0xff] %vm672_vm2, %v794_v33  ;;  %v1242_v13 = vsel %vm672_vm2, %v1138_v3, 0.0 }
 0x36d   :  { %v3518_v52 = vld [vmem:[#allocation3 + $0x158] sm:$0xff]  ;;  %v800_v53 = vpop.permute.xlu1 %799  ;;  %v1043_v6 = vadd.f32 %v1042_v4, %v1041_v63  ;;  %v1239_v7 = vadd.f32 %v1238_v0, %v1237_v42 }
 0x36e   :  { %v1240_v9 = vsel %vm672_vm2, %v1137_v5, 0.0  ;;  %832 = vst.msk [vmem:[#allocation3 + $0x178] sm:$0xff] %vm672_vm2, %v800_v53  ;;  %v1140_v16 = vmul.f32 %v3518_v52, %v3518_v52  ;;  %v1048_v24 = vsel %vm672_vm2, %v3518_v52, 0.0 }
 0x36f   :  { %v3524_v2 = vld [vmem:[#allocation3 + $0x150] sm:$0xff]  ;;  %v798_v10 = vpop.permute.xlu0 %797  ;;  %v1045_v11 = vadd.f32 %v1044_v8, %v1043_v6  ;;  %v1241_v12 = vadd.f32 %v1240_v9, %v1239_v7 }
 0x370   :  { %v1046_v14 = vsel %vm672_vm2, %v3524_v2, 0.0  ;;  %v1139_v17 = vmul.f32 %v3524_v2, %v3524_v2  ;;  %831 = vst.msk [vmem:[#allocation3 + $0x170] sm:$0xff] %vm672_vm2, %v798_v10  ;;  %v1246_v28 = vsel %vm672_vm2, %v1140_v16, 0.0 }
 0x371   :  { %v3534_v18 = vld [vmem:[#allocation3 + $0x168] sm:$0xff]  ;;  %v836_v19 = vpop.permute.xlu1 %835  ;;  %v1047_v32 = vadd.f32 %v1046_v14, %v1045_v11  ;;  %v1243_v30 = vadd.f32 %v1242_v13, %v1241_v12 }
 0x372   :  { %v1244_v25 = vsel %vm672_vm2, %v1139_v17, 0.0  ;;  %882 = vst.msk [vmem:[#allocation3 + $0x188] sm:$0xff] %vm672_vm2, %v836_v19  ;;  %v1142_v29 = vmul.f32 %v3534_v18, %v3534_v18  ;;  %v1052_v41 = vsel %vm672_vm2, %v3534_v18, 0.0 }
 0x373   :  { %v3540_v46 = vld [vmem:[#allocation3 + $0x160] sm:$0xff]  ;;  %v834_v45 = vpop.permute.xlu0 %833  ;;  %v1049_v59 = vadd.f32 %v1048_v24, %v1047_v32  ;;  %v1245_v27 = vadd.f32 %v1244_v25, %v1243_v30 }
 0x374   :  { %v1050_v31 = vsel %vm672_vm2, %v3540_v46, 0.0  ;;  %v1141_v34 = vmul.f32 %v3540_v46, %v3540_v46  ;;  %881 = vst.msk [vmem:[#allocation3 + $0x180] sm:$0xff] %vm672_vm2, %v834_v45  ;;  %v1250_v51 = vsel %vm672_vm2, %v1142_v29, 0.0 }
 0x375   :  { %v3550_v36 = vld [vmem:[#allocation3 + $0x178] sm:$0xff]  ;;  %v840_v37 = vpop.permute.xlu1 %839  ;;  %v1051_v39 = vadd.f32 %v1050_v31, %v1049_v59  ;;  %v1247_v40 = vadd.f32 %v1246_v28, %v1245_v27 }
 0x376   :  { %v1248_v43 = vsel %vm672_vm2, %v1141_v34, 0.0  ;;  %884 = vst.msk [vmem:[#allocation3 + $0x198] sm:$0xff] %vm672_vm2, %v840_v37  ;;  %v1144_v54 = vmul.f32 %v3550_v36, %v3550_v36  ;;  %v1056_v22 = vsel %vm672_vm2, %v3550_v36, 0.0 }
 0x377   :  { %v3556_v44 = vld [vmem:[#allocation3 + $0x170] sm:$0xff]  ;;  %v838_v48 = vpop.permute.xlu0 %837  ;;  %v1053_v49 = vadd.f32 %v1052_v41, %v1051_v39  ;;  %v1249_v50 = vadd.f32 %v1248_v43, %v1247_v40 }
 0x378   :  { %v1054_v55 = vsel %vm672_vm2, %v3556_v44, 0.0  ;;  %v1143_v56 = vmul.f32 %v3556_v44, %v3556_v44  ;;  %883 = vst.msk [vmem:[#allocation3 + $0x190] sm:$0xff] %vm672_vm2, %v838_v48  ;;  %v1254_v4 = vsel %vm672_vm2, %v1144_v54, 0.0 }
 0x379   :  { %v3566_v58 = vld [vmem:[#allocation3 + $0x188] sm:$0xff]  ;;  %v844_v60 = vpop.permute.xlu1 %843  ;;  %v1055_v20 = vadd.f32 %v1054_v55, %v1053_v49  ;;  %v1251_v21 = vadd.f32 %v1250_v51, %v1249_v50 }
 0x37a   :  { %v1252_v33 = vsel %vm672_vm2, %v1143_v56, 0.0  ;;  %886 = vst.msk [vmem:[#allocation3 + $0x1a8] sm:$0xff] %vm672_vm2, %v844_v60  ;;  %v1146_v5 = vmul.f32 %v3566_v58, %v3566_v58  ;;  %v1060_v11 = vsel %vm672_vm2, %v3566_v58, 0.0 }
 0x37b   :  { %v3572_v63 = vld [vmem:[#allocation3 + $0x180] sm:$0xff]  ;;  %v842_v42 = vpop.permute.xlu0 %841  ;;  %v1057_v0 = vadd.f32 %v1056_v22, %v1055_v20  ;;  %v1253_v3 = vadd.f32 %v1252_v33, %v1251_v21 }
 0x37c   :  { %v1058_v53 = vsel %vm672_vm2, %v3572_v63, 0.0  ;;  %v1145_v6 = vmul.f32 %v3572_v63, %v3572_v63  ;;  %885 = vst.msk [vmem:[#allocation3 + $0x1a0] sm:$0xff] %vm672_vm2, %v842_v42  ;;  %v1258_v19 = vsel %vm672_vm2, %v1146_v5, 0.0 }
 0x37d   :  { %v3582_v7 = vld [vmem:[#allocation3 + $0x198] sm:$0xff]  ;;  %v848_v8 = vpop.permute.xlu1 %847  ;;  %v1059_v9 = vadd.f32 %v1058_v53, %v1057_v0  ;;  %v1255_v10 = vadd.f32 %v1254_v4, %v1253_v3 }
 0x37e   :  { %v1256_v12 = vsel %vm672_vm2, %v1145_v6, 0.0  ;;  %888 = vst.msk [vmem:[#allocation3 + $0x1b8] sm:$0xff] %vm672_vm2, %v848_v8  ;;  %v1148_v32 = vmul.f32 %v3582_v7, %v3582_v7  ;;  %v1064_v28 = vsel %vm672_vm2, %v3582_v7, 0.0 }
 0x37f   :  { %v3588_v13 = vld [vmem:[#allocation3 + $0x190] sm:$0xff]  ;;  %v846_v16 = vpop.permute.xlu0 %845  ;;  %v1061_v14 = vadd.f32 %v1060_v11, %v1059_v9  ;;  %v1257_v17 = vadd.f32 %v1256_v12, %v1255_v10 }
 0x380   :  { %v1062_v30 = vsel %vm672_vm2, %v3588_v13, 0.0  ;;  %v1147_v24 = vmul.f32 %v3588_v13, %v3588_v13  ;;  %887 = vst.msk [vmem:[#allocation3 + $0x1b0] sm:$0xff] %vm672_vm2, %v846_v16  ;;  %v1262_v40 = vsel %vm672_vm2, %v1148_v32, 0.0 }
 0x381   :  { %v3598_v25 = vld [vmem:[#allocation3 + $0x1a8] sm:$0xff]  ;;  %v852_v45 = vpop.permute.xlu1 %851  ;;  %v1063_v59 = vadd.f32 %v1062_v30, %v1061_v14  ;;  %v1259_v27 = vadd.f32 %v1258_v19, %v1257_v17 }
 0x382   :  { %v1260_v29 = vsel %vm672_vm2, %v1147_v24, 0.0  ;;  %890 = vst.msk [vmem:[#allocation3 + $0x1c8] sm:$0xff] %vm672_vm2, %v852_v45  ;;  %v1150_v41 = vmul.f32 %v3598_v25, %v3598_v25  ;;  %v1068_v55 = vsel %vm672_vm2, %v3598_v25, 0.0 }
 0x383   :  { %v3604_v31 = vld [vmem:[#allocation3 + $0x1a0] sm:$0xff]  ;;  %v850_v34 = vpop.permute.xlu0 %849  ;;  %v1065_v37 = vadd.f32 %v1064_v28, %v1063_v59  ;;  %v1261_v39 = vadd.f32 %v1260_v29, %v1259_v27 }
 0x384   :  { %v1066_v43 = vsel %vm672_vm2, %v3604_v31, 0.0  ;;  %v1149_v48 = vmul.f32 %v3604_v31, %v3604_v31  ;;  %889 = vst.msk [vmem:[#allocation3 + $0x1c0] sm:$0xff] %vm672_vm2, %v850_v34  ;;  %v1266_v33 = vsel %vm672_vm2, %v1150_v41, 0.0 }
 0x385   :  { %v3614_v49 = vld [vmem:[#allocation3 + $0x1b8] sm:$0xff]  ;;  %v856_v50 = vpop.permute.xlu1 %855  ;;  %v1067_v51 = vadd.f32 %v1066_v43, %v1065_v37  ;;  %v1263_v54 = vadd.f32 %v1262_v40, %v1261_v39 }
 0x386   :  { %v1264_v56 = vsel %vm672_vm2, %v1149_v48, 0.0  ;;  %892 = vst.msk [vmem:[#allocation3 + $0x1d8] sm:$0xff] %vm672_vm2, %v856_v50  ;;  %v1152_v42 = vmul.f32 %v3614_v49, %v3614_v49  ;;  %v1072_v8 = vsel %vm672_vm2, %v3614_v49, 0.0 }
 0x387   :  { %v3620_v60 = vld [vmem:[#allocation3 + $0x1b0] sm:$0xff]  ;;  %v854_v20 = vpop.permute.xlu0 %853  ;;  %v1069_v21 = vadd.f32 %v1068_v55, %v1067_v51  ;;  %v1265_v22 = vadd.f32 %v1264_v56, %v1263_v54 }
 0x388   :  { %v1070_v0 = vsel %vm672_vm2, %v3620_v60, 0.0  ;;  %v1151_v3 = vmul.f32 %v3620_v60, %v3620_v60  ;;  %891 = vst.msk [vmem:[#allocation3 + $0x1d0] sm:$0xff] %vm672_vm2, %v854_v20  ;;  %v1270_v14 = vsel %vm672_vm2, %v1152_v42, 0.0 }
 0x389   :  { %v3630_v4 = vld [vmem:[#allocation3 + $0x1c8] sm:$0xff]  ;;  %v860_v5 = vpop.permute.xlu1 %859  ;;  %v1071_v53 = vadd.f32 %v1070_v0, %v1069_v21  ;;  %v1267_v6 = vadd.f32 %v1266_v33, %v1265_v22 }
 0x38a   :  { %v1268_v9 = vsel %vm672_vm2, %v1151_v3, 0.0  ;;  %894 = vst.msk [vmem:[#allocation3 + $0x1e8] sm:$0xff] %vm672_vm2, %v860_v5  ;;  %v1154_v17 = vmul.f32 %v3630_v4, %v3630_v4  ;;  %v1076_v27 = vsel %vm672_vm2, %v3630_v4, 0.0 }
 0x38b   :  { %v3636_v10 = vld [vmem:[#allocation3 + $0x1c0] sm:$0xff]  ;;  %v858_v11 = vpop.permute.xlu0 %857  ;;  %v1073_v12 = vadd.f32 %v1072_v8, %v1071_v53  ;;  %v1269_v16 = vadd.f32 %v1268_v9, %v1267_v6 }
 0x38c   :  { %v1074_v19 = vsel %vm672_vm2, %v3636_v10, 0.0  ;;  %v1153_v32 = vmul.f32 %v3636_v10, %v3636_v10  ;;  %893 = vst.msk [vmem:[#allocation3 + $0x1e0] sm:$0xff] %vm672_vm2, %v858_v11  ;;  %v1274_v40 = vsel %vm672_vm2, %v1154_v17, 0.0 }
 0x38d   :  { %v3646_v30 = vld [vmem:[#allocation3 + $0x1d8] sm:$0xff]  ;;  %v864_v24 = vpop.permute.xlu1 %863  ;;  %v1075_v45 = vadd.f32 %v1074_v19, %v1073_v12  ;;  %v1271_v59 = vadd.f32 %v1270_v14, %v1269_v16 }
 0x38e   :  { %v1272_v28 = vsel %vm672_vm2, %v1153_v32, 0.0  ;;  %896 = vst.msk [vmem:[#allocation3 + $0x1f8] sm:$0xff] %vm672_vm2, %v864_v24  ;;  %v1156_v41 = vmul.f32 %v3646_v30, %v3646_v30  ;;  %v1080_v55 = vsel %vm672_vm2, %v3646_v30, 0.0 }
 0x38f   :  { %v3652_v29 = vld [vmem:[#allocation3 + $0x1d0] sm:$0xff]  ;;  %v862_v34 = vpop.permute.xlu0 %861  ;;  %v1077_v37 = vadd.f32 %v1076_v27, %v1075_v45  ;;  %v1273_v39 = vadd.f32 %v1272_v28, %v1271_v59 }
 0x390   :  { %v1078_v43 = vsel %vm672_vm2, %v3652_v29, 0.0  ;;  %v1155_v48 = vmul.f32 %v3652_v29, %v3652_v29  ;;  %895 = vst.msk [vmem:[#allocation3 + $0x1f0] sm:$0xff] %vm672_vm2, %v862_v34  ;;  %v1278_v33 = vsel %vm672_vm2, %v1156_v41, 0.0 }
 0x391   :  { %v3662_v50 = vld [vmem:[#allocation3 + $0x1e8] sm:$0xff]  ;;  %v1079_v51 = vadd.f32 %v1078_v43, %v1077_v37  ;;  %v1275_v54 = vadd.f32 %v1274_v40, %v1273_v39 }
 0x392   :  { %v1276_v56 = vsel %vm672_vm2, %v1155_v48, 0.0  ;;  %v1158_v42 = vmul.f32 %v3662_v50, %v3662_v50  ;;  %v1084_v8 = vsel %vm672_vm2, %v3662_v50, 0.0 }
 0x393   :  { %v3667_v20 = vld [vmem:[#allocation3 + $0x1e0] sm:$0xff]  ;;  %v1081_v21 = vadd.f32 %v1080_v55, %v1079_v51  ;;  %v1277_v22 = vadd.f32 %v1276_v56, %v1275_v54 }
 0x394   :  { %v1082_v0 = vsel %vm672_vm2, %v3667_v20, 0.0  ;;  %v1157_v3 = vmul.f32 %v3667_v20, %v3667_v20  ;;  %v1282_v14 = vsel %vm672_vm2, %v1158_v42, 0.0 }
 0x395   :  { %v3676_v5 = vld [vmem:[#allocation3 + $0x1f8] sm:$0xff]  ;;  %v1083_v53 = vadd.f32 %v1082_v0, %v1081_v21  ;;  %v1279_v6 = vadd.f32 %v1278_v33, %v1277_v22 }
 0x396   :  { %v1280_v9 = vsel %vm672_vm2, %v1157_v3, 0.0  ;;  %v1160_v17 = vmul.f32 %v3676_v5, %v3676_v5  ;;  %v1088_v59 = vsel %vm672_vm2, %v3676_v5, 0.0 }
 0x397   :  { %v3681_v11 = vld [vmem:[#allocation3 + $0x1f0] sm:$0xff]  ;;  %v1085_v12 = vadd.f32 %v1084_v8, %v1083_v53  ;;  %v1281_v16 = vadd.f32 %v1280_v9, %v1279_v6  ;;  %v961_v9 = vld [vmem:[#allocation11] sm:$0x1] }
 0x398   :  { %v1086_v19 = vsel %vm672_vm2, %v3681_v11, 0.0  ;;  %v1159_v32 = vmul.f32 %v3681_v11, %v3681_v11  ;;  %v1286_v37 = vsel %vm672_vm2, %v1160_v17, 0.0 }
 0x399   :  { %v1087_v24 = vadd.f32 %v1086_v19, %v1085_v12  ;;  %v1283_v45 = vadd.f32 %v1282_v14, %v1281_v16  ;;  %v962_v14 = vld [vmem:[#allocation12] sm:$0x1] }
 0x39a   :  { %v1284_v27 = vsel %vm672_vm2, %v1159_v32, 0.0 }
 0x39b   :  { %v1089_v28 = vadd.f32 %v1088_v59, %v1087_v24  ;;  %v1285_v34 = vadd.f32 %v1284_v27, %v1283_v45  ;;  %v2718_v24 = vld [vmem:[#allocation3] sm:$0xff] }
 0x39d   :  { %v1090_v39 = vrot.slane %v1089_v28, 4  ;;  %v1287_v40 = vadd.f32 %v1286_v37, %v1285_v34 }
 0x39f   :  { %v1091_v41 = vadd.f32 %v1090_v39, %v1089_v28  ;;  %v1288_v43 = vrot.slane %v1287_v40, 4  ;;  %v2719_v28 = vld [vmem:[#allocation3 + $0x8] sm:$0xff]  ;;  %v2720_v39 = vld [vmem:[#allocation3 + $0x10] sm:$0xff] }
 0x3a1   :  { %v1092_v48 = vrot.slane %v1091_v41, 2  ;;  %v1289_v51 = vadd.f32 %v1288_v43, %v1287_v40  ;;  %v2721_v43 = vld [vmem:[#allocation3 + $0x18] sm:$0xff] }
 0x3a3   :  { %v1093_v54 = vadd.f32 %v1092_v48, %v1091_v41  ;;  %v1290_v55 = vrot.slane %v1289_v51, 2 }
 0x3a5   :  { %v1094_v56 = vrot.slane %v1093_v54, 1  ;;  %v1291_v21 = vadd.f32 %v1290_v55, %v1289_v51 }
 0x3a7   :  { %v1095_v22 = vadd.f32 %v1094_v56, %v1093_v54  ;;  %v1292_v33 = vrot.slane %v1291_v21, 1 }
 0x3a9   :  { %v1096_v42 = vmul.f32 0.001953125, %v1095_v22  ;;  %v1293_v0 = vadd.f32 %v1292_v33, %v1291_v21  ;;  %v2723_v33 = vld [vmem:[#allocation3 + $0x28] sm:$0xff] }
 0x3ab   :  { %v1294_v3 = vmul.f32 0.001953125, %v1293_v0  ;;  %v1295_v53 = vmul.f32 %v1096_v42, %v1096_v42 }
 0x3ad   :  { %v1296_v6 = vsub.f32 %v1294_v3, %v1295_v53 }
 0x3af   :  { %v1297_v8 = vadd.f32 1e-05, %v1296_v6 }
 0x3b1   :  { %2588 = vrsqrt.f32 %v1297_v8 }
 0x3be   :  { %v2589_v12 = vpop.eup %2588 }
 0x3bf   :  { %v1299_v16 = vmul.f32 %v2589_v12, %v961_v9  ;;  %v2724_v12 = vld [vmem:[#allocation3 + $0x30] sm:$0xff] }
 0x3c1   :  { %v1300_v17 = vmul.f32 %v1299_v16, %v1096_v42  ;;  %v3695_v19 = vrot.slane %v1299_v16, %v3167_v35 }
 0x3c3   :  { %v1301_v32 = vsub.f32 %v962_v14, %v1300_v17  ;;  %v1308_v45 = vmul.f32 %v2718_v24, %v3695_v19  ;;  %v1344_v59 = vmul.f32 %v3695_v19, %v3476_v26  ;;  %v1309_v34 = vmul.f32 %v2719_v28, %v3695_v19 }
 0x3c4   :  { %v1345_v37 = vmul.f32 %v3695_v19, %v3470_v23  ;;  %v1310_v40 = vmul.f32 %v2720_v39, %v3695_v19  ;;  %v1346_v41 = vmul.f32 %v3695_v19, %v3492_v47  ;;  %v1311_v48 = vmul.f32 %v2721_v43, %v3695_v19 }
 0x3c5   :  { %v3701_v27 = vrot.slane %v1301_v32, %v3167_v35  ;;  %v1347_v26 = vmul.f32 %v3695_v19, %v3486_v38  ;;  %v2722_v35 = vld [vmem:[#allocation3 + $0x20] sm:$0xff]  ;;  %v1348_v22 = vmul.f32 %v3695_v19, %v3508_v61  ;;  %v1313_v38 = vmul.f32 %v2723_v33, %v3695_v19 }
 0x3c6   :  { %v1312_v51 = vmul.f32 %v2722_v35, %v3695_v19  ;;  %v1349_v9 = vmul.f32 %v3695_v19, %v3502_v57  ;;  %v1314_v16 = vmul.f32 %v2724_v12, %v3695_v19  ;;  %v1350_v57 = vmul.f32 %v3695_v19, %v3524_v2  ;;  %v2725_v2 = vld [vmem:[#allocation3 + $0x38] sm:$0xff] }
 0x3c7   :  { %v1378_v54 = vadd.f32 %v3701_v27, %v1308_v45  ;;  %v1414_v55 = vadd.f32 %v3701_v27, %v1344_v59  ;;  %v1379_v23 = vadd.f32 %v3701_v27, %v1309_v34  ;;  %v1415_v56 = vadd.f32 %v3701_v27, %v1345_v37 }
 0x3c8   :  { %v1380_v21 = vadd.f32 %v3701_v27, %v1310_v40  ;;  %v1416_v47 = vadd.f32 %v3701_v27, %v1346_v41  ;;  %v1381_v6 = vadd.f32 %v3701_v27, %v1311_v48  ;;  %v1417_v8 = vadd.f32 %v3701_v27, %v1347_v26 }
 0x3c9   :  { %v1442_v42 = vmax.f32 %v1378_v54, 0.0  ;;  %v1478_v0 = vmax.f32 %v1414_v55, 0.0  ;;  %v1443_v3 = vmax.f32 %v1379_v23, 0.0  ;;  %v1479_v53 = vmax.f32 %v1415_v56, 0.0 }
 0x3ca   :  { %v1444_v61 = vmax.f32 %v1380_v21, 0.0  ;;  %v1480_v14 = vmax.f32 %v1416_v47, 0.0  ;;  %v1382_v17 = vadd.f32 %v3701_v27, %v1312_v51  ;;  %v1418_v32 = vadd.f32 %v3701_v27, %v1348_v22  ;;  %v2726_v51 = vld [vmem:[#allocation3 + $0x40] sm:$0xff]  ;;  %v2727_v47 = vld [vmem:[#allocation3 + $0x48] sm:$0xff] }
 0x3cb   :  { %2471 = vmatprep.mubr.msk.f32.mxu0 %vm672_vm2, %v1442_v42  ;;  %2525 = vmatprep.mubr.msk.f32.mxu1 %vm672_vm2, %v1478_v0  ;;  %v1383_v24 = vadd.f32 %v3701_v27, %v1313_v38  ;;  %v1419_v45 = vadd.f32 %v3701_v27, %v1349_v9  ;;  %v1384_v59 = vadd.f32 %v3701_v27, %v1314_v16  ;;  %v1445_v28 = vmax.f32 %v1381_v6, 0.0  ;;  %v2728_v42 = vld [vmem:[#allocation3 + $0x50] sm:$0xff] }
 0x3cc   :  { %2472 = vmatmul.mubr.msk.f32.vlgmr.msra.gmra.mxu0 %vm672_vm2, %v1443_v3  ;;  %2526 = vmatmul.mubr.msk.f32.vlgmr.msra.gmra.mxu1 %vm672_vm2, %v1479_v53  ;;  %v1481_v34 = vmax.f32 %v1417_v8, 0.0  ;;  %v1420_v37 = vadd.f32 %v3701_v27, %v1350_v57  ;;  %v1446_v39 = vmax.f32 %v1382_v17, 0.0  ;;  %v1482_v40 = vmax.f32 %v1418_v32, 0.0  ;;  %v2730_v57 = vld [vmem:[#allocation3 + $0x60] sm:$0xff] }
 0x3cd   :  { %2474 = vmatprep.mubr.msk.f32.mxu0 %vm672_vm2, %v1444_v61  ;;  %2528 = vmatprep.mubr.msk.f32.mxu1 %vm672_vm2, %v1480_v14  ;;  %v1447_v41 = vmax.f32 %v1383_v24, 0.0  ;;  %v1315_v43 = vmul.f32 %v2725_v2, %v3695_v19  ;;  %v1351_v48 = vmul.f32 %v3695_v19, %v3518_v52  ;;  %v1483_v26 = vmax.f32 %v1419_v45, 0.0 }
 0x3ce   :  { %v1448_v35 = vmax.f32 %v1384_v59, 0.0  ;;  %v1316_v54 = vmul.f32 %v2726_v51, %v3695_v19  ;;  %v1352_v55 = vmul.f32 %v3695_v19, %v3540_v46  ;;  %v1484_v23 = vmax.f32 %v1420_v37, 0.0 }
 0x3cf   :  { %v1385_v56 = vadd.f32 %v3701_v27, %v1315_v43  ;;  %v1421_v21 = vadd.f32 %v3701_v27, %v1351_v48  ;;  %v1317_v52 = vmul.f32 %v2727_v47, %v3695_v19  ;;  %v1353_v38 = vmul.f32 %v3695_v19, %v3534_v18  ;;  %v2732_v43 = vld [vmem:[#allocation3 + $0x70] sm:$0xff] }
 0x3d0   :  { %2475 = vmatmul.mubr.msk.f32.gmra.mxu0 %vm672_vm2, %v1445_v28  ;;  %2529 = vmatmul.mubr.msk.f32.gmra.mxu1 %vm672_vm2, %v1481_v34  ;;  %v1386_v22 = vadd.f32 %v3701_v27, %v1316_v54  ;;  %v1422_v33 = vadd.f32 %v3701_v27, %v1352_v55  ;;  %v1318_v0 = vmul.f32 %v2728_v42, %v3695_v19 }
 0x3d1   :  { %2477 = vmatprep.mubr.msk.f32.mxu0 %vm672_vm2, %v1446_v39  ;;  %2531 = vmatprep.mubr.msk.f32.mxu1 %vm672_vm2, %v1482_v40  ;;  %v1387_v46 = vadd.f32 %v3701_v27, %v1317_v52  ;;  %v1354_v3 = vmul.f32 %v3695_v19, %v3556_v44  ;;  %v1423_v53 = vadd.f32 %v3701_v27, %v1353_v38  ;;  %v1449_v6 = vmax.f32 %v1385_v56, 0.0  ;;  %v2729_v44 = vld [vmem:[#allocation3 + $0x58] sm:$0xff]  ;;  %v2731_v39 = vld [vmem:[#allocation3 + $0x68] sm:$0xff]  ;;  %v2734_v38 = vld [vmem:[#allocation3 + $0x80] sm:$0xff] }
 0x3d2   :  { %v1388_v18 = vadd.f32 %v3701_v27, %v1318_v0  ;;  %v1485_v8 = vmax.f32 %v1421_v21, 0.0  ;;  %v1450_v12 = vmax.f32 %v1386_v22, 0.0  ;;  %v1486_v16 = vmax.f32 %v1422_v33, 0.0 }
 0x3d3   :  { %v1424_v9 = vadd.f32 %v3701_v27, %v1354_v3  ;;  %v1451_v61 = vmax.f32 %v1387_v46, 0.0  ;;  %v1319_v14 = vmul.f32 %v2729_v44, %v3695_v19  ;;  %v1355_v17 = vmul.f32 %v3695_v19, %v3550_v36 }
 0x3d4   :  { %2478 = vmatmul.mubr.msk.f32.gmra.mxu0 %vm672_vm2, %v1447_v41  ;;  %2532 = vmatmul.mubr.msk.f32.gmra.mxu1 %vm672_vm2, %v1483_v26  ;;  %v1487_v32 = vmax.f32 %v1423_v53, 0.0  ;;  %v1452_v24 = vmax.f32 %v1388_v18, 0.0  ;;  %v1320_v45 = vmul.f32 %v2730_v57, %v3695_v19  ;;  %v1356_v59 = vmul.f32 %v3695_v19, %v3572_v63  ;;  %v2735_v18 = vld [vmem:[#allocation3 + $0x88] sm:$0xff] }
 0x3d5   :  { %2480 = vmatprep.mubr.msk.f32.mxu0 %vm672_vm2, %v1448_v35  ;;  %2534 = vmatprep.mubr.msk.f32.mxu1 %vm672_vm2, %v1484_v23  ;;  %v1488_v28 = vmax.f32 %v1424_v9, 0.0  ;;  %v1389_v34 = vadd.f32 %v3701_v27, %v1319_v14  ;;  %v1425_v37 = vadd.f32 %v3701_v27, %v1355_v17  ;;  %v1321_v36 = vmul.f32 %v2731_v39, %v3695_v19  ;;  %v2738_v39 = vld [vmem:[#allocation3 + $0xa0] sm:$0xff] }
 0x3d6   :  { %v1390_v40 = vadd.f32 %v3701_v27, %v1320_v45  ;;  %v1426_v41 = vadd.f32 %v3701_v27, %v1356_v59  ;;  %v1357_v2 = vmul.f32 %v3695_v19, %v3566_v58  ;;  %v1322_v48 = vmul.f32 %v2732_v43, %v3695_v19  ;;  %v2737_v59 = vld [vmem:[#allocation3 + $0x98] sm:$0xff]  ;;  %v2739_v43 = vld [vmem:[#allocation3 + $0xa8] sm:$0xff] }
 0x3d7   :  { %v1391_v63 = vadd.f32 %v3701_v27, %v1321_v36  ;;  %v1358_v26 = vmul.f32 %v3695_v19, %v3588_v13  ;;  %v1453_v51 = vmax.f32 %v1389_v34, 0.0  ;;  %v1489_v54 = vmax.f32 %v1425_v37, 0.0  ;;  %v2733_v13 = vld [vmem:[#allocation3 + $0x78] sm:$0xff] }
 0x3d8   :  { %2481 = vmatmul.mubr.msk.f32.gmra.mxu0 %vm672_vm2, %v1449_v6  ;;  %2535 = vmatmul.mubr.msk.f32.gmra.mxu1 %vm672_vm2, %v1485_v8  ;;  %v1427_v35 = vadd.f32 %v3701_v27, %v1357_v2  ;;  %v1392_v58 = vadd.f32 %v3701_v27, %v1322_v48  ;;  %v1454_v23 = vmax.f32 %v1390_v40, 0.0  ;;  %v1490_v56 = vmax.f32 %v1426_v41, 0.0 }
 0x3d9   :  { %2483 = vmatprep.mubr.msk.f32.mxu0 %vm672_vm2, %v1450_v12  ;;  %2537 = vmatprep.mubr.msk.f32.mxu1 %vm672_vm2, %v1486_v16  ;;  %v1428_v55 = vadd.f32 %v3701_v27, %v1358_v26  ;;  %v1455_v21 = vmax.f32 %v1391_v63, 0.0  ;;  %v1323_v47 = vmul.f32 %v2733_v13, %v3695_v19  ;;  %v1359_v52 = vmul.f32 %v3695_v19, %v3582_v7  ;;  %v2736_v12 = vld [vmem:[#allocation3 + $0x90] sm:$0xff] }
 0x3da   :  { %v1491_v22 = vmax.f32 %v1427_v35, 0.0  ;;  %v1456_v33 = vmax.f32 %v1392_v58, 0.0  ;;  %v1324_v42 = vmul.f32 %v2734_v38, %v3695_v19  ;;  %v1360_v0 = vmul.f32 %v3695_v19, %v3604_v31  ;;  %v2740_v58 = vld [vmem:[#allocation3 + $0xb0] sm:$0xff] }
 0x3db   :  { %v1492_v46 = vmax.f32 %v1428_v55, 0.0  ;;  %v1393_v3 = vadd.f32 %v3701_v27, %v1323_v47  ;;  %v1429_v53 = vadd.f32 %v3701_v27, %v1359_v52  ;;  %v1325_v7 = vmul.f32 %v2735_v18, %v3695_v19  ;;  %v2741_v52 = vld [vmem:[#allocation3 + $0xb8] sm:$0xff] }
 0x3dc   :  { %2484 = vmatmul.mubr.msk.f32.gmra.mxu0 %vm672_vm2, %v1451_v61  ;;  %2538 = vmatmul.mubr.msk.f32.gmra.mxu1 %vm672_vm2, %v1487_v32  ;;  %v1394_v6 = vadd.f32 %v3701_v27, %v1324_v42  ;;  %v1430_v8 = vadd.f32 %v3701_v27, %v1360_v0  ;;  %v1361_v9 = vmul.f32 %v3695_v19, %v3598_v25 }
 0x3dd   :  { %2486 = vmatprep.mubr.msk.f32.mxu0 %vm672_vm2, %v1452_v24  ;;  %2540 = vmatprep.mubr.msk.f32.mxu1 %vm672_vm2, %v1488_v28  ;;  %v1326_v16 = vmul.f32 %v2736_v12, %v3695_v19  ;;  %v1395_v31 = vadd.f32 %v3701_v27, %v1325_v7  ;;  %v1362_v25 = vmul.f32 %v3695_v19, %v3620_v60  ;;  %v1457_v14 = vmax.f32 %v1393_v3, 0.0 }
 0x3de   :  { %v1431_v61 = vadd.f32 %v3701_v27, %v1361_v9  ;;  %v1493_v17 = vmax.f32 %v1429_v53, 0.0  ;;  %v1458_v32 = vmax.f32 %v1394_v6, 0.0  ;;  %v1494_v24 = vmax.f32 %v1430_v8, 0.0 }
 0x3df   :  { %v1396_v44 = vadd.f32 %v3701_v27, %v1326_v16  ;;  %v1432_v57 = vadd.f32 %v3701_v27, %v1362_v25  ;;  %v1459_v45 = vmax.f32 %v1395_v31, 0.0  ;;  %v1327_v28 = vmul.f32 %v2737_v59, %v3695_v19 }
 0x3e0   :  { %2487 = vmatmul.mubr.msk.f32.gmra.mxu0 %vm672_vm2, %v1453_v51  ;;  %2541 = vmatmul.mubr.msk.f32.gmra.mxu1 %vm672_vm2, %v1489_v54  ;;  %v1363_v34 = vmul.f32 %v3695_v19, %v3614_v49  ;;  %v1495_v60 = vmax.f32 %v1431_v61, 0.0  ;;  %v1328_v36 = vmul.f32 %v2738_v39, %v3695_v19  ;;  %v1364_v40 = vmul.f32 %v3695_v19, %v3636_v10  ;;  %v2744_v61 = vld [vmem:[#allocation3 + $0xd0] sm:$0xff] }
 0x3e1   :  { %2489 = vmatprep.mubr.msk.f32.mxu0 %vm672_vm2, %v1454_v23  ;;  %2543 = vmatprep.mubr.msk.f32.mxu1 %vm672_vm2, %v1490_v56  ;;  %v1460_v37 = vmax.f32 %v1396_v44, 0.0  ;;  %v1397_v41 = vadd.f32 %v3701_v27, %v1327_v28  ;;  %v1329_v48 = vmul.f32 %v2739_v43, %v3695_v19  ;;  %v1365_v49 = vmul.f32 %v3695_v19, %v3630_v4  ;;  %v2745_v28 = vld [vmem:[#allocation3 + $0xd8] sm:$0xff] }
 0x3e2   :  { %v1433_v2 = vadd.f32 %v3701_v27, %v1363_v34  ;;  %v1496_v63 = vmax.f32 %v1432_v57, 0.0  ;;  %v1398_v26 = vadd.f32 %v3701_v27, %v1328_v36  ;;  %v1434_v35 = vadd.f32 %v3701_v27, %v1364_v40 }
 0x3e3   :  { %v1330_v51 = vmul.f32 %v2740_v58, %v3695_v19  ;;  %v1399_v10 = vadd.f32 %v3701_v27, %v1329_v48  ;;  %v1435_v54 = vadd.f32 %v3701_v27, %v1365_v49  ;;  %v1366_v55 = vmul.f32 %v3695_v19, %v3652_v29 }
 0x3e4   :  { %2490 = vmatmul.mubr.msk.f32.gmra.mxu0 %vm672_vm2, %v1455_v21  ;;  %2544 = vmatmul.mubr.msk.f32.gmra.mxu1 %vm672_vm2, %v1491_v22  ;;  %v1461_v23 = vmax.f32 %v1397_v41, 0.0  ;;  %v1497_v56 = vmax.f32 %v1433_v2, 0.0  ;;  %v1462_v21 = vmax.f32 %v1398_v26, 0.0  ;;  %v1498_v13 = vmax.f32 %v1434_v35, 0.0 }
 0x3e5   :  { %2492 = vmatprep.mubr.msk.f32.mxu0 %vm672_vm2, %v1456_v33  ;;  %2546 = vmatprep.mubr.msk.f32.mxu1 %vm672_vm2, %v1492_v46  ;;  %v1400_v4 = vadd.f32 %v3701_v27, %v1330_v51  ;;  %v1436_v47 = vadd.f32 %v3701_v27, %v1366_v55  ;;  %v1331_v22 = vmul.f32 %v2741_v52, %v3695_v19  ;;  %v1463_v33 = vmax.f32 %v1399_v10, 0.0  ;;  %v2742_v46 = vld [vmem:[#allocation3 + $0xc0] sm:$0xff] }
 0x3e6   :  { %v1499_v38 = vmax.f32 %v1435_v54, 0.0  ;;  %v1367_v42 = vmul.f32 %v3695_v19, %v3646_v30  ;;  %v1341_v29 = vmul.f32 %v3695_v19, %v3444_v62  ;;  %v1332_v3 = vmul.f32 %v2742_v46, %v3695_v19 }
 0x3e7   :  { %v1464_v0 = vmax.f32 %v1400_v4, 0.0  ;;  %v1368_v53 = vmul.f32 %v3695_v19, %v3667_v20  ;;  %v1342_v18 = vmul.f32 %v3695_v19, %v3460_v15  ;;  %v1401_v7 = vadd.f32 %v3701_v27, %v1331_v22  ;;  %v2743_v15 = vld [vmem:[#allocation3 + $0xc8] sm:$0xff]  ;;  %v2749_v4 = vld [vmem:[#allocation3 + $0xf8] sm:$0xff] }
 0x3e8   :  { %2493 = vmatmul.mubr.msk.f32.gmra.mxu0 %vm672_vm2, %v1457_v14  ;;  %2547 = vmatmul.mubr.msk.f32.gmra.mxu1 %vm672_vm2, %v1493_v17  ;;  %v1437_v30 = vadd.f32 %v3701_v27, %v1367_v42  ;;  %v3870_v62 = vadd.f32 %v3701_v27, %v1341_v29  ;;  %v1343_v6 = vmul.f32 %v3695_v19, %v3454_v1  ;;  %v1500_v8 = vmax.f32 %v1436_v47, 0.0  ;;  %v3932_v42 = vld [vmem:[#allocation15] ss:$0 sm:$0xff] }
 0x3e9   :  { %2495 = vmatprep.mubr.msk.f32.mxu0 %vm672_vm2, %v1458_v32  ;;  %2549 = vmatprep.mubr.msk.f32.mxu1 %vm672_vm2, %v1494_v24  ;;  %v1402_v9 = vadd.f32 %v3701_v27, %v1332_v3  ;;  %v1438_v12 = vadd.f32 %v3701_v27, %v1368_v53  ;;  %v3877_v20 = vadd.f32 %v3701_v27, %v1342_v18  ;;  %v1465_v14 = vmax.f32 %v1401_v7, 0.0 }
 0x3ea   :  { %v1333_v16 = vmul.f32 %v2743_v15, %v3695_v19  ;;  %v1369_v31 = vmul.f32 %v3695_v19, %v3662_v50  ;;  %v3885_v1 = vadd.f32 %v3701_v27, %v1343_v6  ;;  %v1334_v44 = vmul.f32 %v2744_v61, %v3695_v19 }
 0x3eb   :  { %v1370_v25 = vmul.f32 %v3695_v19, %v3681_v11  ;;  %v1501_v17 = vmax.f32 %v1437_v30, 0.0  ;;  %v1466_v50 = vmax.f32 %v1402_v9, 0.0  ;;  %v1502_v57 = vmax.f32 %v1438_v12, 0.0 }
 0x3ec   :  { %2496 = vmatmul.mubr.msk.f32.gmra.mxu0 %vm672_vm2, %v1459_v45  ;;  %2550 = vmatmul.mubr.msk.f32.gmra.mxu1 %vm672_vm2, %v1495_v60  ;;  %v1403_v32 = vadd.f32 %v3701_v27, %v1333_v16  ;;  %v1439_v24 = vadd.f32 %v3701_v27, %v1369_v31  ;;  %v1404_v45 = vadd.f32 %v3701_v27, %v1334_v44  ;;  %v2746_v60 = vld [vmem:[#allocation3 + $0xe0] sm:$0xff] }
 0x3ed   :  { %2498 = vmatprep.mubr.msk.f32.mxu0 %vm672_vm2, %v1460_v37  ;;  %2552 = vmatprep.mubr.msk.f32.mxu1 %vm672_vm2, %v1496_v63  ;;  %v1440_v59 = vadd.f32 %v3701_v27, %v1370_v25  ;;  %v1335_v34 = vmul.f32 %v2745_v28, %v3695_v19  ;;  %v1371_v11 = vmul.f32 %v3695_v19, %v3676_v5  ;;  %v2747_v5 = vld [vmem:[#allocation3 + $0xe8] sm:$0xff]  ;;  %v2748_v63 = vld [vmem:[#allocation3 + $0xf0] sm:$0xff] }
 0x3ee   :  { %v1336_v37 = vmul.f32 %v2746_v60, %v3695_v19  ;;  %v1467_v39 = vmax.f32 %v1403_v32, 0.0  ;;  %v1503_v36 = vmax.f32 %v1439_v24, 0.0  ;;  %v1468_v2 = vmax.f32 %v1404_v45, 0.0 }
 0x3ef   :  { %v1405_v40 = vadd.f32 %v3701_v27, %v1335_v34  ;;  %v1441_v41 = vadd.f32 %v3701_v27, %v1371_v11  ;;  %v1504_v43 = vmax.f32 %v1440_v59, 0.0  ;;  %v1337_v49 = vmul.f32 %v2747_v5, %v3695_v19 }
 0x3f0   :  { %2499 = vmatmul.mubr.msk.f32.gmra.mxu0 %vm672_vm2, %v1461_v23  ;;  %2553 = vmatmul.mubr.msk.f32.gmra.mxu1 %vm672_vm2, %v1497_v56  ;;  %v1406_v48 = vadd.f32 %v3701_v27, %v1336_v37  ;;  %v1338_v26 = vmul.f32 %v2748_v63, %v3695_v19  ;;  %v1339_v55 = vmul.f32 %v2749_v4, %v3695_v19  ;;  %v2750_v23 = vld [vmem:[#allocation3 + $0x100] sm:$0xff] }
 0x3f1   :  { %2501 = vmatprep.mubr.msk.f32.mxu0 %vm672_vm2, %v1462_v21  ;;  %2555 = vmatprep.mubr.msk.f32.mxu1 %vm672_vm2, %v1498_v13  ;;  %v1469_v35 = vmax.f32 %v1405_v40, 0.0  ;;  %v1505_v58 = vmax.f32 %v1441_v41, 0.0  ;;  %v1407_v51 = vadd.f32 %v3701_v27, %v1337_v49  ;;  %v1340_v56 = vmul.f32 %v2750_v23, %v3695_v19 }
 0x3f2   :  { %v1470_v10 = vmax.f32 %v1406_v48, 0.0  ;;  %v1408_v54 = vadd.f32 %v3701_v27, %v1338_v26  ;;  %v1409_v13 = vadd.f32 %v3701_v27, %v1339_v55  ;;  %v1476_v19 = vmax.f32 %v3877_v20, 0.0 }
 0x3f3   :  { %v1471_v21 = vmax.f32 %v1407_v51, 0.0  ;;  %v1410_v52 = vadd.f32 %v3701_v27, %v1340_v56  ;;  %v1477_v27 = vmax.f32 %v3885_v1, 0.0 }
 0x3f4   :  { %2502 = vmatmul.mubr.msk.f32.gmra.mxu0 %vm672_vm2, %v1463_v33  ;;  %2556 = vmatmul.mubr.msk.f32.gmra.mxu1 %vm672_vm2, %v1499_v38  ;;  %v1472_v47 = vmax.f32 %v1408_v54, 0.0  ;;  %v1473_v22 = vmax.f32 %v1409_v13, 0.0  ;;  %v1475_v38 = vmax.f32 %v3870_v62, 0.0 }
 0x3f5   :  { %2504 = vmatprep.mubr.msk.f32.mxu0 %vm672_vm2, %v1464_v0  ;;  %2558 = vmatprep.mubr.msk.f32.mxu1 %vm672_vm2, %v1500_v8  ;;  %v1474_v33 = vmax.f32 %v1410_v52, 0.0 }
 0x3f8   :  { %2505 = vmatmul.mubr.msk.f32.gmra.mxu0 %vm672_vm2, %v1465_v14  ;;  %2559 = vmatmul.mubr.msk.f32.gmra.mxu1 %vm672_vm2, %v1501_v17 }
 0x3f9   :  { %2507 = vmatprep.mubr.msk.f32.mxu0 %vm672_vm2, %v1466_v50  ;;  %2561 = vmatprep.mubr.msk.f32.mxu1 %vm672_vm2, %v1502_v57 }
 0x3fc   :  { %2508 = vmatmul.mubr.msk.f32.gmra.mxu0 %vm672_vm2, %v1467_v39  ;;  %2562 = vmatmul.mubr.msk.f32.gmra.mxu1 %vm672_vm2, %v1503_v36 }
 0x3fd   :  { %2510 = vmatprep.mubr.msk.f32.mxu0 %vm672_vm2, %v1468_v2  ;;  %2564 = vmatprep.mubr.msk.f32.mxu1 %vm672_vm2, %v1504_v43 }
 0x400   :  { %2511 = vmatmul.mubr.msk.f32.gmra.mxu0 %vm672_vm2, %v1469_v35  ;;  %2565 = vmatmul.mubr.msk.f32.gmra.mxu1 %vm672_vm2, %v1505_v58 }
 0x401   :  { %2513 = vmatprep.mubr.msk.f32.mxu0 %vm672_vm2, %v1470_v10 }
 0x404   :  { %2514 = vmatmul.mubr.msk.f32.gmra.mxu0 %vm672_vm2, %v1471_v21 }
 0x405   :  { %2516 = vmatprep.mubr.msk.f32.mxu0 %vm672_vm2, %v1472_v47 }
 0x408   :  { %2517 = vmatmul.mubr.msk.f32.gmra.mxu0 %vm672_vm2, %v1473_v22 }
 0x409   :  { %2519 = vmatprep.mubr.msk.f32.mxu0 %vm672_vm2, %v1474_v33 }
 0x40c   :  { %2520 = vmatmul.mubr.msk.f32.gmra.mxu0 %vm672_vm2, %v1475_v38 }
 0x40d   :  { %2522 = vmatprep.mubr.msk.f32.mxu0 %vm672_vm2, %v1476_v19 }
 0x410   :  { %2523 = vmatmul.mubr.msk.f32.gmra.mxu0 %vm672_vm2, %v1477_v27 }
 0x48c   :  { %v2473_v29 = vpop.f32.mrf.mxu0  ;;  %v2527_v0 = vpop.f32.mrf.mxu1 }
 0x48d   :  { %v1779_v46 = vadd.f32 %v2473_v29, %v3932_v42  ;;  %v1959_v3 = vadd.f32 %v2527_v0, %v3932_v42 }
 0x48e   :  { %v1773_v53 = vpop.f32.mrf.mxu0  ;;  %v1953_v18 = vpop.f32.mrf.mxu1 }
 0x48f   :  { %2590 = vtanh.f32 %v1779_v46  ;;  %v1774_v7 = vadd.f32 %v3932_v42, %v1773_v53  ;;  %v1954_v30 = vadd.f32 %v3932_v42, %v1953_v18 }
 0x490   :  { %2592 = vtanh.f32 %v1959_v3  ;;  %v2476_v62 = vpop.f32.mrf.mxu0  ;;  %v2530_v6 = vpop.f32.mrf.mxu1 }
 0x491   :  { %2594 = vtanh.f32 %v1774_v7  ;;  %v1789_v8 = vadd.f32 %v2476_v62, %v3932_v42  ;;  %v1969_v9 = vadd.f32 %v2530_v6, %v3932_v42 }
 0x492   :  { %2596 = vtanh.f32 %v1954_v30  ;;  %v1783_v12 = vpop.f32.mrf.mxu0  ;;  %v1963_v20 = vpop.f32.mrf.mxu1 }
 0x493   :  { %2598 = vtanh.f32 %v1789_v8  ;;  %v1784_v15 = vadd.f32 %v3932_v42, %v1783_v12  ;;  %v1964_v16 = vadd.f32 %v3932_v42, %v1963_v20 }
 0x494   :  { %2600 = vtanh.f32 %v1969_v9  ;;  %v2479_v31 = vpop.f32.mrf.mxu0  ;;  %v2533_v1 = vpop.f32.mrf.mxu1 }
 0x495   :  { %2602 = vtanh.f32 %v1784_v15  ;;  %v1799_v61 = vadd.f32 %v2479_v31, %v3932_v42  ;;  %v1979_v44 = vadd.f32 %v2533_v1, %v3932_v42 }
 0x496   :  { %2604 = vtanh.f32 %v1964_v16  ;;  %v1793_v25 = vpop.f32.mrf.mxu0  ;;  %v1973_v14 = vpop.f32.mrf.mxu1 }
 0x497   :  { %2606 = vtanh.f32 %v1799_v61  ;;  %v1794_v17 = vadd.f32 %v3932_v42, %v1793_v25  ;;  %v1974_v32 = vadd.f32 %v3932_v42, %v1973_v14 }
 0x498   :  { %2608 = vtanh.f32 %v1979_v44  ;;  %v2482_v24 = vpop.f32.mrf.mxu0  ;;  %v2536_v50 = vpop.f32.mrf.mxu1 }
 0x499   :  { %2610 = vtanh.f32 %v1794_v17  ;;  %v1809_v57 = vadd.f32 %v2482_v24, %v3932_v42  ;;  %v1989_v45 = vadd.f32 %v2536_v50, %v3932_v42 }
 0x49a   :  { %2612 = vtanh.f32 %v1974_v32  ;;  %v1803_v59 = vpop.f32.mrf.mxu0  ;;  %v1983_v28 = vpop.f32.mrf.mxu1 }
 0x49b   :  { %2614 = vtanh.f32 %v1809_v57  ;;  %v1804_v34 = vadd.f32 %v3932_v42, %v1803_v59  ;;  %v1984_v11 = vadd.f32 %v3932_v42, %v1983_v28 }
 0x49c   :  { %v2591_v60 = vpop.eup %2590  ;;  %2616 = vtanh.f32 %v1989_v45  ;;  %v2485_v37 = vpop.f32.mrf.mxu0 }
 0x49d   :  { %v2539_v39 = vpop.f32.mrf.mxu1  ;;  %v2593_v36 = vpop.eup %2592  ;;  %2158 = vst.msk [vmem:[%s4263_s9 + $0x8] sm:$0xff] %vm2156_vm3, %v2591_v60  ;;  %2618 = vtanh.f32 %v1804_v34  ;;  %v1819_v40 = vadd.f32 %v2485_v37, %v3932_v42 }
 0x49e   :  { %v1999_v41 = vadd.f32 %v2539_v39, %v3932_v42  ;;  %v2595_v2 = vpop.eup %2594  ;;  %2194 = vst.msk [vmem:[%s4263_s9 + $0x128] sm:$0xff] %vm2156_vm3, %v2593_v36  ;;  %2620 = vtanh.f32 %v1984_v11  ;;  %v1813_v43 = vpop.f32.mrf.mxu0 }
 0x49f   :  { %v1993_v48 = vpop.f32.mrf.mxu1  ;;  %v2597_v5 = vpop.eup %2596  ;;  %2157 = vst.msk [vmem:[%s4263_s9] sm:$0xff] %vm2156_vm3, %v2595_v2  ;;  %2622 = vtanh.f32 %v1819_v40  ;;  %v1814_v49 = vadd.f32 %v3932_v42, %v1813_v43 }
 0x4a0   :  { %v1994_v63 = vadd.f32 %v3932_v42, %v1993_v48  ;;  %v2599_v26 = vpop.eup %2598  ;;  %2193 = vst.msk [vmem:[%s4263_s9 + $0x120] sm:$0xff] %vm2156_vm3, %v2597_v5  ;;  %2624 = vtanh.f32 %v1999_v41  ;;  %v2488_v35 = vpop.f32.mrf.mxu0 }
 0x4a1   :  { %v2542_v58 = vpop.f32.mrf.mxu1  ;;  %v2601_v51 = vpop.eup %2600  ;;  %2160 = vst.msk [vmem:[%s4263_s9 + $0x18] sm:$0xff] %vm2156_vm3, %v2599_v26  ;;  %2626 = vtanh.f32 %v1814_v49  ;;  %v1829_v10 = vadd.f32 %v2488_v35, %v3932_v42 }
 0x4a2   :  { %v2009_v54 = vadd.f32 %v2542_v58, %v3932_v42  ;;  %v2603_v4 = vpop.eup %2602  ;;  %2196 = vst.msk [vmem:[%s4263_s9 + $0x138] sm:$0xff] %vm2156_vm3, %v2601_v51  ;;  %2628 = vtanh.f32 %v1994_v63  ;;  %v1823_v55 = vpop.f32.mrf.mxu0 }
 0x4a3   :  { %v2003_v23 = vpop.f32.mrf.mxu1  ;;  %v2605_v56 = vpop.eup %2604  ;;  %2159 = vst.msk [vmem:[%s4263_s9 + $0x10] sm:$0xff] %vm2156_vm3, %v2603_v4  ;;  %2630 = vtanh.f32 %v1829_v10  ;;  %v1824_v21 = vadd.f32 %v3932_v42, %v1823_v55 }
 0x4a4   :  { %v2004_v13 = vadd.f32 %v3932_v42, %v2003_v23  ;;  %v2607_v47 = vpop.eup %2606  ;;  %2195 = vst.msk [vmem:[%s4263_s9 + $0x130] sm:$0xff] %vm2156_vm3, %v2605_v56  ;;  %2632 = vtanh.f32 %v2009_v54  ;;  %v2491_v52 = vpop.f32.mrf.mxu0 }
 0x4a5   :  { %v2545_v22 = vpop.f32.mrf.mxu1  ;;  %v2609_v33 = vpop.eup %2608  ;;  %2162 = vst.msk [vmem:[%s4263_s9 + $0x28] sm:$0xff] %vm2156_vm3, %v2607_v47  ;;  %2634 = vtanh.f32 %v1824_v21  ;;  %v1839_v38 = vadd.f32 %v2491_v52, %v3932_v42 }
 0x4a6   :  { %v2019_v19 = vadd.f32 %v2545_v22, %v3932_v42  ;;  %v2611_v27 = vpop.eup %2610  ;;  %2198 = vst.msk [vmem:[%s4263_s9 + $0x148] sm:$0xff] %vm2156_vm3, %v2609_v33  ;;  %2636 = vtanh.f32 %v2004_v13  ;;  %v1833_v29 = vpop.f32.mrf.mxu0 }
 0x4a7   :  { %v2013_v0 = vpop.f32.mrf.mxu1  ;;  %v2613_v46 = vpop.eup %2612  ;;  %2161 = vst.msk [vmem:[%s4263_s9 + $0x20] sm:$0xff] %vm2156_vm3, %v2611_v27  ;;  %2638 = vtanh.f32 %v1839_v38  ;;  %v1834_v3 = vadd.f32 %v3932_v42, %v1833_v29 }
 0x4a8   :  { %v2014_v53 = vadd.f32 %v3932_v42, %v2013_v0  ;;  %v2615_v18 = vpop.eup %2614  ;;  %2197 = vst.msk [vmem:[%s4263_s9 + $0x140] sm:$0xff] %vm2156_vm3, %v2613_v46  ;;  %2640 = vtanh.f32 %v2019_v19  ;;  %v2494_v7 = vpop.f32.mrf.mxu0 }
 0x4a9   :  { %v2548_v30 = vpop.f32.mrf.mxu1  ;;  %v2617_v62 = vpop.eup %2616  ;;  %2164 = vst.msk [vmem:[%s4263_s9 + $0x38] sm:$0xff] %vm2156_vm3, %v2615_v18  ;;  %2642 = vtanh.f32 %v1834_v3  ;;  %v1849_v6 = vadd.f32 %v2494_v7, %v3932_v42 }
 0x4aa   :  { %v2029_v8 = vadd.f32 %v2548_v30, %v3932_v42  ;;  %v2619_v9 = vpop.eup %2618  ;;  %2200 = vst.msk [vmem:[%s4263_s9 + $0x158] sm:$0xff] %vm2156_vm3, %v2617_v62  ;;  %2644 = vtanh.f32 %v2014_v53  ;;  %v1843_v12 = vpop.f32.mrf.mxu0 }
 0x4ab   :  { %v2023_v20 = vpop.f32.mrf.mxu1  ;;  %v2621_v15 = vpop.eup %2620  ;;  %2163 = vst.msk [vmem:[%s4263_s9 + $0x30] sm:$0xff] %vm2156_vm3, %v2619_v9  ;;  %2646 = vtanh.f32 %v1849_v6  ;;  %v1844_v16 = vadd.f32 %v3932_v42, %v1843_v12 }
 0x4ac   :  { %v2024_v31 = vadd.f32 %v3932_v42, %v2023_v20  ;;  %v2623_v1 = vpop.eup %2622  ;;  %2199 = vst.msk [vmem:[%s4263_s9 + $0x150] sm:$0xff] %vm2156_vm3, %v2621_v15  ;;  %2648 = vtanh.f32 %v2029_v8  ;;  %v2497_v61 = vpop.f32.mrf.mxu0 }
 0x4ad   :  { %v2551_v44 = vpop.f32.mrf.mxu1  ;;  %v2625_v25 = vpop.eup %2624  ;;  %2166 = vst.msk [vmem:[%s4263_s9 + $0x48] sm:$0xff] %vm2156_vm3, %v2623_v1  ;;  %2650 = vtanh.f32 %v1844_v16  ;;  %v1859_v14 = vadd.f32 %v2497_v61, %v3932_v42 }
 0x4ae   :  { %v2039_v17 = vadd.f32 %v2551_v44, %v3932_v42  ;;  %v2627_v32 = vpop.eup %2626  ;;  %2202 = vst.msk [vmem:[%s4263_s9 + $0x168] sm:$0xff] %vm2156_vm3, %v2625_v25  ;;  %2652 = vtanh.f32 %v2024_v31  ;;  %v1853_v24 = vpop.f32.mrf.mxu0 }
 0x4af   :  { %v2033_v50 = vpop.f32.mrf.mxu1  ;;  %v2629_v57 = vpop.eup %2628  ;;  %2165 = vst.msk [vmem:[%s4263_s9 + $0x40] sm:$0xff] %vm2156_vm3, %v2627_v32  ;;  %2654 = vtanh.f32 %v1859_v14  ;;  %v1854_v45 = vadd.f32 %v3932_v42, %v1853_v24 }
 0x4b0   :  { %v2034_v59 = vadd.f32 %v3932_v42, %v2033_v50  ;;  %v2631_v28 = vpop.eup %2630  ;;  %2201 = vst.msk [vmem:[%s4263_s9 + $0x160] sm:$0xff] %vm2156_vm3, %v2629_v57  ;;  %2656 = vtanh.f32 %v2039_v17  ;;  %v2500_v34 = vpop.f32.mrf.mxu0 }
 0x4b1   :  { %v2554_v11 = vpop.f32.mrf.mxu1  ;;  %v2633_v60 = vpop.eup %2632  ;;  %2168 = vst.msk [vmem:[%s4263_s9 + $0x58] sm:$0xff] %vm2156_vm3, %v2631_v28  ;;  %2658 = vtanh.f32 %v1854_v45  ;;  %v1869_v37 = vadd.f32 %v2500_v34, %v3932_v42 }
 0x4b2   :  { %v2049_v39 = vadd.f32 %v2554_v11, %v3932_v42  ;;  %v2635_v36 = vpop.eup %2634  ;;  %2204 = vst.msk [vmem:[%s4263_s9 + $0x178] sm:$0xff] %vm2156_vm3, %v2633_v60  ;;  %2660 = vtanh.f32 %v2034_v59  ;;  %v1863_v40 = vpop.f32.mrf.mxu0 }
 0x4b3   :  { %v2043_v41 = vpop.f32.mrf.mxu1  ;;  %v2637_v2 = vpop.eup %2636  ;;  %2167 = vst.msk [vmem:[%s4263_s9 + $0x50] sm:$0xff] %vm2156_vm3, %v2635_v36  ;;  %2662 = vtanh.f32 %v1869_v37  ;;  %v1864_v43 = vadd.f32 %v3932_v42, %v1863_v40 }
 0x4b4   :  { %v2044_v48 = vadd.f32 %v3932_v42, %v2043_v41  ;;  %v2639_v5 = vpop.eup %2638  ;;  %2203 = vst.msk [vmem:[%s4263_s9 + $0x170] sm:$0xff] %vm2156_vm3, %v2637_v2  ;;  %2664 = vtanh.f32 %v2049_v39  ;;  %v2503_v49 = vpop.f32.mrf.mxu0 }
 0x4b5   :  { %v2557_v63 = vpop.f32.mrf.mxu1  ;;  %v2641_v26 = vpop.eup %2640  ;;  %2170 = vst.msk [vmem:[%s4263_s9 + $0x68] sm:$0xff] %vm2156_vm3, %v2639_v5  ;;  %2666 = vtanh.f32 %v1864_v43  ;;  %v1879_v35 = vadd.f32 %v2503_v49, %v3932_v42 }
 0x4b6   :  { %v2059_v58 = vadd.f32 %v2557_v63, %v3932_v42  ;;  %v2643_v51 = vpop.eup %2642  ;;  %2206 = vst.msk [vmem:[%s4263_s9 + $0x188] sm:$0xff] %vm2156_vm3, %v2641_v26  ;;  %2668 = vtanh.f32 %v2044_v48  ;;  %v1873_v10 = vpop.f32.mrf.mxu0 }
 0x4b7   :  { %v2053_v54 = vpop.f32.mrf.mxu1  ;;  %v2645_v4 = vpop.eup %2644  ;;  %2169 = vst.msk [vmem:[%s4263_s9 + $0x60] sm:$0xff] %vm2156_vm3, %v2643_v51  ;;  %2670 = vtanh.f32 %v1879_v35  ;;  %v1874_v55 = vadd.f32 %v3932_v42, %v1873_v10 }
 0x4b8   :  { %v2054_v23 = vadd.f32 %v3932_v42, %v2053_v54  ;;  %v2647_v56 = vpop.eup %2646  ;;  %2205 = vst.msk [vmem:[%s4263_s9 + $0x180] sm:$0xff] %vm2156_vm3, %v2645_v4  ;;  %2672 = vtanh.f32 %v2059_v58  ;;  %v2506_v21 = vpop.f32.mrf.mxu0 }
 0x4b9   :  { %v2560_v13 = vpop.f32.mrf.mxu1  ;;  %v2649_v47 = vpop.eup %2648  ;;  %2172 = vst.msk [vmem:[%s4263_s9 + $0x78] sm:$0xff] %vm2156_vm3, %v2647_v56  ;;  %2674 = vtanh.f32 %v1874_v55  ;;  %v1889_v52 = vadd.f32 %v2506_v21, %v3932_v42 }
 0x4ba   :  { %v2069_v22 = vadd.f32 %v2560_v13, %v3932_v42  ;;  %v2651_v33 = vpop.eup %2650  ;;  %2208 = vst.msk [vmem:[%s4263_s9 + $0x198] sm:$0xff] %vm2156_vm3, %v2649_v47  ;;  %2676 = vtanh.f32 %v2054_v23  ;;  %v1883_v38 = vpop.f32.mrf.mxu0 }
 0x4bb   :  { %v2063_v19 = vpop.f32.mrf.mxu1  ;;  %v2653_v27 = vpop.eup %2652  ;;  %2171 = vst.msk [vmem:[%s4263_s9 + $0x70] sm:$0xff] %vm2156_vm3, %v2651_v33  ;;  %2678 = vtanh.f32 %v1889_v52  ;;  %v1884_v29 = vadd.f32 %v3932_v42, %v1883_v38 }
 0x4bc   :  { %v2064_v0 = vadd.f32 %v3932_v42, %v2063_v19  ;;  %v2655_v46 = vpop.eup %2654  ;;  %2207 = vst.msk [vmem:[%s4263_s9 + $0x190] sm:$0xff] %vm2156_vm3, %v2653_v27  ;;  %2680 = vtanh.f32 %v2069_v22  ;;  %v2509_v3 = vpop.f32.mrf.mxu0 }
 0x4bd   :  { %v2563_v53 = vpop.f32.mrf.mxu1  ;;  %v2657_v18 = vpop.eup %2656  ;;  %2174 = vst.msk [vmem:[%s4263_s9 + $0x88] sm:$0xff] %vm2156_vm3, %v2655_v46  ;;  %2682 = vtanh.f32 %v1884_v29  ;;  %v1899_v7 = vadd.f32 %v2509_v3, %v3932_v42 }
 0x4be   :  { %v2079_v30 = vadd.f32 %v2563_v53, %v3932_v42  ;;  %v2659_v62 = vpop.eup %2658  ;;  %2210 = vst.msk [vmem:[%s4263_s9 + $0x1a8] sm:$0xff] %vm2156_vm3, %v2657_v18  ;;  %2684 = vtanh.f32 %v2064_v0  ;;  %v1893_v6 = vpop.f32.mrf.mxu0 }
 0x4bf   :  { %v2073_v8 = vpop.f32.mrf.mxu1  ;;  %v2661_v9 = vpop.eup %2660  ;;  %2173 = vst.msk [vmem:[%s4263_s9 + $0x80] sm:$0xff] %vm2156_vm3, %v2659_v62  ;;  %2686 = vtanh.f32 %v1899_v7  ;;  %v1894_v12 = vadd.f32 %v3932_v42, %v1893_v6 }
 0x4c0   :  { %v2074_v20 = vadd.f32 %v3932_v42, %v2073_v8  ;;  %v2663_v15 = vpop.eup %2662  ;;  %2209 = vst.msk [vmem:[%s4263_s9 + $0x1a0] sm:$0xff] %vm2156_vm3, %v2661_v9  ;;  %2688 = vtanh.f32 %v2079_v30  ;;  %v2512_v16 = vpop.f32.mrf.mxu0 }
 0x4c1   :  { %v2566_v31 = vpop.f32.mrf.mxu1  ;;  %v2665_v1 = vpop.eup %2664  ;;  %2176 = vst.msk [vmem:[%s4263_s9 + $0x98] sm:$0xff] %vm2156_vm3, %v2663_v15  ;;  %2690 = vtanh.f32 %v1894_v12  ;;  %v1909_v61 = vadd.f32 %v2512_v16, %v3932_v42 }
 0x4c2   :  { %v2089_v44 = vadd.f32 %v2566_v31, %v3932_v42  ;;  %v2667_v25 = vpop.eup %2666  ;;  %2212 = vst.msk [vmem:[%s4263_s9 + $0x1b8] sm:$0xff] %vm2156_vm3, %v2665_v1  ;;  %2692 = vtanh.f32 %v2074_v20  ;;  %v1903_v14 = vpop.f32.mrf.mxu0 }
 0x4c3   :  { %v2083_v17 = vpop.f32.mrf.mxu1  ;;  %v2669_v32 = vpop.eup %2668  ;;  %2175 = vst.msk [vmem:[%s4263_s9 + $0x90] sm:$0xff] %vm2156_vm3, %v2667_v25  ;;  %2694 = vtanh.f32 %v1909_v61  ;;  %v1904_v24 = vadd.f32 %v3932_v42, %v1903_v14 }
 0x4c4   :  { %v2084_v50 = vadd.f32 %v3932_v42, %v2083_v17  ;;  %v2671_v57 = vpop.eup %2670  ;;  %2211 = vst.msk [vmem:[%s4263_s9 + $0x1b0] sm:$0xff] %vm2156_vm3, %v2669_v32  ;;  %2696 = vtanh.f32 %v2089_v44  ;;  %v2515_v45 = vpop.f32.mrf.mxu0 }
 0x4c5   :  { %v2673_v59 = vpop.eup %2672  ;;  %2178 = vst.msk [vmem:[%s4263_s9 + $0xa8] sm:$0xff] %vm2156_vm3, %v2671_v57  ;;  %2698 = vtanh.f32 %v1904_v24  ;;  %v1919_v28 = vadd.f32 %v2515_v45, %v3932_v42 }
 0x4c6   :  { %v2675_v34 = vpop.eup %2674  ;;  %2214 = vst.msk [vmem:[%s4263_s9 + $0x1c8] sm:$0xff] %vm2156_vm3, %v2673_v59  ;;  %2700 = vtanh.f32 %v2084_v50  ;;  %v1913_v11 = vpop.f32.mrf.mxu0 }
 0x4c7   :  { %v2677_v60 = vpop.eup %2676  ;;  %2177 = vst.msk [vmem:[%s4263_s9 + $0xa0] sm:$0xff] %vm2156_vm3, %v2675_v34  ;;  %2702 = vtanh.f32 %v1919_v28  ;;  %v1914_v37 = vadd.f32 %v3932_v42, %v1913_v11 }
 0x4c8   :  { %v2679_v39 = vpop.eup %2678  ;;  %2213 = vst.msk [vmem:[%s4263_s9 + $0x1c0] sm:$0xff] %vm2156_vm3, %v2677_v60  ;;  %v2518_v36 = vpop.f32.mrf.mxu0 }
 0x4c9   :  { %v2681_v40 = vpop.eup %2680  ;;  %2180 = vst.msk [vmem:[%s4263_s9 + $0xb8] sm:$0xff] %vm2156_vm3, %v2679_v39  ;;  %2704 = vtanh.f32 %v1914_v37  ;;  %v1929_v41 = vadd.f32 %v2518_v36, %v3932_v42 }
 0x4ca   :  { %v2683_v2 = vpop.eup %2682  ;;  %2216 = vst.msk [vmem:[%s4263_s9 + $0x1d8] sm:$0xff] %vm2156_vm3, %v2681_v40  ;;  %v1923_v43 = vpop.f32.mrf.mxu0 }
 0x4cb   :  { %v2685_v48 = vpop.eup %2684  ;;  %2179 = vst.msk [vmem:[%s4263_s9 + $0xb0] sm:$0xff] %vm2156_vm3, %v2683_v2  ;;  %2706 = vtanh.f32 %v1929_v41  ;;  %v1924_v5 = vadd.f32 %v3932_v42, %v1923_v43 }
 0x4cc   :  { %v2687_v49 = vpop.eup %2686  ;;  %2215 = vst.msk [vmem:[%s4263_s9 + $0x1d0] sm:$0xff] %vm2156_vm3, %v2685_v48  ;;  %v2521_v63 = vpop.f32.mrf.mxu0 }
 0x4cd   :  { %v2689_v26 = vpop.eup %2688  ;;  %2182 = vst.msk [vmem:[%s4263_s9 + $0xc8] sm:$0xff] %vm2156_vm3, %v2687_v49  ;;  %2708 = vtanh.f32 %v1924_v5  ;;  %v1939_v35 = vadd.f32 %v2521_v63, %v3932_v42 }
 0x4ce   :  { %v2691_v58 = vpop.eup %2690  ;;  %2218 = vst.msk [vmem:[%s4263_s9 + $0x1e8] sm:$0xff] %vm2156_vm3, %v2689_v26  ;;  %v1933_v51 = vpop.f32.mrf.mxu0 }
 0x4cf   :  { %v2693_v10 = vpop.eup %2692  ;;  %2181 = vst.msk [vmem:[%s4263_s9 + $0xc0] sm:$0xff] %vm2156_vm3, %v2691_v58  ;;  %2710 = vtanh.f32 %v1939_v35  ;;  %v1934_v54 = vadd.f32 %v3932_v42, %v1933_v51 }
 0x4d0   :  { %v2695_v4 = vpop.eup %2694  ;;  %2217 = vst.msk [vmem:[%s4263_s9 + $0x1e0] sm:$0xff] %vm2156_vm3, %v2693_v10  ;;  %v2524_v55 = vpop.f32.mrf.mxu0 }
 0x4d1   :  { %v2697_v23 = vpop.eup %2696  ;;  %2184 = vst.msk [vmem:[%s4263_s9 + $0xd8] sm:$0xff] %vm2156_vm3, %v2695_v4  ;;  %2712 = vtanh.f32 %v1934_v54  ;;  %v1949_v56 = vadd.f32 %v2524_v55, %v3932_v42 }
 0x4d2   :  { %v2699_v21 = vpop.eup %2698  ;;  %2220 = vst.msk [vmem:[%s4263_s9 + $0x1f8] sm:$0xff] %vm2156_vm3, %v2697_v23  ;;  %v1943_v13 = vpop.f32.mrf.mxu0 }
 0x4d3   :  { %v2701_v47 = vpop.eup %2700  ;;  %2183 = vst.msk [vmem:[%s4263_s9 + $0xd0] sm:$0xff] %vm2156_vm3, %v2699_v21  ;;  %2714 = vtanh.f32 %v1949_v56  ;;  %v1944_v52 = vadd.f32 %v3932_v42, %v1943_v13 }
 0x4d4   :  { %v2703_v22 = vpop.eup %2702  ;;  %2219 = vst.msk [vmem:[%s4263_s9 + $0x1f0] sm:$0xff] %vm2156_vm3, %v2701_v47 }
 0x4d5   :  { %2186 = vst.msk [vmem:[%s4263_s9 + $0xe8] sm:$0xff] %vm2156_vm3, %v2703_v22  ;;  %2716 = vtanh.f32 %v1944_v52 }
 0x4d6   :  { %v2705_v33 = vpop.eup %2704 }
 0x4d7   :  { %2185 = vst.msk [vmem:[%s4263_s9 + $0xe0] sm:$0xff] %vm2156_vm3, %v2705_v33 }
 0x4d8   :  { %v2707_v38 = vpop.eup %2706 }
 0x4d9   :  { %2188 = vst.msk [vmem:[%s4263_s9 + $0xf8] sm:$0xff] %vm2156_vm3, %v2707_v38 }
 0x4da   :  { %v2709_v42 = vpop.eup %2708 }
 0x4db   :  { %2187 = vst.msk [vmem:[%s4263_s9 + $0xf0] sm:$0xff] %vm2156_vm3, %v2709_v42 }
 0x4dc   :  { %v2711_v19 = vpop.eup %2710 }
 0x4dd   :  { %2190 = vst.msk [vmem:[%s4263_s9 + $0x108] sm:$0xff] %vm2156_vm3, %v2711_v19 }
 0x4de   :  { %v2713_v27 = vpop.eup %2712 }
 0x4df   :  { %2189 = vst.msk [vmem:[%s4263_s9 + $0x100] sm:$0xff] %vm2156_vm3, %v2713_v27 }
 0x4e0   :  { %v2715_v29 = vpop.eup %2714 }
 0x4e1   :  { %2192 = vst.msk [vmem:[%s4263_s9 + $0x118] sm:$0xff] %vm2156_vm3, %v2715_v29 }
 0x4e2   :  { %v2717_v0 = vpop.eup %2716 }
 0x4e3   :  { %2191 = vst.msk [vmem:[%s4263_s9 + $0x110] sm:$0xff] %vm2156_vm3, %v2717_v0 }
 0x4e4   :  { %2225 = vsyncpa [#allocation5], 1 }
 0x4e5   :  { %2226 = vsyncpa [#allocation7], 1 }
 0x4e6   :  { %2227 = vsyncpa [#allocation10], 1 }
 0x4e7   :  { %2228 = vsyncpa [#allocation13], 1 }
 0x4e8   :  { %2229 = vsyncpa [#allocation16], 1 }

</bundles_post_ra>
